<compile_context>
chip_gen: v7x
topology: tpu7x:2x2x1
jax: 0.10.0
libtpu: 0.0.40
codegen_flags: <defaults>
</compile_context>

<pallas_src>
import functools
import math

import jax
import jax.numpy as jnp
from jax.experimental import pallas as pl
from jax.experimental.pallas import tpu as pltpu


# ----------------------------- kernel helpers -------------------------------

def _layernorm(x, g, b, eps=1e-5):
    mu = jnp.mean(x, axis=-1, keepdims=True)
    var = jnp.mean((x - mu) ** 2, axis=-1, keepdims=True)
    return (x - mu) * jax.lax.rsqrt(var + eps) * g + b


def _gelu(x):
    # TODO(synk): torch nn.GELU default is the exact erf form; tanh approx used here.
    return jax.nn.gelu(x, approximate=True)


# --------------------------------- kernel -----------------------------------

def coordvit_kernel(num_heads,
                    patches_ref, pe_ref, keybias_ref, sid_col_ref, sid_row_ref,
                    wemb_ref, bemb_ref, cls_ref,
                    ln1g_ref, ln1b_ref, wqkv_ref, bqkv_ref, wo_ref, bo_ref,
                    ln2g_ref, ln2b_ref, w1_ref, b1_ref, w2_ref, b2_ref,
                    lnfg_ref, lnfb_ref, wc1_ref, bc1_ref, wc2_ref, bc2_ref,
                    out_ref, x_scratch):
    """One grid step = (batch block b, encoder layer l)."""
    Bt, N, P = patches_ref.shape
    E = pe_ref.shape[-1]
    S = N + 1
    M = Bt * S                                # stacked rows in this block
    H = num_heads
    dh = E // H
    scale = 1.0 / math.sqrt(dh)
    wd = wqkv_ref.dtype                       # matmul-operand dtype (bf16)

    l = pl.program_id(1)
    last_l = pl.num_programs(1) - 1

    # ---- l == 0: patch embedding + 2D PE + class tokens -> residual scratch.
    # Row order in the stacked block: all Bt*N patch rows (sample-major), then
    # the Bt class-token rows (classifier then reads a contiguous tail).
    @pl.when(l == 0)
    def _():
        patches = patches_ref[...].reshape(Bt * N, P)
        pe = pe_ref[...].reshape(Bt * N, E)
        emb = jnp.dot(patches.astype(wd), wemb_ref[...],
                      preferred_element_type=jnp.float32)
        emb = emb + bemb_ref[...] + pe                               # (Bt*N, E)
        cls_rows = jnp.broadcast_to(cls_ref[...], (Bt, E))           # (Bt, E)
        x_scratch[...] = jnp.concatenate([emb, cls_rows], axis=0)    # (M, E)

    # ---- additive attention bias built in-kernel (no (M,M) DMA):
    # 0 where query/key rows belong to the same sample AND the key is not a
    # padded patch; -1e9 otherwise.  Class-token keys are never masked.
    sid_c = jnp.broadcast_to(sid_col_ref[...], (M, M))
    sid_r = jnp.broadcast_to(sid_row_ref[...], (M, M))
    kb = jnp.broadcast_to(keybias_ref[0], (M, M))                    # 0 / -1e9
    bias = jnp.where(sid_c == sid_r, kb, -1e9)                       # (M, M)

    # ---- encoder layer l (pre-norm MHA + MLP) on the stacked (M, E) block.
    x = x_scratch[...]                                               # f32

    xn = _layernorm(x, ln1g_ref[0], ln1b_ref[0])
    qkv = jnp.dot(xn.astype(wd), wqkv_ref[0],
                  preferred_element_type=jnp.float32) + bqkv_ref[0]  # (M, 3E)

    # Scores / softmax / PV per head (one (M,M) slab live at a time); contexts
    # merged across heads with a lane concat, then ONE output projection.
    # TODO(synk): at realistic Bt*S switch to per-sample (Bt,S,S) score blocks
    # instead of the block-diagonal (M,M) trick (saves a factor Bt of flops).
    ctx_parts = []
    for h in range(H):
        q_h = qkv[:, h * dh:(h + 1) * dh]
        k_h = qkv[:, E + h * dh:E + (h + 1) * dh]
        v_h = qkv[:, 2 * E + h * dh:2 * E + (h + 1) * dh]
        s = jnp.einsum('qd,kd->qk', q_h.astype(wd), k_h.astype(wd),
                       preferred_element_type=jnp.float32) * scale   # (M, M)
        s = s + bias
        s = s - jnp.max(s, axis=-1, keepdims=True)
        p = jnp.exp(s)
        p = p * pl.reciprocal(jnp.sum(p, axis=-1, keepdims=True))    # exact
        ctx_parts.append(jnp.dot(p.astype(wd), v_h.astype(wd),
                                 preferred_element_type=jnp.float32))
    ctx = jnp.concatenate(ctx_parts, axis=-1)                        # (M, E)

    # Merged-head output projection: the head reduction is the K=E contraction.
    x = x + jnp.dot(ctx.astype(wd), wo_ref[0],
                    preferred_element_type=jnp.float32) + bo_ref[0]

    xn2 = _layernorm(x, ln2g_ref[0], ln2b_ref[0])
    hdn = _gelu(jnp.dot(xn2.astype(wd), w1_ref[0],
                        preferred_element_type=jnp.float32) + b1_ref[0])
    x = x + jnp.dot(hdn.astype(wd), w2_ref[0],
                    preferred_element_type=jnp.float32) + b2_ref[0]

    x_scratch[...] = x

    # ---- l == L-1: final norm + classifier on the Bt class-token rows.
    @pl.when(l == last_l)
    def _():
        cls_out = x[Bt * N:, :]                                      # (Bt, E)
        cn = _layernorm(cls_out, lnfg_ref[...], lnfb_ref[...])
        h1 = _gelu(jnp.dot(cn.astype(wd), wc1_ref[...],
                           preferred_element_type=jnp.float32) + bc1_ref[...])
        logits = jnp.dot(h1.astype(wd), wc2_ref[...],
                         preferred_element_type=jnp.float32) + bc2_ref[...]
        m = jnp.max(logits, axis=-1, keepdims=True)
        lse = jnp.log(jnp.sum(jnp.exp(logits - m), axis=-1, keepdims=True)) + m
        out_ref[0] = logits - lse


# --------------------------------- wrapper ----------------------------------

def coordvit_forward(params, x, coords, mask, *, num_heads, num_layers,
                     batch_tile=None, weight_dtype=jnp.bfloat16):
    B, N, C_in, Hp, Wp = x.shape
    P = C_in * Hp * Wp
    patches = x.reshape(B, N, P).astype(jnp.float32)

    E = params['wemb'].shape[1]
    classes = params['wc2'].shape[1]
    mlp = params['wc1'].shape[1]
    hidden = params['w1'].shape[2]
    L = num_layers
    S = N + 1

    # batch_tile: single-TensorCore chips (v5e/v6e) -> one grid block (nb=1):
    # biggest stacked M for the MXU, no serial grid overhead.  v7x (2 TCs)
    # -> split the batch into two "parallel" blocks (one per core).
    if batch_tile is None:
        batch_tile = B
        try:
            kind = jax.devices()[0].device_kind.lower()
            if 'v7' in kind and B % 2 == 0 and B > 1:
                batch_tile = B // 2
        except Exception:
            pass
    assert B % batch_tile == 0, (B, batch_tile)
    Bt = batch_tile
    nb = B // Bt
    M = Bt * S

    # ---------------- glue (plain JAX, outside the kernel) ------------------
    ci = coords.astype(jnp.int32)
    pe = params['pe_table'][ci[..., 0], ci[..., 1]].astype(jnp.float32)   # (B,N,E)

    # Per-block additive key bias row (0 = attend, -1e9 = padded patch); the
    # class-token keys (last Bt stacked rows) are never masked.
    key_masked = jnp.concatenate(
        [mask.reshape(nb, Bt * N), jnp.zeros((nb, Bt), dtype=bool)], axis=1)  # (nb,M)
    keybias = jnp.where(key_masked, -1e9, 0.0).astype(jnp.float32)[:, None, :]

    # Sample id of every stacked row (patch rows sample-major, then cls rows);
    # used in-kernel to build the block-diagonal attention structure.
    sid = jnp.concatenate([jnp.repeat(jnp.arange(Bt, dtype=jnp.int32), N),
                           jnp.arange(Bt, dtype=jnp.int32)])                  # (M,)
    sid_col = sid[:, None]                                                    # (M,1)
    sid_row = sid[None, :]                                                    # (1,M)

    # Weight prep (done once at weight-load time in a real deployment):
    # bf16 matmul operands, f32 biases / LayerNorm params, classifier padded to
    # 128 output lanes (pad bias = -1e9 so log-softmax over real classes is
    # unchanged).
    wd = weight_dtype
    C_pad = ((classes + 127) // 128) * 128
    prep = {
        'wemb': params['wemb'].astype(wd),
        'bemb': params['bemb'],
        'cls':  params['cls'].reshape(1, E),
        'ln1g': params['ln1g'], 'ln1b': params['ln1b'],
        'wqkv': params['wqkv'].astype(wd),      # (L, E, 3E): q|k|v, head-major cols
        'bqkv': params['bqkv'],
        'wo':   params['wo'].astype(wd),
        'bo':   params['bo'],
        'ln2g': params['ln2g'], 'ln2b': params['ln2b'],
        'w1':   params['w1'].astype(wd), 'b1': params['b1'],
        'w2':   params['w2'].astype(wd), 'b2': params['b2'],
        'lnfg': params['lnfg'], 'lnfb': params['lnfb'],
        'wc1':  params['wc1'].astype(wd), 'bc1': params['bc1'],
        'wc2p': jnp.pad(params['wc2'],
                        ((0, 0), (0, C_pad - classes))).astype(wd),
        'bc2p': jnp.pad(params['bc2'], ((0, 0), (0, C_pad - classes)),
                        constant_values=-1e9),
    }
    weight_names = ['wemb', 'bemb', 'cls',
                    'ln1g', 'ln1b', 'wqkv', 'bqkv', 'wo', 'bo',
                    'ln2g', 'ln2b', 'w1', 'b1', 'w2', 'b2',
                    'lnfg', 'lnfb', 'wc1', 'bc1', 'wc2p', 'bc2p']
    per_layer = {'ln1g', 'ln1b', 'wqkv', 'bqkv', 'wo', 'bo',
                 'ln2g', 'ln2b', 'w1', 'b1', 'w2', 'b2'}

    def const_spec(shape):
        nz = len(shape)
        return pl.BlockSpec(tuple(shape), lambda b, l, _n=nz: (0,) * _n)

    def layer_spec(shape):                     # stacked (L, ...) -> stream layer l
        blk = (1,) + tuple(shape[1:])
        nz = len(shape) - 1
        return pl.BlockSpec(blk, lambda b, l, _n=nz: (l,) + (0,) * _n)

    in_specs = [
        pl.BlockSpec((Bt, N, P), lambda b, l: (b, 0, 0)),   # patches
        pl.BlockSpec((Bt, N, E), lambda b, l: (b, 0, 0)),   # positional enc.
        pl.BlockSpec((1, 1, M), lambda b, l: (b, 0, 0)),    # key-bias row
        const_spec((M, 1)),                                 # sample id (col)
        const_spec((1, M)),                                 # sample id (row)
    ]
    for nm in weight_names:
        shape = tuple(prep[nm].shape)
        in_specs.append(layer_spec(shape) if nm in per_layer else const_spec(shape))

    grid_spec = pltpu.PrefetchScalarGridSpec(
        num_scalar_prefetch=0,
        grid=(nb, L),                          # layer axis innermost -> streaming
        in_specs=in_specs,
        out_specs=pl.BlockSpec((1, Bt, C_pad), lambda b, l: (b, 0, 0)),
        scratch_shapes=[pltpu.VMEM((M, E), jnp.float32)],   # residual carry
    )

    # Advisory cost estimate so XLA schedules the PE gather / mask prep around
    # the kernel sensibly.
    flops = (2 * B * N * P * E
             + 2 * L * B * S * E * (4 * E + 2 * hidden)
             + 4 * L * nb * M * M * E
             + 2 * B * (E * mlp + mlp * C_pad))
    transcendentals = (L * num_heads * nb * M * M
                       + L * B * S * hidden + B * mlp + B * C_pad)
    bytes_accessed = (patches.nbytes + pe.nbytes + keybias.nbytes
                      + sum(int(v.nbytes) for v in prep.values())
                      + nb * Bt * C_pad * 4)
    cost = pl.CostEstimate(flops=int(flops),
                           transcendentals=int(transcendentals),
                           bytes_accessed=int(bytes_accessed))

    kernel = functools.partial(coordvit_kernel, num_heads)
    out = pl.pallas_call(
        kernel,
        out_shape=jax.ShapeDtypeStruct((nb, Bt, C_pad), jnp.float32),
        grid_spec=grid_spec,
        compiler_params=pltpu.CompilerParams(
            dimension_semantics=("parallel", "arbitrary"),
            vmem_limit_bytes=32 * 1024 * 1024),
        cost_estimate=cost,
    )(patches, pe, keybias, sid_col, sid_row,
      *[prep[nm] for nm in weight_names])

    return out.reshape(B, C_pad)[:, :classes]


# ---------------------------- pure-JAX reference ----------------------------

def coordvit_reference(params, x, coords, mask, *, num_heads, num_layers,
                       matmul_dtype=jnp.float32):
    """Same math, per-sample, plain JAX.  matmul_dtype mirrors the kernel's
    bf16-operand / f32-accumulate matmul policy for a tight comparison."""
    B, N, C_in, Hp, Wp = x.shape
    P = C_in * Hp * Wp
    E = params['wemb'].shape[1]
    H = num_heads
    dh = E // H
    md = matmul_dtype
    patches = x.reshape(B, N, P).astype(jnp.float32)
    ci = coords.astype(jnp.int32)
    pe = params['pe_table'][ci[..., 0], ci[..., 1]].astype(jnp.float32)

    def mm(a, w):
        return jnp.dot(a.astype(md), w.astype(md),
                       preferred_element_type=jnp.float32)

    def ln(v, g, b, eps=1e-5):
        mu = v.mean(-1, keepdims=True)
        var = ((v - mu) ** 2).mean(-1, keepdims=True)
        return (v - mu) * jax.lax.rsqrt(var + eps) * g + b

    emb = mm(patches, params['wemb']) + params['bemb'] + pe           # (B,N,E)
    cls = jnp.broadcast_to(params['cls'].reshape(1, 1, E), (B, 1, E))
    xs = jnp.concatenate([emb, cls], axis=1)                          # (B,S,E)
    maskf = jnp.concatenate([mask, jnp.zeros((B, 1), bool)], axis=1)
    bias = jnp.where(maskf, -1e9, 0.0)[:, None, None, :]              # (B,1,1,S)

    for l in range(num_layers):
        xn = ln(xs, params['ln1g'][l], params['ln1b'][l])
        qkv = mm(xn, params['wqkv'][l]) + params['bqkv'][l]
        q, k, v = jnp.split(qkv, 3, axis=-1)

        def heads(t):
            return t.reshape(B, -1, H, dh).transpose(0, 2, 1, 3)

        qh, kh, vh = heads(q), heads(k), heads(v)
        s = jnp.einsum('bhqd,bhkd->bhqk', qh.astype(md), kh.astype(md),
                       preferred_element_type=jnp.float32) * (1.0 / math.sqrt(dh))
        s = s + bias
        s = s - jnp.max(s, axis=-1, keepdims=True)
        p = jnp.exp(s)
        p = p / jnp.sum(p, axis=-1, keepdims=True)
        o = jnp.einsum('bhqk,bhkd->bhqd', p.astype(md), vh.astype(md),
                       preferred_element_type=jnp.float32)
        o = o.transpose(0, 2, 1, 3).reshape(B, -1, E)
        xs = xs + mm(o, params['wo'][l]) + params['bo'][l]
        xn2 = ln(xs, params['ln2g'][l], params['ln2b'][l])
        hdn = jax.nn.gelu(mm(xn2, params['w1'][l]) + params['b1'][l],
                          approximate=True)
        xs = xs + mm(hdn, params['w2'][l]) + params['b2'][l]

    cls_out = xs[:, -1, :]
    cn = ln(cls_out, params['lnfg'], params['lnfb'])
    h1 = jax.nn.gelu(mm(cn, params['wc1']) + params['bc1'], approximate=True)
    logits = mm(h1, params['wc2']) + params['bc2']
    return jax.nn.log_softmax(logits, axis=-1)


# --------------------------- deterministic params ---------------------------

def make_pe_table(embed_size, image_size):
    half = embed_size // 2
    pos = jnp.arange(image_size, dtype=jnp.float32)[:, None]
    div = jnp.exp(jnp.arange(0, half, 2, dtype=jnp.float32)
                  * (-math.log(10000.0) / half))
    pe1 = jnp.zeros((image_size, half), jnp.float32)
    pe1 = pe1.at[:, 0::2].set(jnp.sin(pos * div))
    pe1 = pe1.at[:, 1::2].set(jnp.cos(pos * div))
    table = jnp.concatenate(
        [jnp.broadcast_to(pe1[:, None, :], (image_size, image_size, half)),
         jnp.broadcast_to(pe1[None, :, :], (image_size, image_size, half))],
        axis=-1)
    return table


def init_params(key, *, image_size, channel_size, patch_size, embed_size,
                classes, num_layers, hidden_size, mlp_size):
    P = channel_size * patch_size ** 2
    E, L, H, M = embed_size, num_layers, hidden_size, mlp_size
    keys = iter(jax.random.split(key, 16))

    def nrm(shape, scale=0.02):
        return jax.random.normal(next(keys), shape, jnp.float32) * scale

    params = {
        'pe_table': make_pe_table(E, image_size),
        'wemb': nrm((P, E)),
        'bemb': jnp.zeros((1, E), jnp.float32),
        'cls':  nrm((1, 1, E), 1.0),
        # per-layer stacked encoder weights (PyTorch-like combined qkv layout)
        'ln1g': jnp.ones((L, 1, E), jnp.float32),
        'ln1b': jnp.zeros((L, 1, E), jnp.float32),
        'wqkv': nrm((L, E, 3 * E)),
        'bqkv': jnp.zeros((L, 1, 3 * E), jnp.float32),
        'wo':   nrm((L, E, E)),
        'bo':   jnp.zeros((L, 1, E), jnp.float32),
        'ln2g': jnp.ones((L, 1, E), jnp.float32),
        'ln2b': jnp.zeros((L, 1, E), jnp.float32),
        'w1':   nrm((L, E, H)),
        'b1':   jnp.zeros((L, 1, H), jnp.float32),
        'w2':   nrm((L, H, E)),
        'b2':   jnp.zeros((L, 1, E), jnp.float32),
        # final norm + classifier head
        'lnfg': jnp.ones((1, E), jnp.float32),
        'lnfb': jnp.zeros((1, E), jnp.float32),
        'wc1':  nrm((E, M)),
        'bc1':  jnp.zeros((1, M), jnp.float32),
        'wc2':  nrm((M, classes)),
        'bc2':  jnp.zeros((1, classes), jnp.float32),
    }
    return params


# ----------------------------------- main ------------------------------------

if __name__ == "__main__":
    image_size = 16
    channel_size = 3
    patch_size = 4
    embed_size = 32
    num_heads = 4
    classes = 10
    num_layers = 2
    hidden_size = 64
    mlp_size = 64
    B, N = 8, 8                      # batch, number of superpixel patches

    key = jax.random.PRNGKey(0)
    kp, kx, kc = jax.random.split(key, 3)

    params = init_params(kp, image_size=image_size, channel_size=channel_size,
                         patch_size=patch_size, embed_size=embed_size,
                         classes=classes, num_layers=num_layers,
                         hidden_size=hidden_size, mlp_size=mlp_size)

    x = jax.random.normal(kx, (B, N, channel_size, patch_size, patch_size),
                          jnp.float32)
    coords = jax.random.randint(kc, (B, N, 2), 0, image_size)
    mask = (jnp.zeros((B, N), dtype=bool)
            .at[1, -2:].set(True)       # mask last 2 patches of sample 1
            .at[5, :3].set(True))       # mask first 3 patches of sample 5

    out = coordvit_forward(params, x, coords, mask,
                           num_heads=num_heads, num_layers=num_layers)
    out = jax.block_until_ready(out)

    assert out.shape == (B, classes), out.shape
    # log-softmax sanity: probabilities sum to 1 (final normalization is exact)
    assert bool(jnp.allclose(jnp.sum(jnp.exp(out), axis=-1), 1.0, atol=1e-3))
    # compare against a pure-JAX reference using the same bf16-operand /
    # f32-accumulate matmul policy as the kernel
    ref = coordvit_reference(params, x, coords, mask,
                             num_heads=num_heads, num_layers=num_layers,
                             matmul_dtype=jnp.bfloat16)
    assert bool(jnp.allclose(out, ref, atol=2e-2)), \
        float(jnp.max(jnp.abs(out - ref)))
    print("KERNEL_OK")
</pallas_src>

<mosaic_0001>
module attributes {stable_mosaic.version = 11 : i64} {
  func.func @coordvit_kernel(%arg0: i32, %arg1: i32, %arg2: memref<8x8x48xf32, #tpu.memory_space<vmem>>, %arg3: memref<8x8x32xf32, #tpu.memory_space<vmem>>, %arg4: memref<1x1x72xf32, #tpu.memory_space<vmem>>, %arg5: memref<72x1xi32, #tpu.memory_space<vmem>>, %arg6: memref<1x72xi32, #tpu.memory_space<vmem>>, %arg7: memref<48x32xbf16, #tpu.memory_space<vmem>>, %arg8: memref<1x32xf32, #tpu.memory_space<vmem>>, %arg9: memref<1x32xf32, #tpu.memory_space<vmem>>, %arg10: memref<1x1x32xf32, #tpu.memory_space<vmem>>, %arg11: memref<1x1x32xf32, #tpu.memory_space<vmem>>, %arg12: memref<1x32x96xbf16, #tpu.memory_space<vmem>>, %arg13: memref<1x1x96xf32, #tpu.memory_space<vmem>>, %arg14: memref<1x32x32xbf16, #tpu.memory_space<vmem>>, %arg15: memref<1x1x32xf32, #tpu.memory_space<vmem>>, %arg16: memref<1x1x32xf32, #tpu.memory_space<vmem>>, %arg17: memref<1x1x32xf32, #tpu.memory_space<vmem>>, %arg18: memref<1x32x64xbf16, #tpu.memory_space<vmem>>, %arg19: memref<1x1x64xf32, #tpu.memory_space<vmem>>, %arg20: memref<1x64x32xbf16, #tpu.memory_space<vmem>>, %arg21: memref<1x1x32xf32, #tpu.memory_space<vmem>>, %arg22: memref<1x32xf32, #tpu.memory_space<vmem>>, %arg23: memref<1x32xf32, #tpu.memory_space<vmem>>, %arg24: memref<32x64xbf16, #tpu.memory_space<vmem>>, %arg25: memref<1x64xf32, #tpu.memory_space<vmem>>, %arg26: memref<64x128xbf16, #tpu.memory_space<vmem>>, %arg27: memref<1x128xf32, #tpu.memory_space<vmem>>, %arg28: memref<1x8x128xf32, #tpu.memory_space<vmem>>, %arg29: memref<72x32xf32, #tpu.memory_space<vmem>>) attributes {dimension_semantics = [#tpu.dimension_semantics<parallel>, #tpu.dimension_semantics<arbitrary>], iteration_bounds = array<i64: 1, 2>, scalar_prefetch = 0 : i64, scratch_operands = 1 : i64, tpu.core_type = #tpu.core_type<tc>, window_params = [{transform_indices = @transform_0, window_bounds = array<i64: 8, 8, 48>}, {transform_indices = @transform_1, window_bounds = array<i64: 8, 8, 32>}, {transform_indices = @transform_2, window_bounds = array<i64: 1, 1, 72>}, {pipeline_mode = #tpu.pipeline_mode<synchronous>, transform_indices = @transform_3, window_bounds = array<i64: 72, 1>}, {pipeline_mode = #tpu.pipeline_mode<synchronous>, transform_indices = @transform_4, window_bounds = array<i64: 1, 72>}, {pipeline_mode = #tpu.pipeline_mode<synchronous>, transform_indices = @transform_5, window_bounds = array<i64: 48, 32>}, {pipeline_mode = #tpu.pipeline_mode<synchronous>, transform_indices = @transform_6, window_bounds = array<i64: 1, 32>}, {pipeline_mode = #tpu.pipeline_mode<synchronous>, transform_indices = @transform_7, window_bounds = array<i64: 1, 32>}, {transform_indices = @transform_8, window_bounds = array<i64: 1, 1, 32>}, {transform_indices = @transform_9, window_bounds = array<i64: 1, 1, 32>}, {transform_indices = @transform_10, window_bounds = array<i64: 1, 32, 96>}, {transform_indices = @transform_11, window_bounds = array<i64: 1, 1, 96>}, {transform_indices = @transform_12, window_bounds = array<i64: 1, 32, 32>}, {transform_indices = @transform_13, window_bounds = array<i64: 1, 1, 32>}, {transform_indices = @transform_14, window_bounds = array<i64: 1, 1, 32>}, {transform_indices = @transform_15, window_bounds = array<i64: 1, 1, 32>}, {transform_indices = @transform_16, window_bounds = array<i64: 1, 32, 64>}, {transform_indices = @transform_17, window_bounds = array<i64: 1, 1, 64>}, {transform_indices = @transform_18, window_bounds = array<i64: 1, 64, 32>}, {transform_indices = @transform_19, window_bounds = array<i64: 1, 1, 32>}, {pipeline_mode = #tpu.pipeline_mode<synchronous>, transform_indices = @transform_20, window_bounds = array<i64: 1, 32>}, {pipeline_mode = #tpu.pipeline_mode<synchronous>, transform_indices = @transform_21, window_bounds = array<i64: 1, 32>}, {pipeline_mode = #tpu.pipeline_mode<synchronous>, transform_indices = @transform_22, window_bounds = array<i64: 32, 64>}, {pipeline_mode = #tpu.pipeline_mode<synchronous>, transform_indices = @transform_23, window_bounds = array<i64: 1, 64>}, {pipeline_mode = #tpu.pipeline_mode<synchronous>, transform_indices = @transform_24, window_bounds = array<i64: 64, 128>}, {pipeline_mode = #tpu.pipeline_mode<synchronous>, transform_indices = @transform_25, window_bounds = array<i64: 1, 128>}, {transform_indices = @transform_26, window_bounds = array<i64: 1, 8, 128>}]} {
    %c0_i32 = arith.constant 0 : i32
    %0 = arith.cmpi eq, %arg1, %c0_i32 : i32
    %1 = arith.extui %0 : i1 to i32
    %c0_i32_0 = arith.constant 0 : i32
    %2 = arith.cmpi ne, %1, %c0_i32_0 : i32
    scf.if %2 {
      %c0_86 = arith.constant 0 : index
      %c0_87 = arith.constant 0 : index
      %c0_88 = arith.constant 0 : index
      %209 = vector.load %arg2[%c0_86, %c0_87, %c0_88] : memref<8x8x48xf32, #tpu.memory_space<vmem>>, vector<8x8x48xf32>
      %210 = vector.shape_cast %209 : vector<8x8x48xf32> to vector<64x48xf32>
      %c0_89 = arith.constant 0 : index
      %c0_90 = arith.constant 0 : index
      %c0_91 = arith.constant 0 : index
      %211 = vector.load %arg3[%c0_89, %c0_90, %c0_91] : memref<8x8x32xf32, #tpu.memory_space<vmem>>, vector<8x8x32xf32>
      %212 = vector.shape_cast %211 : vector<8x8x32xf32> to vector<64x32xf32>
      %213 = arith.truncf %210 : vector<64x48xf32> to vector<64x48xbf16>
      %c0_92 = arith.constant 0 : index
      %c0_93 = arith.constant 0 : index
      %214 = vector.load %arg7[%c0_92, %c0_93] : memref<48x32xbf16, #tpu.memory_space<vmem>>, vector<48x32xbf16>
      %cst_94 = arith.constant dense<0.000000e+00> : vector<64x32xf32>
      %215 = tpu.matmul %213, %214, %cst_94 {dimension_numbers = #tpu.dot_dimension_numbers<[1], [0], [0], [1], [0, 0, 1, 1], [], []>} : vector<64x48xbf16>, vector<48x32xbf16>, vector<64x32xf32> -> vector<64x32xf32>
      %c0_95 = arith.constant 0 : index
      %c0_96 = arith.constant 0 : index
      %216 = vector.load %arg8[%c0_95, %c0_96] : memref<1x32xf32, #tpu.memory_space<vmem>>, vector<1x32xf32>
      %217 = vector.broadcast %216 : vector<1x32xf32> to vector<64x32xf32>
      %218 = arith.addf %215, %217 : vector<64x32xf32>
      %219 = arith.addf %218, %212 : vector<64x32xf32>
      %c0_97 = arith.constant 0 : index
      %c0_98 = arith.constant 0 : index
      %220 = vector.load %arg9[%c0_97, %c0_98] : memref<1x32xf32, #tpu.memory_space<vmem>>, vector<1x32xf32>
      %221 = vector.shape_cast %220 : vector<1x32xf32> to vector<1x32xf32>
      %222 = vector.broadcast %221 : vector<1x32xf32> to vector<8x32xf32>
      %223 = tpu.concatenate %219, %222 in 0 : vector<64x32xf32>, vector<8x32xf32> -> vector<72x32xf32>
      %c0_99 = arith.constant 0 : index
      %c0_100 = arith.constant 0 : index
      %224 = vector.load %arg29[%c0_99, %c0_100] : memref<72x32xf32, #tpu.memory_space<vmem>>, vector<72x32xf32>
      tpu.vector_store %arg29[%c0_99, %c0_100], %223 {strides = array<i32>} : memref<72x32xf32, #tpu.memory_space<vmem>>, vector<72x32xf32>,
    } else {
    }
    %c0 = arith.constant 0 : index
    %c0_1 = arith.constant 0 : index
    %3 = vector.load %arg5[%c0, %c0_1] : memref<72x1xi32, #tpu.memory_space<vmem>>, vector<72x1xi32>
    %4 = vector.shape_cast %3 : vector<72x1xi32> to vector<72x1xi32>
    %5 = vector.broadcast %4 : vector<72x1xi32> to vector<72x72xi32>
    %c0_2 = arith.constant 0 : index
    %c0_3 = arith.constant 0 : index
    %6 = vector.load %arg6[%c0_2, %c0_3] : memref<1x72xi32, #tpu.memory_space<vmem>>, vector<1x72xi32>
    %7 = vector.shape_cast %6 : vector<1x72xi32> to vector<1x72xi32>
    %8 = vector.broadcast %7 : vector<1x72xi32> to vector<72x72xi32>
    %c0_4 = arith.constant 0 : index
    %c0_5 = arith.constant 0 : index
    %c0_6 = arith.constant 0 : index
    %9 = vector.load %arg4[%c0_4, %c0_5, %c0_6] : memref<1x1x72xf32, #tpu.memory_space<vmem>>, vector<1x1x72xf32>
    %10 = vector.shape_cast %9 : vector<1x1x72xf32> to vector<1x72xf32>
    %11 = vector.shape_cast %10 : vector<1x72xf32> to vector<1x72xf32>
    %12 = vector.broadcast %11 : vector<1x72xf32> to vector<72x72xf32>
    %13 = arith.cmpi eq, %5, %8 : vector<72x72xi32>
    %cst = arith.constant -1.000000e+09 : f32
    %14 = vector.broadcast %cst : f32 to vector<72x72xf32>
    %15 = arith.select %13, %12, %14 : vector<72x72xi1>, vector<72x72xf32>
    %c0_7 = arith.constant 0 : index
    %c0_8 = arith.constant 0 : index
    %16 = vector.load %arg29[%c0_7, %c0_8] : memref<72x32xf32, #tpu.memory_space<vmem>>, vector<72x32xf32>
    %c0_9 = arith.constant 0 : index
    %c0_10 = arith.constant 0 : index
    %c0_11 = arith.constant 0 : index
    %17 = vector.load %arg10[%c0_9, %c0_10, %c0_11] : memref<1x1x32xf32, #tpu.memory_space<vmem>>, vector<1x1x32xf32>
    %18 = vector.shape_cast %17 : vector<1x1x32xf32> to vector<1x32xf32>
    %c0_12 = arith.constant 0 : index
    %c0_13 = arith.constant 0 : index
    %c0_14 = arith.constant 0 : index
    %19 = vector.load %arg11[%c0_12, %c0_13, %c0_14] : memref<1x1x32xf32, #tpu.memory_space<vmem>>, vector<1x1x32xf32>
    %20 = vector.shape_cast %19 : vector<1x1x32xf32> to vector<1x32xf32>
    %cst_15 = arith.constant dense<0.000000e+00> : vector<72xf32>
    %21 = vector.multi_reduction <add>, %16, %cst_15 [1] : vector<72x32xf32> to vector<72xf32>
    %22 = vector.shape_cast %21 : vector<72xf32> to vector<72x1xf32>
    %cst_16 = arith.constant 3.200000e+01 : f32
    %23 = vector.broadcast %cst_16 : f32 to vector<72x1xf32>
    %24 = arith.divf %22, %23 : vector<72x1xf32>
    %25 = vector.broadcast %24 : vector<72x1xf32> to vector<72x32xf32>
    %26 = arith.subf %16, %25 : vector<72x32xf32>
    %27 = arith.mulf %26, %26 : vector<72x32xf32>
    %cst_17 = arith.constant dense<0.000000e+00> : vector<72xf32>
    %28 = vector.multi_reduction <add>, %27, %cst_17 [1] : vector<72x32xf32> to vector<72xf32>
    %29 = vector.shape_cast %28 : vector<72xf32> to vector<72x1xf32>
    %cst_18 = arith.constant 3.200000e+01 : f32
    %30 = vector.broadcast %cst_18 : f32 to vector<72x1xf32>
    %31 = arith.divf %29, %30 : vector<72x1xf32>
    %32 = vector.broadcast %24 : vector<72x1xf32> to vector<72x32xf32>
    %33 = arith.subf %16, %32 : vector<72x32xf32>
    %cst_19 = arith.constant 9.99999974E-6 : f32
    %34 = vector.broadcast %cst_19 : f32 to vector<72x1xf32>
    %35 = arith.addf %31, %34 : vector<72x1xf32>
    %36 = math.rsqrt %35 : vector<72x1xf32>
    %37 = vector.broadcast %36 : vector<72x1xf32> to vector<72x32xf32>
    %38 = arith.mulf %33, %37 : vector<72x32xf32>
    %39 = vector.broadcast %18 : vector<1x32xf32> to vector<72x32xf32>
    %40 = arith.mulf %38, %39 : vector<72x32xf32>
    %41 = vector.broadcast %20 : vector<1x32xf32> to vector<72x32xf32>
    %42 = arith.addf %40, %41 : vector<72x32xf32>
    %43 = arith.truncf %42 : vector<72x32xf32> to vector<72x32xbf16>
    %c0_20 = arith.constant 0 : index
    %c0_21 = arith.constant 0 : index
    %c0_22 = arith.constant 0 : index
    %44 = vector.load %arg12[%c0_20, %c0_21, %c0_22] : memref<1x32x96xbf16, #tpu.memory_space<vmem>>, vector<1x32x96xbf16>
    %45 = vector.shape_cast %44 : vector<1x32x96xbf16> to vector<32x96xbf16>
    %cst_23 = arith.constant dense<0.000000e+00> : vector<72x96xf32>
    %46 = tpu.matmul %43, %45, %cst_23 {dimension_numbers = #tpu.dot_dimension_numbers<[1], [0], [0], [1], [0, 0, 1, 1], [], []>} : vector<72x32xbf16>, vector<32x96xbf16>, vector<72x96xf32> -> vector<72x96xf32>
    %c0_24 = arith.constant 0 : index
    %c0_25 = arith.constant 0 : index
    %c0_26 = arith.constant 0 : index
    %47 = vector.load %arg13[%c0_24, %c0_25, %c0_26] : memref<1x1x96xf32, #tpu.memory_space<vmem>>, vector<1x1x96xf32>
    %48 = vector.shape_cast %47 : vector<1x1x96xf32> to vector<1x96xf32>
    %49 = vector.broadcast %48 : vector<1x96xf32> to vector<72x96xf32>
    %50 = arith.addf %46, %49 : vector<72x96xf32>
    %51 = vector.extract_strided_slice %50 {offsets = [0, 0], sizes = [72, 8], strides = [1, 1]} : vector<72x96xf32> to vector<72x8xf32>
    %52 = vector.extract_strided_slice %50 {offsets = [0, 32], sizes = [72, 8], strides = [1, 1]} : vector<72x96xf32> to vector<72x8xf32>
    %53 = vector.extract_strided_slice %50 {offsets = [0, 64], sizes = [72, 8], strides = [1, 1]} : vector<72x96xf32> to vector<72x8xf32>
    %54 = arith.truncf %51 : vector<72x8xf32> to vector<72x8xbf16>
    %55 = arith.truncf %52 : vector<72x8xf32> to vector<72x8xbf16>
    "tpu.trace_start"() <{level = 10 : i32, message = "qd,kd->qk"}> : () -> ()
    %cst_27 = arith.constant dense<0.000000e+00> : vector<72x72xf32>
    %56 = tpu.matmul %54, %55, %cst_27 {dimension_numbers = #tpu.dot_dimension_numbers<[1], [1], [0], [0], [0, 0, 1, 0], [], []>} : vector<72x8xbf16>, vector<72x8xbf16>, vector<72x72xf32> -> vector<72x72xf32>
    "tpu.trace_stop"() : () -> ()
    %cst_28 = arith.constant 0.353553385 : f32
    %57 = vector.broadcast %cst_28 : f32 to vector<72x72xf32>
    %58 = arith.mulf %56, %57 : vector<72x72xf32>
    %59 = arith.addf %58, %15 : vector<72x72xf32>
    %cst_29 = arith.constant dense<0xFF800000> : vector<72xf32>
    %60 = vector.multi_reduction <maximumf>, %59, %cst_29 [1] : vector<72x72xf32> to vector<72xf32>
    %61 = vector.shape_cast %60 : vector<72xf32> to vector<72x1xf32>
    %62 = vector.broadcast %61 : vector<72x1xf32> to vector<72x72xf32>
    %63 = arith.subf %59, %62 : vector<72x72xf32>
    %64 = math.exp %63 : vector<72x72xf32>
    %cst_30 = arith.constant dense<0.000000e+00> : vector<72xf32>
    %65 = vector.multi_reduction <add>, %64, %cst_30 [1] : vector<72x72xf32> to vector<72xf32>
    %66 = vector.shape_cast %65 : vector<72xf32> to vector<72x1xf32>
    %67 = tpu.reciprocal %66 : vector<72x1xf32> -> vector<72x1xf32>
    %68 = vector.broadcast %67 : vector<72x1xf32> to vector<72x72xf32>
    %69 = arith.mulf %64, %68 : vector<72x72xf32>
    %70 = arith.truncf %69 : vector<72x72xf32> to vector<72x72xbf16>
    %71 = arith.truncf %53 : vector<72x8xf32> to vector<72x8xbf16>
    %cst_31 = arith.constant dense<0.000000e+00> : vector<72x8xf32>
    %72 = tpu.matmul %70, %71, %cst_31 {dimension_numbers = #tpu.dot_dimension_numbers<[1], [0], [0], [1], [0, 0, 1, 1], [], []>} : vector<72x72xbf16>, vector<72x8xbf16>, vector<72x8xf32> -> vector<72x8xf32>
    %73 = vector.extract_strided_slice %50 {offsets = [0, 8], sizes = [72, 8], strides = [1, 1]} : vector<72x96xf32> to vector<72x8xf32>
    %74 = vector.extract_strided_slice %50 {offsets = [0, 40], sizes = [72, 8], strides = [1, 1]} : vector<72x96xf32> to vector<72x8xf32>
    %75 = vector.extract_strided_slice %50 {offsets = [0, 72], sizes = [72, 8], strides = [1, 1]} : vector<72x96xf32> to vector<72x8xf32>
    %76 = arith.truncf %73 : vector<72x8xf32> to vector<72x8xbf16>
    %77 = arith.truncf %74 : vector<72x8xf32> to vector<72x8xbf16>
    "tpu.trace_start"() <{level = 10 : i32, message = "qd,kd->qk"}> : () -> ()
    %cst_32 = arith.constant dense<0.000000e+00> : vector<72x72xf32>
    %78 = tpu.matmul %76, %77, %cst_32 {dimension_numbers = #tpu.dot_dimension_numbers<[1], [1], [0], [0], [0, 0, 1, 0], [], []>} : vector<72x8xbf16>, vector<72x8xbf16>, vector<72x72xf32> -> vector<72x72xf32>
    "tpu.trace_stop"() : () -> ()
    %cst_33 = arith.constant 0.353553385 : f32
    %79 = vector.broadcast %cst_33 : f32 to vector<72x72xf32>
    %80 = arith.mulf %78, %79 : vector<72x72xf32>
    %81 = arith.addf %80, %15 : vector<72x72xf32>
    %cst_34 = arith.constant dense<0xFF800000> : vector<72xf32>
    %82 = vector.multi_reduction <maximumf>, %81, %cst_34 [1] : vector<72x72xf32> to vector<72xf32>
    %83 = vector.shape_cast %82 : vector<72xf32> to vector<72x1xf32>
    %84 = vector.broadcast %83 : vector<72x1xf32> to vector<72x72xf32>
    %85 = arith.subf %81, %84 : vector<72x72xf32>
    %86 = math.exp %85 : vector<72x72xf32>
    %cst_35 = arith.constant dense<0.000000e+00> : vector<72xf32>
    %87 = vector.multi_reduction <add>, %86, %cst_35 [1] : vector<72x72xf32> to vector<72xf32>
    %88 = vector.shape_cast %87 : vector<72xf32> to vector<72x1xf32>
    %89 = tpu.reciprocal %88 : vector<72x1xf32> -> vector<72x1xf32>
    %90 = vector.broadcast %89 : vector<72x1xf32> to vector<72x72xf32>
    %91 = arith.mulf %86, %90 : vector<72x72xf32>
    %92 = arith.truncf %91 : vector<72x72xf32> to vector<72x72xbf16>
    %93 = arith.truncf %75 : vector<72x8xf32> to vector<72x8xbf16>
    %cst_36 = arith.constant dense<0.000000e+00> : vector<72x8xf32>
    %94 = tpu.matmul %92, %93, %cst_36 {dimension_numbers = #tpu.dot_dimension_numbers<[1], [0], [0], [1], [0, 0, 1, 1], [], []>} : vector<72x72xbf16>, vector<72x8xbf16>, vector<72x8xf32> -> vector<72x8xf32>
    %95 = vector.extract_strided_slice %50 {offsets = [0, 16], sizes = [72, 8], strides = [1, 1]} : vector<72x96xf32> to vector<72x8xf32>
    %96 = vector.extract_strided_slice %50 {offsets = [0, 48], sizes = [72, 8], strides = [1, 1]} : vector<72x96xf32> to vector<72x8xf32>
    %97 = vector.extract_strided_slice %50 {offsets = [0, 80], sizes = [72, 8], strides = [1, 1]} : vector<72x96xf32> to vector<72x8xf32>
    %98 = arith.truncf %95 : vector<72x8xf32> to vector<72x8xbf16>
    %99 = arith.truncf %96 : vector<72x8xf32> to vector<72x8xbf16>
    "tpu.trace_start"() <{level = 10 : i32, message = "qd,kd->qk"}> : () -> ()
    %cst_37 = arith.constant dense<0.000000e+00> : vector<72x72xf32>
    %100 = tpu.matmul %98, %99, %cst_37 {dimension_numbers = #tpu.dot_dimension_numbers<[1], [1], [0], [0], [0, 0, 1, 0], [], []>} : vector<72x8xbf16>, vector<72x8xbf16>, vector<72x72xf32> -> vector<72x72xf32>
    "tpu.trace_stop"() : () -> ()
    %cst_38 = arith.constant 0.353553385 : f32
    %101 = vector.broadcast %cst_38 : f32 to vector<72x72xf32>
    %102 = arith.mulf %100, %101 : vector<72x72xf32>
    %103 = arith.addf %102, %15 : vector<72x72xf32>
    %cst_39 = arith.constant dense<0xFF800000> : vector<72xf32>
    %104 = vector.multi_reduction <maximumf>, %103, %cst_39 [1] : vector<72x72xf32> to vector<72xf32>
    %105 = vector.shape_cast %104 : vector<72xf32> to vector<72x1xf32>
    %106 = vector.broadcast %105 : vector<72x1xf32> to vector<72x72xf32>
    %107 = arith.subf %103, %106 : vector<72x72xf32>
    %108 = math.exp %107 : vector<72x72xf32>
    %cst_40 = arith.constant dense<0.000000e+00> : vector<72xf32>
    %109 = vector.multi_reduction <add>, %108, %cst_40 [1] : vector<72x72xf32> to vector<72xf32>
    %110 = vector.shape_cast %109 : vector<72xf32> to vector<72x1xf32>
    %111 = tpu.reciprocal %110 : vector<72x1xf32> -> vector<72x1xf32>
    %112 = vector.broadcast %111 : vector<72x1xf32> to vector<72x72xf32>
    %113 = arith.mulf %108, %112 : vector<72x72xf32>
    %114 = arith.truncf %113 : vector<72x72xf32> to vector<72x72xbf16>
    %115 = arith.truncf %97 : vector<72x8xf32> to vector<72x8xbf16>
    %cst_41 = arith.constant dense<0.000000e+00> : vector<72x8xf32>
    %116 = tpu.matmul %114, %115, %cst_41 {dimension_numbers = #tpu.dot_dimension_numbers<[1], [0], [0], [1], [0, 0, 1, 1], [], []>} : vector<72x72xbf16>, vector<72x8xbf16>, vector<72x8xf32> -> vector<72x8xf32>
    %117 = vector.extract_strided_slice %50 {offsets = [0, 24], sizes = [72, 8], strides = [1, 1]} : vector<72x96xf32> to vector<72x8xf32>
    %118 = vector.extract_strided_slice %50 {offsets = [0, 56], sizes = [72, 8], strides = [1, 1]} : vector<72x96xf32> to vector<72x8xf32>
    %119 = vector.extract_strided_slice %50 {offsets = [0, 88], sizes = [72, 8], strides = [1, 1]} : vector<72x96xf32> to vector<72x8xf32>
    %120 = arith.truncf %117 : vector<72x8xf32> to vector<72x8xbf16>
    %121 = arith.truncf %118 : vector<72x8xf32> to vector<72x8xbf16>
    "tpu.trace_start"() <{level = 10 : i32, message = "qd,kd->qk"}> : () -> ()
    %cst_42 = arith.constant dense<0.000000e+00> : vector<72x72xf32>
    %122 = tpu.matmul %120, %121, %cst_42 {dimension_numbers = #tpu.dot_dimension_numbers<[1], [1], [0], [0], [0, 0, 1, 0], [], []>} : vector<72x8xbf16>, vector<72x8xbf16>, vector<72x72xf32> -> vector<72x72xf32>
    "tpu.trace_stop"() : () -> ()
    %cst_43 = arith.constant 0.353553385 : f32
    %123 = vector.broadcast %cst_43 : f32 to vector<72x72xf32>
    %124 = arith.mulf %122, %123 : vector<72x72xf32>
    %125 = arith.addf %124, %15 : vector<72x72xf32>
    %cst_44 = arith.constant dense<0xFF800000> : vector<72xf32>
    %126 = vector.multi_reduction <maximumf>, %125, %cst_44 [1] : vector<72x72xf32> to vector<72xf32>
    %127 = vector.shape_cast %126 : vector<72xf32> to vector<72x1xf32>
    %128 = vector.broadcast %127 : vector<72x1xf32> to vector<72x72xf32>
    %129 = arith.subf %125, %128 : vector<72x72xf32>
    %130 = math.exp %129 : vector<72x72xf32>
    %cst_45 = arith.constant dense<0.000000e+00> : vector<72xf32>
    %131 = vector.multi_reduction <add>, %130, %cst_45 [1] : vector<72x72xf32> to vector<72xf32>
    %132 = vector.shape_cast %131 : vector<72xf32> to vector<72x1xf32>
    %133 = tpu.reciprocal %132 : vector<72x1xf32> -> vector<72x1xf32>
    %134 = vector.broadcast %133 : vector<72x1xf32> to vector<72x72xf32>
    %135 = arith.mulf %130, %134 : vector<72x72xf32>
    %136 = arith.truncf %135 : vector<72x72xf32> to vector<72x72xbf16>
    %137 = arith.truncf %119 : vector<72x8xf32> to vector<72x8xbf16>
    %cst_46 = arith.constant dense<0.000000e+00> : vector<72x8xf32>
    %138 = tpu.matmul %136, %137, %cst_46 {dimension_numbers = #tpu.dot_dimension_numbers<[1], [0], [0], [1], [0, 0, 1, 1], [], []>} : vector<72x72xbf16>, vector<72x8xbf16>, vector<72x8xf32> -> vector<72x8xf32>
    %139 = tpu.concatenate %72, %94, %116, %138 in 1 : vector<72x8xf32>, vector<72x8xf32>, vector<72x8xf32>, vector<72x8xf32> -> vector<72x32xf32>
    %140 = arith.truncf %139 : vector<72x32xf32> to vector<72x32xbf16>
    %c0_47 = arith.constant 0 : index
    %c0_48 = arith.constant 0 : index
    %c0_49 = arith.constant 0 : index
    %141 = vector.load %arg14[%c0_47, %c0_48, %c0_49] : memref<1x32x32xbf16, #tpu.memory_space<vmem>>, vector<1x32x32xbf16>
    %142 = vector.shape_cast %141 : vector<1x32x32xbf16> to vector<32x32xbf16>
    %cst_50 = arith.constant dense<0.000000e+00> : vector<72x32xf32>
    %143 = tpu.matmul %140, %142, %cst_50 {dimension_numbers = #tpu.dot_dimension_numbers<[1], [0], [0], [1], [0, 0, 1, 1], [], []>} : vector<72x32xbf16>, vector<32x32xbf16>, vector<72x32xf32> -> vector<72x32xf32>
    %144 = arith.addf %16, %143 : vector<72x32xf32>
    %c0_51 = arith.constant 0 : index
    %c0_52 = arith.constant 0 : index
    %c0_53 = arith.constant 0 : index
    %145 = vector.load %arg15[%c0_51, %c0_52, %c0_53] : memref<1x1x32xf32, #tpu.memory_space<vmem>>, vector<1x1x32xf32>
    %146 = vector.shape_cast %145 : vector<1x1x32xf32> to vector<1x32xf32>
    %147 = vector.broadcast %146 : vector<1x32xf32> to vector<72x32xf32>
    %148 = arith.addf %144, %147 : vector<72x32xf32>
    %c0_54 = arith.constant 0 : index
    %c0_55 = arith.constant 0 : index
    %c0_56 = arith.constant 0 : index
    %149 = vector.load %arg16[%c0_54, %c0_55, %c0_56] : memref<1x1x32xf32, #tpu.memory_space<vmem>>, vector<1x1x32xf32>
    %150 = vector.shape_cast %149 : vector<1x1x32xf32> to vector<1x32xf32>
    %c0_57 = arith.constant 0 : index
    %c0_58 = arith.constant 0 : index
    %c0_59 = arith.constant 0 : index
    %151 = vector.load %arg17[%c0_57, %c0_58, %c0_59] : memref<1x1x32xf32, #tpu.memory_space<vmem>>, vector<1x1x32xf32>
    %152 = vector.shape_cast %151 : vector<1x1x32xf32> to vector<1x32xf32>
    %cst_60 = arith.constant dense<0.000000e+00> : vector<72xf32>
    %153 = vector.multi_reduction <add>, %148, %cst_60 [1] : vector<72x32xf32> to vector<72xf32>
    %154 = vector.shape_cast %153 : vector<72xf32> to vector<72x1xf32>
    %cst_61 = arith.constant 3.200000e+01 : f32
    %155 = vector.broadcast %cst_61 : f32 to vector<72x1xf32>
    %156 = arith.divf %154, %155 : vector<72x1xf32>
    %157 = vector.broadcast %156 : vector<72x1xf32> to vector<72x32xf32>
    %158 = arith.subf %148, %157 : vector<72x32xf32>
    %159 = arith.mulf %158, %158 : vector<72x32xf32>
    %cst_62 = arith.constant dense<0.000000e+00> : vector<72xf32>
    %160 = vector.multi_reduction <add>, %159, %cst_62 [1] : vector<72x32xf32> to vector<72xf32>
    %161 = vector.shape_cast %160 : vector<72xf32> to vector<72x1xf32>
    %cst_63 = arith.constant 3.200000e+01 : f32
    %162 = vector.broadcast %cst_63 : f32 to vector<72x1xf32>
    %163 = arith.divf %161, %162 : vector<72x1xf32>
    %164 = vector.broadcast %156 : vector<72x1xf32> to vector<72x32xf32>
    %165 = arith.subf %148, %164 : vector<72x32xf32>
    %cst_64 = arith.constant 9.99999974E-6 : f32
    %166 = vector.broadcast %cst_64 : f32 to vector<72x1xf32>
    %167 = arith.addf %163, %166 : vector<72x1xf32>
    %168 = math.rsqrt %167 : vector<72x1xf32>
    %169 = vector.broadcast %168 : vector<72x1xf32> to vector<72x32xf32>
    %170 = arith.mulf %165, %169 : vector<72x32xf32>
    %171 = vector.broadcast %150 : vector<1x32xf32> to vector<72x32xf32>
    %172 = arith.mulf %170, %171 : vector<72x32xf32>
    %173 = vector.broadcast %152 : vector<1x32xf32> to vector<72x32xf32>
    %174 = arith.addf %172, %173 : vector<72x32xf32>
    %175 = arith.truncf %174 : vector<72x32xf32> to vector<72x32xbf16>
    %c0_65 = arith.constant 0 : index
    %c0_66 = arith.constant 0 : index
    %c0_67 = arith.constant 0 : index
    %176 = vector.load %arg18[%c0_65, %c0_66, %c0_67] : memref<1x32x64xbf16, #tpu.memory_space<vmem>>, vector<1x32x64xbf16>
    %177 = vector.shape_cast %176 : vector<1x32x64xbf16> to vector<32x64xbf16>
    %cst_68 = arith.constant dense<0.000000e+00> : vector<72x64xf32>
    %178 = tpu.matmul %175, %177, %cst_68 {dimension_numbers = #tpu.dot_dimension_numbers<[1], [0], [0], [1], [0, 0, 1, 1], [], []>} : vector<72x32xbf16>, vector<32x64xbf16>, vector<72x64xf32> -> vector<72x64xf32>
    %c0_69 = arith.constant 0 : index
    %c0_70 = arith.constant 0 : index
    %c0_71 = arith.constant 0 : index
    %179 = vector.load %arg19[%c0_69, %c0_70, %c0_71] : memref<1x1x64xf32, #tpu.memory_space<vmem>>, vector<1x1x64xf32>
    %180 = vector.shape_cast %179 : vector<1x1x64xf32> to vector<1x64xf32>
    %181 = vector.broadcast %180 : vector<1x64xf32> to vector<72x64xf32>
    %182 = arith.addf %178, %181 : vector<72x64xf32>
    %183 = arith.mulf %182, %182 : vector<72x64xf32>
    %184 = arith.mulf %182, %183 : vector<72x64xf32>
    %cst_72 = arith.constant 4.471500e-02 : f32
    %185 = vector.broadcast %cst_72 : f32 to vector<72x64xf32>
    %186 = arith.mulf %185, %184 : vector<72x64xf32>
    %187 = arith.addf %182, %186 : vector<72x64xf32>
    %cst_73 = arith.constant 0.797884583 : f32
    %188 = vector.broadcast %cst_73 : f32 to vector<72x64xf32>
    %189 = arith.mulf %188, %187 : vector<72x64xf32>
    %190 = math.tanh %189 : vector<72x64xf32>
    %cst_74 = arith.constant 1.000000e+00 : f32
    %191 = vector.broadcast %cst_74 : f32 to vector<72x64xf32>
    %192 = arith.addf %191, %190 : vector<72x64xf32>
    %cst_75 = arith.constant 5.000000e-01 : f32
    %193 = vector.broadcast %cst_75 : f32 to vector<72x64xf32>
    %194 = arith.mulf %193, %192 : vector<72x64xf32>
    %195 = arith.mulf %182, %194 : vector<72x64xf32>
    %196 = arith.truncf %195 : vector<72x64xf32> to vector<72x64xbf16>
    %c0_76 = arith.constant 0 : index
    %c0_77 = arith.constant 0 : index
    %c0_78 = arith.constant 0 : index
    %197 = vector.load %arg20[%c0_76, %c0_77, %c0_78] : memref<1x64x32xbf16, #tpu.memory_space<vmem>>, vector<1x64x32xbf16>
    %198 = vector.shape_cast %197 : vector<1x64x32xbf16> to vector<64x32xbf16>
    %cst_79 = arith.constant dense<0.000000e+00> : vector<72x32xf32>
    %199 = tpu.matmul %196, %198, %cst_79 {dimension_numbers = #tpu.dot_dimension_numbers<[1], [0], [0], [1], [0, 0, 1, 1], [], []>} : vector<72x64xbf16>, vector<64x32xbf16>, vector<72x32xf32> -> vector<72x32xf32>
    %200 = arith.addf %148, %199 : vector<72x32xf32>
    %c0_80 = arith.constant 0 : index
    %c0_81 = arith.constant 0 : index
    %c0_82 = arith.constant 0 : index
    %201 = vector.load %arg21[%c0_80, %c0_81, %c0_82] : memref<1x1x32xf32, #tpu.memory_space<vmem>>, vector<1x1x32xf32>
    %202 = vector.shape_cast %201 : vector<1x1x32xf32> to vector<1x32xf32>
    %203 = vector.broadcast %202 : vector<1x32xf32> to vector<72x32xf32>
    %204 = arith.addf %200, %203 : vector<72x32xf32>
    %c0_83 = arith.constant 0 : index
    %c0_84 = arith.constant 0 : index
    %205 = vector.load %arg29[%c0_83, %c0_84] : memref<72x32xf32, #tpu.memory_space<vmem>>, vector<72x32xf32>
    tpu.vector_store %arg29[%c0_83, %c0_84], %204 {strides = array<i32>} : memref<72x32xf32, #tpu.memory_space<vmem>>, vector<72x32xf32>,
    %c1_i32 = arith.constant 1 : i32
    %206 = arith.cmpi eq, %arg1, %c1_i32 : i32
    %207 = arith.extui %206 : i1 to i32
    %c0_i32_85 = arith.constant 0 : i32
    %208 = arith.cmpi ne, %207, %c0_i32_85 : i32
    scf.if %208 {
      %209 = vector.extract_strided_slice %204 {offsets = [64, 0], sizes = [8, 32], strides = [1, 1]} : vector<72x32xf32> to vector<8x32xf32>
      %c0_86 = arith.constant 0 : index
      %c0_87 = arith.constant 0 : index
      %210 = vector.load %arg22[%c0_86, %c0_87] : memref<1x32xf32, #tpu.memory_space<vmem>>, vector<1x32xf32>
      %c0_88 = arith.constant 0 : index
      %c0_89 = arith.constant 0 : index
      %211 = vector.load %arg23[%c0_88, %c0_89] : memref<1x32xf32, #tpu.memory_space<vmem>>, vector<1x32xf32>
      %cst_90 = arith.constant dense<0.000000e+00> : vector<8xf32>
      %212 = vector.multi_reduction <add>, %209, %cst_90 [1] : vector<8x32xf32> to vector<8xf32>
      %213 = vector.shape_cast %212 : vector<8xf32> to vector<8x1xf32>
      %cst_91 = arith.constant 3.200000e+01 : f32
      %214 = vector.broadcast %cst_91 : f32 to vector<8x1xf32>
      %215 = arith.divf %213, %214 : vector<8x1xf32>
      %216 = vector.broadcast %215 : vector<8x1xf32> to vector<8x32xf32>
      %217 = arith.subf %209, %216 : vector<8x32xf32>
      %218 = arith.mulf %217, %217 : vector<8x32xf32>
      %cst_92 = arith.constant dense<0.000000e+00> : vector<8xf32>
      %219 = vector.multi_reduction <add>, %218, %cst_92 [1] : vector<8x32xf32> to vector<8xf32>
      %220 = vector.shape_cast %219 : vector<8xf32> to vector<8x1xf32>
      %cst_93 = arith.constant 3.200000e+01 : f32
      %221 = vector.broadcast %cst_93 : f32 to vector<8x1xf32>
      %222 = arith.divf %220, %221 : vector<8x1xf32>
      %223 = vector.broadcast %215 : vector<8x1xf32> to vector<8x32xf32>
      %224 = arith.subf %209, %223 : vector<8x32xf32>
      %cst_94 = arith.constant 9.99999974E-6 : f32
      %225 = vector.broadcast %cst_94 : f32 to vector<8x1xf32>
      %226 = arith.addf %222, %225 : vector<8x1xf32>
      %227 = math.rsqrt %226 : vector<8x1xf32>
      %228 = vector.broadcast %227 : vector<8x1xf32> to vector<8x32xf32>
      %229 = arith.mulf %224, %228 : vector<8x32xf32>
      %230 = vector.broadcast %210 : vector<1x32xf32> to vector<8x32xf32>
      %231 = arith.mulf %229, %230 : vector<8x32xf32>
      %232 = vector.broadcast %211 : vector<1x32xf32> to vector<8x32xf32>
      %233 = arith.addf %231, %232 : vector<8x32xf32>
      %234 = arith.truncf %233 : vector<8x32xf32> to vector<8x32xbf16>
      %c0_95 = arith.constant 0 : index
      %c0_96 = arith.constant 0 : index
      %235 = vector.load %arg24[%c0_95, %c0_96] : memref<32x64xbf16, #tpu.memory_space<vmem>>, vector<32x64xbf16>
      %cst_97 = arith.constant dense<0.000000e+00> : vector<8x64xf32>
      %236 = tpu.matmul %234, %235, %cst_97 {dimension_numbers = #tpu.dot_dimension_numbers<[1], [0], [0], [1], [0, 0, 1, 1], [], []>} : vector<8x32xbf16>, vector<32x64xbf16>, vector<8x64xf32> -> vector<8x64xf32>
      %c0_98 = arith.constant 0 : index
      %c0_99 = arith.constant 0 : index
      %237 = vector.load %arg25[%c0_98, %c0_99] : memref<1x64xf32, #tpu.memory_space<vmem>>, vector<1x64xf32>
      %238 = vector.broadcast %237 : vector<1x64xf32> to vector<8x64xf32>
      %239 = arith.addf %236, %238 : vector<8x64xf32>
      %240 = arith.mulf %239, %239 : vector<8x64xf32>
      %241 = arith.mulf %239, %240 : vector<8x64xf32>
      %cst_100 = arith.constant 4.471500e-02 : f32
      %242 = vector.broadcast %cst_100 : f32 to vector<8x64xf32>
      %243 = arith.mulf %242, %241 : vector<8x64xf32>
      %244 = arith.addf %239, %243 : vector<8x64xf32>
      %cst_101 = arith.constant 0.797884583 : f32
      %245 = vector.broadcast %cst_101 : f32 to vector<8x64xf32>
      %246 = arith.mulf %245, %244 : vector<8x64xf32>
      %247 = math.tanh %246 : vector<8x64xf32>
      %cst_102 = arith.constant 1.000000e+00 : f32
      %248 = vector.broadcast %cst_102 : f32 to vector<8x64xf32>
      %249 = arith.addf %248, %247 : vector<8x64xf32>
      %cst_103 = arith.constant 5.000000e-01 : f32
      %250 = vector.broadcast %cst_103 : f32 to vector<8x64xf32>
      %251 = arith.mulf %250, %249 : vector<8x64xf32>
      %252 = arith.mulf %239, %251 : vector<8x64xf32>
      %253 = arith.truncf %252 : vector<8x64xf32> to vector<8x64xbf16>
      %c0_104 = arith.constant 0 : index
      %c0_105 = arith.constant 0 : index
      %254 = vector.load %arg26[%c0_104, %c0_105] : memref<64x128xbf16, #tpu.memory_space<vmem>>, vector<64x128xbf16>
      %cst_106 = arith.constant dense<0.000000e+00> : vector<8x128xf32>
      %255 = tpu.matmul %253, %254, %cst_106 {dimension_numbers = #tpu.dot_dimension_numbers<[1], [0], [0], [1], [0, 0, 1, 1], [], []>} : vector<8x64xbf16>, vector<64x128xbf16>, vector<8x128xf32> -> vector<8x128xf32>
      %c0_107 = arith.constant 0 : index
      %c0_108 = arith.constant 0 : index
      %256 = vector.load %arg27[%c0_107, %c0_108] : memref<1x128xf32, #tpu.memory_space<vmem>>, vector<1x128xf32>
      %257 = vector.broadcast %256 : vector<1x128xf32> to vector<8x128xf32>
      %258 = arith.addf %255, %257 : vector<8x128xf32>
      %cst_109 = arith.constant dense<0xFF800000> : vector<8xf32>
      %259 = vector.multi_reduction <maximumf>, %258, %cst_109 [1] : vector<8x128xf32> to vector<8xf32>
      %260 = vector.shape_cast %259 : vector<8xf32> to vector<8x1xf32>
      %261 = vector.broadcast %260 : vector<8x1xf32> to vector<8x128xf32>
      %262 = arith.subf %258, %261 : vector<8x128xf32>
      %263 = math.exp %262 : vector<8x128xf32>
      %cst_110 = arith.constant dense<0.000000e+00> : vector<8xf32>
      %264 = vector.multi_reduction <add>, %263, %cst_110 [1] : vector<8x128xf32> to vector<8xf32>
      %265 = vector.shape_cast %264 : vector<8xf32> to vector<8x1xf32>
      %266 = math.log %265 : vector<8x1xf32>
      %267 = arith.addf %266, %260 : vector<8x1xf32>
      %268 = vector.broadcast %267 : vector<8x1xf32> to vector<8x128xf32>
      %269 = arith.subf %258, %268 : vector<8x128xf32>
      %c0_111 = arith.constant 0 : index
      %c0_112 = arith.constant 0 : index
      %c0_113 = arith.constant 0 : index
      %270 = vector.load %arg28[%c0_111, %c0_112, %c0_113] : memref<1x8x128xf32, #tpu.memory_space<vmem>>, vector<1x8x128xf32>
      %271 = vector.shape_cast %270 : vector<1x8x128xf32> to vector<8x128xf32>
      %272 = vector.shape_cast %269 : vector<8x128xf32> to vector<1x8x128xf32>
      tpu.vector_store %arg28[%c0_111, %c0_112, %c0_113], %272 {strides = array<i32>} : memref<1x8x128xf32, #tpu.memory_space<vmem>>, vector<1x8x128xf32>,
    } else {
    }
    return
  }
  func.func @transform_0(%arg0: i32, %arg1: i32) -> (i32, i32, i32) {
    %c0_i32 = arith.constant 0 : i32
    %c0_i32_0 = arith.constant 0 : i32
    %c0_i32_1 = arith.constant 0 : i32
    return %arg0, %c0_i32, %c0_i32_0 : i32, i32, i32
  }
  func.func @transform_1(%arg0: i32, %arg1: i32) -> (i32, i32, i32) {
    %c0_i32 = arith.constant 0 : i32
    %c0_i32_0 = arith.constant 0 : i32
    %c0_i32_1 = arith.constant 0 : i32
    return %arg0, %c0_i32, %c0_i32_0 : i32, i32, i32
  }
  func.func @transform_2(%arg0: i32, %arg1: i32) -> (i32, i32, i32) {
    %c0_i32 = arith.constant 0 : i32
    %c0_i32_0 = arith.constant 0 : i32
    %c0_i32_1 = arith.constant 0 : i32
    return %arg0, %c0_i32, %c0_i32_0 : i32, i32, i32
  }
  func.func @transform_3(%arg0: i32, %arg1: i32) -> (i32, i32) {
    %c0_i32 = arith.constant 0 : i32
    %c0_i32_0 = arith.constant 0 : i32
    %c0_i32_1 = arith.constant 0 : i32
    return %c0_i32, %c0_i32_0 : i32, i32
  }
  func.func @transform_4(%arg0: i32, %arg1: i32) -> (i32, i32) {
    %c0_i32 = arith.constant 0 : i32
    %c0_i32_0 = arith.constant 0 : i32
    %c0_i32_1 = arith.constant 0 : i32
    return %c0_i32, %c0_i32_0 : i32, i32
  }
  func.func @transform_5(%arg0: i32, %arg1: i32) -> (i32, i32) {
    %c0_i32 = arith.constant 0 : i32
    %c0_i32_0 = arith.constant 0 : i32
    %c0_i32_1 = arith.constant 0 : i32
    return %c0_i32, %c0_i32_0 : i32, i32
  }
  func.func @transform_6(%arg0: i32, %arg1: i32) -> (i32, i32) {
    %c0_i32 = arith.constant 0 : i32
    %c0_i32_0 = arith.constant 0 : i32
    %c0_i32_1 = arith.constant 0 : i32
    return %c0_i32, %c0_i32_0 : i32, i32
  }
  func.func @transform_7(%arg0: i32, %arg1: i32) -> (i32, i32) {
    %c0_i32 = arith.constant 0 : i32
    %c0_i32_0 = arith.constant 0 : i32
    %c0_i32_1 = arith.constant 0 : i32
    return %c0_i32, %c0_i32_0 : i32, i32
  }
  func.func @transform_8(%arg0: i32, %arg1: i32) -> (i32, i32, i32) {
    %c0_i32 = arith.constant 0 : i32
    %c0_i32_0 = arith.constant 0 : i32
    %c0_i32_1 = arith.constant 0 : i32
    return %arg1, %c0_i32, %c0_i32_0 : i32, i32, i32
  }
  func.func @transform_9(%arg0: i32, %arg1: i32) -> (i32, i32, i32) {
    %c0_i32 = arith.constant 0 : i32
    %c0_i32_0 = arith.constant 0 : i32
    %c0_i32_1 = arith.constant 0 : i32
    return %arg1, %c0_i32, %c0_i32_0 : i32, i32, i32
  }
  func.func @transform_10(%arg0: i32, %arg1: i32) -> (i32, i32, i32) {
    %c0_i32 = arith.constant 0 : i32
    %c0_i32_0 = arith.constant 0 : i32
    %c0_i32_1 = arith.constant 0 : i32
    return %arg1, %c0_i32, %c0_i32_0 : i32, i32, i32
  }
  func.func @transform_11(%arg0: i32, %arg1: i32) -> (i32, i32, i32) {
    %c0_i32 = arith.constant 0 : i32
    %c0_i32_0 = arith.constant 0 : i32
    %c0_i32_1 = arith.constant 0 : i32
    return %arg1, %c0_i32, %c0_i32_0 : i32, i32, i32
  }
  func.func @transform_12(%arg0: i32, %arg1: i32) -> (i32, i32, i32) {
    %c0_i32 = arith.constant 0 : i32
    %c0_i32_0 = arith.constant 0 : i32
    %c0_i32_1 = arith.constant 0 : i32
    return %arg1, %c0_i32, %c0_i32_0 : i32, i32, i32
  }
  func.func @transform_13(%arg0: i32, %arg1: i32) -> (i32, i32, i32) {
    %c0_i32 = arith.constant 0 : i32
    %c0_i32_0 = arith.constant 0 : i32
    %c0_i32_1 = arith.constant 0 : i32
    return %arg1, %c0_i32, %c0_i32_0 : i32, i32, i32
  }
  func.func @transform_14(%arg0: i32, %arg1: i32) -> (i32, i32, i32) {
    %c0_i32 = arith.constant 0 : i32
    %c0_i32_0 = arith.constant 0 : i32
    %c0_i32_1 = arith.constant 0 : i32
    return %arg1, %c0_i32, %c0_i32_0 : i32, i32, i32
  }
  func.func @transform_15(%arg0: i32, %arg1: i32) -> (i32, i32, i32) {
    %c0_i32 = arith.constant 0 : i32
    %c0_i32_0 = arith.constant 0 : i32
    %c0_i32_1 = arith.constant 0 : i32
    return %arg1, %c0_i32, %c0_i32_0 : i32, i32, i32
  }
  func.func @transform_16(%arg0: i32, %arg1: i32) -> (i32, i32, i32) {
    %c0_i32 = arith.constant 0 : i32
    %c0_i32_0 = arith.constant 0 : i32
    %c0_i32_1 = arith.constant 0 : i32
    return %arg1, %c0_i32, %c0_i32_0 : i32, i32, i32
  }
  func.func @transform_17(%arg0: i32, %arg1: i32) -> (i32, i32, i32) {
    %c0_i32 = arith.constant 0 : i32
    %c0_i32_0 = arith.constant 0 : i32
    %c0_i32_1 = arith.constant 0 : i32
    return %arg1, %c0_i32, %c0_i32_0 : i32, i32, i32
  }
  func.func @transform_18(%arg0: i32, %arg1: i32) -> (i32, i32, i32) {
    %c0_i32 = arith.constant 0 : i32
    %c0_i32_0 = arith.constant 0 : i32
    %c0_i32_1 = arith.constant 0 : i32
    return %arg1, %c0_i32, %c0_i32_0 : i32, i32, i32
  }
  func.func @transform_19(%arg0: i32, %arg1: i32) -> (i32, i32, i32) {
    %c0_i32 = arith.constant 0 : i32
    %c0_i32_0 = arith.constant 0 : i32
    %c0_i32_1 = arith.constant 0 : i32
    return %arg1, %c0_i32, %c0_i32_0 : i32, i32, i32
  }
  func.func @transform_20(%arg0: i32, %arg1: i32) -> (i32, i32) {
    %c0_i32 = arith.constant 0 : i32
    %c0_i32_0 = arith.constant 0 : i32
    %c0_i32_1 = arith.constant 0 : i32
    return %c0_i32, %c0_i32_0 : i32, i32
  }
  func.func @transform_21(%arg0: i32, %arg1: i32) -> (i32, i32) {
    %c0_i32 = arith.constant 0 : i32
    %c0_i32_0 = arith.constant 0 : i32
    %c0_i32_1 = arith.constant 0 : i32
    return %c0_i32, %c0_i32_0 : i32, i32
  }
  func.func @transform_22(%arg0: i32, %arg1: i32) -> (i32, i32) {
    %c0_i32 = arith.constant 0 : i32
    %c0_i32_0 = arith.constant 0 : i32
    %c0_i32_1 = arith.constant 0 : i32
    return %c0_i32, %c0_i32_0 : i32, i32
  }
  func.func @transform_23(%arg0: i32, %arg1: i32) -> (i32, i32) {
    %c0_i32 = arith.constant 0 : i32
    %c0_i32_0 = arith.constant 0 : i32
    %c0_i32_1 = arith.constant 0 : i32
    return %c0_i32, %c0_i32_0 : i32, i32
  }
  func.func @transform_24(%arg0: i32, %arg1: i32) -> (i32, i32) {
    %c0_i32 = arith.constant 0 : i32
    %c0_i32_0 = arith.constant 0 : i32
    %c0_i32_1 = arith.constant 0 : i32
    return %c0_i32, %c0_i32_0 : i32, i32
  }
  func.func @transform_25(%arg0: i32, %arg1: i32) -> (i32, i32) {
    %c0_i32 = arith.constant 0 : i32
    %c0_i32_0 = arith.constant 0 : i32
    %c0_i32_1 = arith.constant 0 : i32
    return %c0_i32, %c0_i32_0 : i32, i32
  }
  func.func @transform_26(%arg0: i32, %arg1: i32) -> (i32, i32, i32) {
    %c0_i32 = arith.constant 0 : i32
    %c0_i32_0 = arith.constant 0 : i32
    %c0_i32_1 = arith.constant 0 : i32
    return %arg0, %c0_i32, %c0_i32_0 : i32, i32, i32
  }
}

</mosaic_0001>

<bundles_post_ra>
// kernel: tpu_custom_call.1
= control target key start
LH: loop header
LB: loop body
LE: loop exit
PB: predicated region body
PF: predicated region fallthrough
CT: control target
= control target key end

     0   :  { %s8234_s0 = inlined_call_operand.vmem [shape: f32[8,8,48], index: 0, kind: input, shape index: {}]   ;;  %s8235_s1 = inlined_call_operand.vmem [shape: f32[8,8,32], index: 1, kind: input, shape index: {}]   ;;  %s8236_s2 = inlined_call_operand.hbm [shape: f32[1,1,72], index: 2, kind: input, shape index: {}]   ;;  %s8237_s3 = inlined_call_operand.vmem [shape: s32[72,1], index: 3, kind: input, shape index: {}]   ;;  %s8238_s4 = inlined_call_operand.hbm [shape: s32[1,72], index: 4, kind: input, shape index: {}]   ;;  %s8239_s5 = inlined_call_operand.vmem [shape: bf16[48,32], index: 5, kind: input, shape index: {}]   ;;  %s8240_s6 = inlined_call_operand.hbm [shape: f32[1,32], index: 6, kind: input, shape index: {}]   ;;  %s8241_s7 = inlined_call_operand.hbm [shape: f32[1,32], index: 7, kind: input, shape index: {}]   ;;  %s8242_s8 = inlined_call_operand.hbm [shape: f32[2,1,32], index: 8, kind: input, shape index: {}]   ;;  %s8243_s9 = inlined_call_operand.hbm [shape: f32[2,1,32], index: 9, kind: input, shape index: {}]   ;;  %s8244_s10 = inlined_call_operand.vmem [shape: bf16[2,32,96], index: 10, kind: input, shape index: {}]   ;;  %s8245_s11 = inlined_call_operand.hbm [shape: f32[2,1,96], index: 11, kind: input, shape index: {}]   ;;  %s8246_s12 = inlined_call_operand.vmem [shape: bf16[2,32,32], index: 12, kind: input, shape index: {}]   ;;  %s8247_s13 = inlined_call_operand.hbm [shape: f32[2,1,32], index: 13, kind: input, shape index: {}]   ;;  %s8248_s14 = inlined_call_operand.hbm [shape: f32[2,1,32], index: 14, kind: input, shape index: {}]   ;;  %s8249_s15 = inlined_call_operand.hbm [shape: f32[2,1,32], index: 15, kind: input, shape index: {}]   ;;  %s8250_s16 = inlined_call_operand.vmem [shape: bf16[2,32,64], index: 16, kind: input, shape index: {}]   ;;  %s8251_s17 = inlined_call_operand.hbm [shape: f32[2,1,64], index: 17, kind: input, shape index: {}]   ;;  %s8252_s18 = inlined_call_operand.vmem [shape: bf16[2,64,32], index: 18, kind: input, shape index: {}]   ;;  %s8253_s19 = inlined_call_operand.hbm [shape: f32[2,1,32], index: 19, kind: input, shape index: {}]   ;;  %s8254_s20 = inlined_call_operand.hbm [shape: f32[1,32], index: 20, kind: input, shape index: {}]   ;;  %s8255_s21 = inlined_call_operand.hbm [shape: f32[1,32], index: 21, kind: input, shape index: {}]   ;;  %s8256_s22 = inlined_call_operand.hbm [shape: bf16[32,64], index: 22, kind: input, shape index: {}]   ;;  %s8257_s23 = inlined_call_operand.vmem [shape: f32[1,64], index: 23, kind: input, shape index: {}]   ;;  %s8258_s24 = inlined_call_operand.vmem [shape: bf16[64,128], index: 24, kind: input, shape index: {}]   ;;  %s8259_s25 = inlined_call_operand.vmem [shape: f32[1,128], index: 25, kind: input, shape index: {}]   ;;  %s8260_s26 = inlined_call_operand.hbm [shape: f32[1,8,128], index: 26, kind: output, shape index: {}]  }
   0x1   :  { %8307 = sst [smem:[#allocation44_spill]] %s8234_s0 }
   0x2   :  { %8308 = sst [smem:[#allocation45_spill]] %s8235_s1 }
   0x3   :  { %8309 = sst [smem:[#allocation46_spill]] %s8236_s2 }
   0x4   :  { %8310 = sst [smem:[#allocation47_spill]] %s8237_s3 }
   0x5   :  { %8311 = sst [smem:[#allocation48_spill]] %s8238_s4 }
   0x6   :  { %8312 = sst [smem:[#allocation49_spill]] %s8239_s5 }
   0x7   :  { %8313 = sst [smem:[#allocation50_spill]] %s8240_s6 }
   0x8   :  { %8314 = sst [smem:[#allocation51_spill]] %s8241_s7 }
   0x9   :  { %8315 = sst [smem:[#allocation52_spill]] %s8242_s8 }
   0xa   :  { %8316 = sst [smem:[#allocation53_spill]] %s8243_s9 }
   0xb   :  { %8317 = sst [smem:[#allocation54_spill]] %s8244_s10 }
   0xc   :  { %8318 = sst [smem:[#allocation55_spill]] %s8245_s11 }
   0xd   :  { %8319 = sst [smem:[#allocation56_spill]] %s8246_s12 }
   0xe   :  { %8320 = sst [smem:[#allocation57_spill]] %s8247_s13 }
   0xf   :  { %8321 = sst [smem:[#allocation58_spill]] %s8250_s16 }
  0x10   :  { %8322 = sst [smem:[#allocation59_spill]] %s8252_s18 }
  0x11   :  { %8323 = sst [smem:[#allocation60_spill]] %s8257_s23 }
  0x12   :  { %8324 = sst [smem:[#allocation61_spill]] %s8258_s24 }
  0x13   :  { %8325 = sst [smem:[#allocation62_spill]] %s8259_s25 }
  0x14   :  { %8326 = sst [smem:[#allocation63_spill]] %s8260_s26 }
  0x15   :  { %31 = vsyncpa [#allocation4], 0 }
  0x16   :  { %32 = vsyncpa [#allocation7], 0 }
  0x17   :  { %33 = vsyncpa [#allocation10], 0 }
  0x18   :  { %34 = vsyncpa [#allocation22], 0 }
  0x19   :  { %35 = vsyncpa [#allocation5], 0  ;;  %s6304_s27 = smov 0   ;;  %s6306_s3 = smov 0  }
  0x1a   :  { %s6308_s7 = smov 0   ;;  %s6310_s28 = smov 0  }
  0x1b   :  { %s6312_s8 = smov 0   ;;  %s6314_s4 = smov 0  }
  0x1c LB: > { %8327 = sst [smem:[#allocation32_spill]] %s6114_s3  ;;  %s6335_s29 = sadd.s32 4294967295, %s6130_s4   ;;  %s6130_s4 = sphi %s6314_s4, %s41_s4   ;;  %s6126_s8 = sphi %s6312_s8, %s8417_s8   ;;  %s6122_s28 = sphi %s6310_s28, %s8416_s28   ;;  %s6118_s7 = sphi %s6308_s7, %s8415_s7   ;;  %s6114_s3 = sphi %s6306_s3, %s8414_s3   ;;  %s6110_s27 = sphi %s6304_s27, %s8413_s27  }
  0x1d   : > { %8328 = sst [smem:[#allocation33_spill]] %s6118_s7  ;;  %p4450_p0 = scmp.ge.s32.totalorder %s6130_s4, 1 }
  0x1e   : > { %8329 = sst [smem:[#allocation34_spill]] %s6122_s28  ;;  %p8273_p1 = scmp.eq.s32.totalorder %s6335_s29, 0 }
  0x1f   : > { %8330 = sst [smem:[#allocation35_spill]] %s6126_s8  ;;  %p705_p2 = scmp.lt.s32.totalorder %s6130_s4, 3 }
  0x20   : > { %8331 = sst [smem:[#allocation36_spill]] %s6130_s4  ;;  %s6132_s9 = smov [#allocation3]  }
  0x21   : > { %p6340_p3 = pnand %p4450_p0, %p705_p2  ;;  %s738_s30 = sshll.u32 %s6132_s9, 4  ;;  %s739_s30 = int_to_ptr.vmem [resolvable:$true] %s738_s30 }
  0x22   : > { %s8334_s6 = sld [smem:[#allocation46_spill]] }
  0x23   : > { %s8332_s0 = scalar_select %p6340_p3, 1, 0 }
  0x24   : > { %p5153_p4 = pneg %p6340_p3 }
  0x26   : > { %p6348_p5 = pnand %p5153_p4, %p8273_p1 }
  0x28   : > { %s8333_s2 = scalar_select %p6348_p5, 1, 0 }
  0x29   : > { %s5590_s1 = scalar_lea.hbm %s8334_s6, 16  ;;  %p6360_p7 = pneg %p6348_p5 }
  0x2a   : > { %p5591_p6 = scmp.ne.s32.totalorder %s8334_s6, %s5590_s1  ;;  %p5597_p10 = scmp.lt.u32.totalorder %s5590_s1, %s8334_s6 }
  0x2b   : > { %s8335_s9 = scalar_select %p6360_p7, 1, 0 }
  0x2c   : > { %p5593_p8 = pnand %p6360_p7, %p5591_p6 }
  0x2e   : > { %p5594_p9 = pneg %p5593_p8 }
  0x30   : > { %p5599_p11 = pnand %p5597_p10, %p5594_p9 }
  0x32   : > { %5602 = shalt.err (!%p5599_p11)
}
  0x33   : > { %s5603_s5 = scalar_lea.vmem %s739_s30, 16  ;;  %s5610_s25 = scalar_lea.vmem %s739_s30, 32 }
  0x34   : > { %p5604_p12 = scmp.ne.s32.totalorder %s739_s30, %s5603_s5  ;;  %p5611_p2 = scmp.lt.s32.totalorder %s739_s30, %s739_s30 }
  0x35   : > { %p5612_p4 = scmp.lt.s32.totalorder %s5610_s25, %s5603_s5 }
  0x36   : > { %p5606_p13 = pnand %p5604_p12, %p6360_p7 }
  0x37   : > { %p5613_p1 = por %p5612_p4, %p5611_p2 }
  0x38   : > { %p5607_p0 = pneg %p5606_p13 }
  0x3a   : > { %p5614_p3 = pnand %p5613_p1, %p5607_p0 }
  0x3c   : > { %5617 = shalt.err (!%p5614_p3)
}
  0x3d   : > { %5156 = dma.hbm_to_vmem [thread:$0]  (!%p6348_p5), %s8334_s6, 16, %s739_s30, [#allocation4]  }
  0x3e   : > { %s50_s23 = sadd.s32 1, %s6126_s8  ;;  %s243_s24 = sadd.s32 1, %s6118_s7 }
  0x3f   : > { %p51_p1 = scmp.ge.s32.totalorder %s50_s23, 2  ;;  %p250_p3 = scmp.ne.s32.totalorder %s6118_s7, %s6114_s3 }
  0x40   : > { %p251_p6 = scmp.eq.s32.totalorder %s6130_s4, 0  ;;  %p256_p9 = scmp.ne.s32.totalorder %s6114_s3, %s6110_s27 }
  0x41   : > { %s8419_s23 = smov (%p51_p1, %s50_s23), 0  ;;  %p5207_p10 = scmp.lt.s32.totalorder %s6130_s4, 2 }
  0x42   : > { %8336 = sst [smem:[#allocation37_spill]] %s8419_s23  ;;  %p6383_p8 = por %p251_p6, %p250_p3 }
  0x43   : > { %s240_s5 = ssub.s32 %s6126_s8, %s8419_s23  ;;  %p8338_p12 = scmp.eq.s32.totalorder %s6335_s29, 0 }
  0x44   : > { %p241_p11 = scmp.eq.s32.totalorder %s240_s5, 0  ;;  %s832_s25 = sand.u32 1, %s6130_s4  }
  0x45   : > { %p6394_p13 = por %p8338_p12, %p256_p9  ;;  %s6400_s26 = sand.u32 1, %s6118_s7  }
  0x46   : > { %s6403_s10 = scalar_select %p241_p11, %s6118_s7, %s243_s24  }
  0x47   : > { %s8339_s30 = scalar_select %p6394_p13, 1, 0 }
  0x48   : > { %8341 = sst [smem:[#allocation39_spill]] %s6403_s10  ;;  %s6406_s6 = sshll.u32 %s6126_s8, 4 }
  0x49   : > { %8340 = sst [smem:[#allocation38_spill]] %s8339_s30  ;;  %s835_s27 = scalar_lea.vmem [#allocation11], %s6400_s26 }
  0x4a   : > { %s842_s23 = sshll.u32 %s835_s27, 4  ;;  %s8342_s16 = sld [smem:[#allocation52_spill]]  ;;  %s6415_s23 = int_to_ptr.vmem [resolvable:$true] %s842_s23 }
  0x4b   : > { %p6419_p0 = pnand %p5207_p10, %p6383_p8  ;;  %s8344_s7 = sld [smem:[#allocation53_spill]] }
  0x4c   : > { %s852_s18 = scalar_lea.vmem [#allocation12], %s6400_s26  ;;  %s6432_s4 = scalar_lea.sflag [#allocation4], %s832_s25 }
  0x4d   : > { %s8343_s24 = scalar_select %p6419_p0, 1, 0 }
  0x4e   : > { %s859_s5 = sshll.u32 %s852_s18, 4  ;;  %p6438_p4 = pneg %p6419_p0  ;;  %s6430_s5 = int_to_ptr.vmem [resolvable:$true] %s859_s5 }
  0x50   : > { %s6413_s12 = scalar_lea.hbm %s8342_s16, %s6406_s6  ;;  %s5623_s10 = scalar_lea.hbm %s8342_s16, 32 }
  0x51   : > { %s8345_s30 = smov %s8344_s7  ;;  %s6427_s27 = scalar_lea.hbm %s8344_s7, %s6406_s6 }
  0x52   : > { %s5618_s28 = scalar_lea.hbm %s6413_s12, 16  ;;  %p5624_p6 = scmp.lt.u32.totalorder %s6413_s12, %s8342_s16 }
  0x53   : > { %p5619_p2 = scmp.ne.s32.totalorder %s6413_s12, %s5618_s28  ;;  %p5625_p8 = scmp.lt.u32.totalorder %s5623_s10, %s5618_s28 }
  0x54   : > { %s8346_s1 = scalar_select %p6438_p4, 1, 0 }
  0x55   : > { %p5621_p1 = pnand %p6438_p4, %p5619_p2  ;;  %p5626_p9 = por %p5625_p8, %p5624_p6 }
  0x56   : > { %p5627_p10 = scmp.lt.u32.totalorder %s5618_s28, %s6413_s12 }
  0x57   : > { %p5622_p3 = pneg %p5621_p1 }
  0x58   : > { %p5628_p11 = por %p5627_p10, %p5626_p9 }
  0x5a   : > { %p5629_p12 = pnand %p5628_p11, %p5622_p3 }
  0x5c   : > { %5632 = shalt.err (!%p5629_p12)
}
  0x5d   : > { %s5633_s25 = scalar_lea.vmem %s6415_s23, 16  ;;  %s6133_s8 = smov [#allocation11]  }
  0x5e   : > { %p5634_p2 = scmp.ne.s32.totalorder %s6415_s23, %s5633_s25  ;;  %s5638_s7 = sshll.u32 %s6133_s8, 4  ;;  %s5639_s7 = int_to_ptr.vmem [resolvable:$false] %s5638_s7 }
  0x5f   : > { %s5640_s3 = scalar_lea.vmem %s5639_s7, 32  ;;  %p5641_p5 = scmp.lt.s32.totalorder %s6415_s23, %s5639_s7 }
  0x60   : > { %p5636_p1 = pnand %p5634_p2, %p6438_p4  ;;  %p5642_p7 = scmp.lt.s32.totalorder %s5640_s3, %s5633_s25 }
  0x62   : > { %p5637_p13 = pneg %p5636_p1  ;;  %p5643_p6 = por %p5642_p7, %p5641_p5 }
  0x64   : > { %p5644_p8 = pnand %p5643_p6, %p5637_p13 }
  0x66   : > { %5647 = shalt.err (!%p5644_p8)
}
  0x67   : > { %5178 = dma.hbm_to_vmem [thread:$0]  (!%p6419_p0), %s6413_s12, 16, %s6415_s23, %s6432_s4  }
  0x68   : > { %s5648_s28 = scalar_lea.hbm %s6427_s27, 16  ;;  %s5653_s25 = scalar_lea.hbm %s8345_s30, 32 }
  0x69   : > { %p5649_p3 = scmp.ne.s32.totalorder %s6427_s27, %s5648_s28  ;;  %p5654_p5 = scmp.lt.u32.totalorder %s6427_s27, %s8345_s30 }
  0x6a   : > { %p5655_p7 = scmp.lt.u32.totalorder %s5653_s25, %s5648_s28  ;;  %p5657_p11 = scmp.lt.u32.totalorder %s5648_s28, %s6427_s27 }
  0x6b   : > { %p5651_p9 = pnand %p5649_p3, %p6438_p4 }
  0x6c   : > { %p5656_p13 = por %p5655_p7, %p5654_p5 }
  0x6d   : > { %p5652_p10 = pneg %p5651_p9 }
  0x6e   : > { %p5658_p12 = por %p5657_p11, %p5656_p13 }
  0x70   : > { %p5659_p2 = pnand %p5658_p12, %p5652_p10 }
  0x72   : > { %5662 = shalt.err (!%p5659_p2)
}
  0x73   : > { %s5663_s12 = scalar_lea.vmem %s6430_s5, 16  ;;  %s6134_s23 = smov [#allocation12]  }
  0x74   : > { %p5664_p1 = scmp.ne.s32.totalorder %s6430_s5, %s5663_s12  ;;  %s5668_s3 = sshll.u32 %s6134_s23, 4  ;;  %s5669_s3 = int_to_ptr.vmem [resolvable:$false] %s5668_s3 }
  0x75   : > { %s5670_s10 = scalar_lea.vmem %s5669_s3, 32  ;;  %p5671_p3 = scmp.lt.s32.totalorder %s6430_s5, %s5669_s3 }
  0x76   : > { %p5666_p6 = pnand %p5664_p1, %p6438_p4  ;;  %p5672_p9 = scmp.lt.s32.totalorder %s5670_s10, %s5663_s12 }
  0x78   : > { %p5667_p8 = pneg %p5666_p6  ;;  %p5673_p5 = por %p5672_p9, %p5671_p3 }
  0x7a   : > { %p5674_p7 = pnand %p5673_p5, %p5667_p8 }
  0x7c   : > { %5677 = shalt.err (!%p5674_p7)
}
  0x7d   : > { %5181 = dma.hbm_to_vmem [thread:$0]  (!%p6419_p0), %s6427_s27, 16, %s6430_s5, %s6432_s4  }
  0x7e   : > { %s8347_s11 = sld [smem:[#allocation55_spill]]  ;;  %s877_s8 = scalar_lea.vmem [#allocation13], %s6400_s26 }
  0x7f   : > { %s884_s7 = sshll.u32 %s877_s8, 4  ;;  %s8348_s13 = sld [smem:[#allocation57_spill]]  ;;  %s885_s7 = int_to_ptr.vmem [resolvable:$true] %s884_s7 }
  0x84   : > { %s6488_s25 = scalar_lea.hbm %s8347_s11, %s6406_s6  ;;  %s5683_s28 = scalar_lea.hbm %s8347_s11, 32 }
  0x85   : > { %s6495_s3 = scalar_lea.hbm %s8348_s13, %s6406_s6  ;;  %s5678_s10 = scalar_lea.hbm %s6488_s25, 16 }
  0x86   : > { %p5679_p10 = scmp.ne.s32.totalorder %s6488_s25, %s5678_s10  ;;  %p5684_p12 = scmp.lt.u32.totalorder %s6488_s25, %s8347_s11 }
  0x87   : > { %p5685_p2 = scmp.lt.u32.totalorder %s5683_s28, %s5678_s10  ;;  %p5687_p6 = scmp.lt.u32.totalorder %s5678_s10, %s6488_s25 }
  0x88   : > { %p5681_p13 = pnand %p5679_p10, %p6438_p4 }
  0x89   : > { %p5686_p1 = por %p5685_p2, %p5684_p12 }
  0x8a   : > { %p5682_p11 = pneg %p5681_p13 }
  0x8b   : > { %p5688_p8 = por %p5687_p6, %p5686_p1 }
  0x8d   : > { %p5689_p3 = pnand %p5688_p8, %p5682_p11 }
  0x8f   : > { %5692 = shalt.err (!%p5689_p3)
}
  0x90   : > { %s5693_s8 = scalar_lea.vmem %s885_s7, 16  ;;  %s6135_s12 = smov [#allocation13]  }
  0x91   : > { %p5694_p9 = scmp.ne.s32.totalorder %s885_s7, %s5693_s8  ;;  %s5698_s23 = sshll.u32 %s6135_s12, 4  ;;  %s5699_s23 = int_to_ptr.vmem [resolvable:$false] %s5698_s23 }
  0x92   : > { %s5700_s27 = scalar_lea.vmem %s5699_s23, 32  ;;  %p5701_p10 = scmp.lt.s32.totalorder %s885_s7, %s5699_s23 }
  0x93   : > { %p5696_p5 = pnand %p5694_p9, %p6438_p4  ;;  %p5702_p13 = scmp.lt.s32.totalorder %s5700_s27, %s5693_s8 }
  0x95   : > { %p5697_p7 = pneg %p5696_p5  ;;  %p5703_p0 = por %p5702_p13, %p5701_p10 }
  0x97   : > { %p5704_p2 = pnand %p5703_p0, %p5697_p7 }
  0x99   : > { %5707 = shalt.err (!%p5704_p2)
}
  0x9a   : > { %p8349_p12 = scmp.ne.s32.totalorder %s8343_s24, 0  ;;  %s902_s16 = scalar_lea.vmem [#allocation14], %s6400_s26 }
  0x9b   : > { %s909_s10 = sshll.u32 %s902_s16, 4  ;;  %s6520_s18 = scalar_lea.hbm %s8248_s14, %s6406_s6  ;;  %s910_s10 = int_to_ptr.vmem [resolvable:$true] %s909_s10 }
  0x9c   : > { %5184 = dma.hbm_to_vmem [thread:$0]  (!%p8349_p12), %s6488_s25, 16, %s885_s7, %s6432_s4  }
  0x9d   : > { %s5708_s8 = scalar_lea.hbm %s6495_s3, 16  ;;  %s5713_s27 = scalar_lea.hbm %s8348_s13, 32 }
  0x9e   : > { %p5709_p0 = scmp.ne.s32.totalorder %s6495_s3, %s5708_s8  ;;  %p5714_p6 = scmp.lt.u32.totalorder %s6495_s3, %s8348_s13 }
  0x9f   : > { %p5715_p8 = scmp.lt.u32.totalorder %s5713_s27, %s5708_s8  ;;  %p5717_p9 = scmp.lt.u32.totalorder %s5708_s8, %s6495_s3 }
  0xa0   : > { %p5711_p11 = pnand %p5709_p0, %p6438_p4 }
  0xa1   : > { %p5716_p3 = por %p5715_p8, %p5714_p6 }
  0xa2   : > { %p5712_p1 = pneg %p5711_p11 }
  0xa3   : > { %p5718_p5 = por %p5717_p9, %p5716_p3 }
  0xa5   : > { %p5719_p7 = pnand %p5718_p5, %p5712_p1 }
  0xa7   : > { %5722 = shalt.err (!%p5719_p7)
}
  0xa8   : > { %s5723_s25 = scalar_lea.vmem %s910_s10, 16  ;;  %s6136_s7 = smov [#allocation14]  }
  0xa9   : > { %p5724_p10 = scmp.ne.s32.totalorder %s910_s10, %s5723_s25  ;;  %s5728_s16 = sshll.u32 %s6136_s7, 4  ;;  %s5729_s16 = int_to_ptr.vmem [resolvable:$false] %s5728_s16 }
  0xaa   : > { %s5730_s5 = scalar_lea.vmem %s5729_s16, 32  ;;  %p5731_p0 = scmp.lt.s32.totalorder %s910_s10, %s5729_s16 }
  0xab   : > { %p5726_p13 = pnand %p5724_p10, %p6438_p4  ;;  %p5732_p11 = scmp.lt.s32.totalorder %s5730_s5, %s5723_s25 }
  0xad   : > { %p5727_p2 = pneg %p5726_p13  ;;  %p5733_p12 = por %p5732_p11, %p5731_p0 }
  0xaf   : > { %p5734_p6 = pnand %p5733_p12, %p5727_p2 }
  0xb1   : > { %5737 = shalt.err (!%p5734_p6)
}
  0xb2   : > { %p8350_p8 = scmp.ne.s32.totalorder %s8343_s24, 0  ;;  %s919_s11 = scalar_lea.vmem [#allocation15], %s6400_s26 }
  0xb3   : > { %s926_s30 = sshll.u32 %s919_s11, 4  ;;  %s6137_s28 = smov [#allocation6]   ;;  %s6541_s30 = int_to_ptr.vmem [resolvable:$true] %s926_s30 }
  0xb4   : > { %5187 = dma.hbm_to_vmem [thread:$0]  (!%p8350_p8), %s6495_s3, 16, %s910_s10, %s6432_s4  }
  0xb5   : > { %s752_s8 = sshll.u32 %s6137_s28, 4  ;;  %s5738_s12 = scalar_lea.hbm %s6520_s18, 16  ;;  %s753_s8 = int_to_ptr.vmem [resolvable:$true] %s752_s8 }
  0xb6   : > { %p5739_p12 = scmp.ne.s32.totalorder %s6520_s18, %s5738_s12  ;;  %s5743_s25 = scalar_lea.hbm %s8248_s14, 32 }
  0xb7   : > { %p5744_p9 = scmp.lt.u32.totalorder %s6520_s18, %s8248_s14  ;;  %p5745_p5 = scmp.lt.u32.totalorder %s5743_s25, %s5738_s12 }
  0xb8   : > { %p5741_p1 = pnand %p5739_p12, %p6438_p4  ;;  %p5747_p10 = scmp.lt.u32.totalorder %s5738_s12, %s6520_s18 }
  0xb9   : > { %p5746_p7 = por %p5745_p5, %p5744_p9 }
  0xba   : > { %p5742_p3 = pneg %p5741_p1 }
  0xbb   : > { %p5748_p13 = por %p5747_p10, %p5746_p7 }
  0xbd   : > { %p5749_p2 = pnand %p5748_p13, %p5742_p3 }
  0xbf   : > { %5752 = shalt.err (!%p5749_p2)
}
  0xc0   : > { %s5753_s3 = scalar_lea.vmem %s6541_s30, 16  ;;  %s6138_s10 = smov [#allocation15]  }
  0xc1   : > { %p5754_p0 = scmp.ne.s32.totalorder %s6541_s30, %s5753_s3  ;;  %s5758_s5 = sshll.u32 %s6138_s10, 4  ;;  %s5759_s5 = int_to_ptr.vmem [resolvable:$false] %s5758_s5 }
  0xc2   : > { %s5760_s11 = scalar_lea.vmem %s5759_s5, 32  ;;  %p5761_p12 = scmp.lt.s32.totalorder %s6541_s30, %s5759_s5 }
  0xc3   : > { %p5756_p11 = pnand %p5754_p0, %p6438_p4  ;;  %p5762_p1 = scmp.lt.s32.totalorder %s5760_s11, %s5753_s3 }
  0xc5   : > { %p5757_p6 = pneg %p5756_p11  ;;  %p5763_p9 = por %p5762_p1, %p5761_p12 }
  0xc7   : > { %p5764_p5 = pnand %p5763_p9, %p5757_p6 }
  0xc9   : > { %5767 = shalt.err (!%p5764_p5)
}
  0xca   : > { %5190 = dma.hbm_to_vmem [thread:$0]  (!%p8350_p8), %s6520_s18, 16, %s6541_s30, %s6432_s4  }
  0xcb   : > { %s8351_s23 = sld [smem:[#allocation48_spill]]  ;;  %p8352_p7 = scmp.ne.s32.totalorder %s8335_s9, 0 }
  0xd1   : > { %s5768_s27 = scalar_lea.hbm %s8351_s23, 16 }
  0xd2   : > { %p5769_p3 = scmp.ne.s32.totalorder %s8351_s23, %s5768_s27  ;;  %p5775_p2 = scmp.lt.u32.totalorder %s5768_s27, %s8351_s23 }
  0xd4   : > { %p5771_p10 = pnand %p5769_p3, %p8352_p7 }
  0xd6   : > { %p5772_p13 = pneg %p5771_p10 }
  0xd8   : > { %p5777_p0 = pnand %p5775_p2, %p5772_p13 }
  0xda   : > { %5780 = shalt.err (!%p5777_p0)
}
  0xdb   : > { %s5781_s10 = scalar_lea.vmem %s753_s8, 16  ;;  %s5788_s18 = scalar_lea.vmem %s753_s8, 32 }
  0xdc   : > { %p5782_p11 = scmp.ne.s32.totalorder %s753_s8, %s5781_s10  ;;  %p5789_p1 = scmp.lt.s32.totalorder %s753_s8, %s753_s8 }
  0xdd   : > { %p5790_p9 = scmp.lt.s32.totalorder %s5788_s18, %s5781_s10 }
  0xde   : > { %p5784_p6 = pnand %p5782_p11, %p8352_p7 }
  0xdf   : > { %p5791_p5 = por %p5790_p9, %p5789_p1 }
  0xe0   : > { %p5785_p12 = pneg %p5784_p6 }
  0xe2   : > { %p5792_p8 = pnand %p5791_p5, %p5785_p12 }
  0xe4   : > { %5795 = shalt.err (!%p5792_p8)
}
  0xe5   : > { %p8353_p3 = scmp.ne.s32.totalorder %s8333_s2, 0  ;;  %s6587_s12 = scalar_lea.hbm %s8249_s15, %s6406_s6 }
  0xe6   : > { %s936_s27 = scalar_lea.vmem [#allocation16], %s6400_s26  ;;  %s5796_s7 = scalar_lea.hbm %s6587_s12, 16 }
  0xe7   : > { %5159 = dma.hbm_to_vmem [thread:$0]  (!%p8353_p3), %s8351_s23, 16, %s753_s8, [#allocation7]  }
  0xe8   : > { %s943_s25 = sshll.u32 %s936_s27, 4  ;;  %p5797_p8 = scmp.ne.s32.totalorder %s6587_s12, %s5796_s7  ;;  %s944_s25 = int_to_ptr.vmem [resolvable:$true] %s943_s25 }
  0xe9   : > { %s5801_s8 = scalar_lea.hbm %s8249_s15, 32  ;;  %p5802_p2 = scmp.lt.u32.totalorder %s6587_s12, %s8249_s15 }
  0xea   : > { %p5799_p10 = pnand %p5797_p8, %p6438_p4  ;;  %p5803_p0 = scmp.lt.u32.totalorder %s5801_s8, %s5796_s7 }
  0xeb   : > { %p5805_p6 = scmp.lt.u32.totalorder %s5796_s7, %s6587_s12 }
  0xec   : > { %p5800_p13 = pneg %p5799_p10  ;;  %p5804_p11 = por %p5803_p0, %p5802_p2 }
  0xee   : > { %p5806_p12 = por %p5805_p6, %p5804_p11 }
  0xf0   : > { %p5807_p1 = pnand %p5806_p12, %p5800_p13 }
  0xf2   : > { %5810 = shalt.err (!%p5807_p1)
}
  0xf3   : > { %s5811_s30 = scalar_lea.vmem %s944_s25, 16  ;;  %s6139_s5 = smov [#allocation16]  }
  0xf4   : > { %p5812_p9 = scmp.ne.s32.totalorder %s944_s25, %s5811_s30  ;;  %s5816_s11 = sshll.u32 %s6139_s5, 4  ;;  %s5817_s11 = int_to_ptr.vmem [resolvable:$false] %s5816_s11 }
  0xf5   : > { %s5818_s28 = scalar_lea.vmem %s5817_s11, 32  ;;  %p5819_p10 = scmp.lt.s32.totalorder %s944_s25, %s5817_s11 }
  0xf6   : > { %p5814_p5 = pnand %p5812_p9, %p6438_p4  ;;  %p5820_p3 = scmp.lt.s32.totalorder %s5818_s28, %s5811_s30 }
  0xf8   : > { %p5815_p8 = pneg %p5814_p5  ;;  %p5821_p7 = por %p5820_p3, %p5819_p10 }
  0xfa   : > { %p5822_p0 = pnand %p5821_p7, %p5815_p8 }
  0xfc   : > { %5825 = shalt.err (!%p5822_p0)
}
  0xfd   : > { %p8354_p2 = scmp.ne.s32.totalorder %s8343_s24, 0  ;;  %s6140_s27 = smov [#allocation8]  }
  0xfe   : > { %s766_s7 = sshll.u32 %s6140_s27, 4  ;;  %s6141_s16 = smov [#allocation9]   ;;  %s767_s7 = int_to_ptr.vmem [resolvable:$true] %s766_s7 }
  0xff   : > { %5193 = dma.hbm_to_vmem [thread:$0]  (!%p8354_p2), %s6587_s12, 16, %s944_s25, %s6432_s4  }
 0x100   : > { %s777_s3 = sshll.u32 %s6141_s16, 4  ;;  %s8355_s18 = sld [smem:[#allocation50_spill]]  ;;  %s778_s3 = int_to_ptr.vmem [resolvable:$true] %s777_s3 }
 0x101   : > { %p8356_p3 = scmp.ne.s32.totalorder %s8335_s9, 0 }
 0x106   : > { %s5826_s5 = scalar_lea.hbm %s8355_s18, 16 }
 0x107   : > { %p5827_p7 = scmp.ne.s32.totalorder %s8355_s18, %s5826_s5  ;;  %p5833_p6 = scmp.lt.u32.totalorder %s5826_s5, %s8355_s18 }
 0x109   : > { %p5829_p13 = pnand %p5827_p7, %p8356_p3 }
 0x10b   : > { %p5830_p11 = pneg %p5829_p13 }
 0x10d   : > { %p5835_p12 = pnand %p5833_p6, %p5830_p11 }
 0x10f   : > { %5838 = shalt.err (!%p5835_p12)
}
 0x110   : > { %s5839_s12 = scalar_lea.vmem %s767_s7, 16  ;;  %s5846_s25 = scalar_lea.vmem %s767_s7, 32 }
 0x111   : > { %p5840_p1 = scmp.ne.s32.totalorder %s767_s7, %s5839_s12  ;;  %p5847_p8 = scmp.lt.s32.totalorder %s767_s7, %s767_s7 }
 0x112   : > { %p5848_p10 = scmp.lt.s32.totalorder %s5846_s25, %s5839_s12 }
 0x113   : > { %p5842_p9 = pnand %p5840_p1, %p8356_p3 }
 0x114   : > { %p5849_p0 = por %p5848_p10, %p5847_p8 }
 0x115   : > { %p5843_p5 = pneg %p5842_p9 }
 0x117   : > { %p5850_p2 = pnand %p5849_p0, %p5843_p5 }
 0x119   : > { %5853 = shalt.err (!%p5850_p2)
}
 0x11a   : > { %p8357_p7 = scmp.ne.s32.totalorder %s8333_s2, 0  ;;  %s8358_s10 = sld [smem:[#allocation51_spill]] }
 0x11c   : > { %5162 = dma.hbm_to_vmem [thread:$0]  (!%p8357_p7), %s8355_s18, 16, %s767_s7, [#allocation7]  }
 0x120   : > { %s5854_s5 = scalar_lea.hbm %s8358_s10, 16 }
 0x121   : > { %p5855_p13 = scmp.ne.s32.totalorder %s8358_s10, %s5854_s5  ;;  %p5861_p2 = scmp.lt.u32.totalorder %s5854_s5, %s8358_s10 }
 0x123   : > { %p5857_p11 = pnand %p5855_p13, %p8356_p3 }
 0x125   : > { %p5858_p6 = pneg %p5857_p11 }
 0x127   : > { %p5863_p12 = pnand %p5861_p2, %p5858_p6 }
 0x129   : > { %5866 = shalt.err (!%p5863_p12)
}
 0x12a   : > { %s5867_s25 = scalar_lea.vmem %s778_s3, 16  ;;  %s5874_s7 = scalar_lea.vmem %s778_s3, 32 }
 0x12b   : > { %p5868_p1 = scmp.ne.s32.totalorder %s778_s3, %s5867_s25  ;;  %p5875_p8 = scmp.lt.s32.totalorder %s778_s3, %s778_s3 }
 0x12c   : > { %p5876_p10 = scmp.lt.s32.totalorder %s5874_s7, %s5867_s25 }
 0x12d   : > { %p5870_p9 = pnand %p5868_p1, %p8356_p3 }
 0x12e   : > { %p5877_p0 = por %p5876_p10, %p5875_p8 }
 0x12f   : > { %p5871_p5 = pneg %p5870_p9 }
 0x131   : > { %p5878_p4 = pnand %p5877_p0, %p5871_p5 }
 0x133   : > { %5881 = shalt.err (!%p5878_p4)
}
 0x134   : > { %5165 = dma.hbm_to_vmem [thread:$0]  (!%p8357_p7), %s8358_s10, 16, %s778_s3, [#allocation10]  }
 0x135   : > { %s6648_s5 = scalar_lea.hbm %s8251_s17, %s6406_s6  ;;  %s961_s11 = scalar_lea.vmem [#allocation17], %s6400_s26 }
 0x136   : > { %s968_s30 = sshll.u32 %s961_s11, 4  ;;  %s5882_s28 = scalar_lea.hbm %s6648_s5, 16  ;;  %s969_s30 = int_to_ptr.vmem [resolvable:$true] %s968_s30 }
 0x137   : > { %p5883_p4 = scmp.ne.s32.totalorder %s6648_s5, %s5882_s28  ;;  %p8359_p13 = scmp.ne.s32.totalorder %s8346_s1, 0 }
 0x138   : > { %s5887_s3 = scalar_lea.hbm %s8251_s17, 32  ;;  %p5888_p2 = scmp.lt.u32.totalorder %s6648_s5, %s8251_s17 }
 0x139   : > { %p5885_p11 = pnand %p5883_p4, %p8359_p13  ;;  %p5889_p12 = scmp.lt.u32.totalorder %s5887_s3, %s5882_s28 }
 0x13a   : > { %p5891_p9 = scmp.lt.u32.totalorder %s5882_s28, %s6648_s5 }
 0x13b   : > { %p5886_p6 = pneg %p5885_p11  ;;  %p5890_p1 = por %p5889_p12, %p5888_p2 }
 0x13d   : > { %p5892_p5 = por %p5891_p9, %p5890_p1 }
 0x13f   : > { %p5893_p8 = pnand %p5892_p5, %p5886_p6 }
 0x141   : > { %5896 = shalt.err (!%p5893_p8)
}
 0x142   : > { %s5897_s16 = scalar_lea.vmem %s969_s30, 16  ;;  %s6142_s13 = smov [#allocation17]  }
 0x143   : > { %p5898_p10 = scmp.ne.s32.totalorder %s969_s30, %s5897_s16  ;;  %s5902_s8 = sshll.u32 %s6142_s13, 4  ;;  %s5903_s8 = int_to_ptr.vmem [resolvable:$false] %s5902_s8 }
 0x144   : > { %s5904_s11 = scalar_lea.vmem %s5903_s8, 32  ;;  %p5905_p11 = scmp.lt.s32.totalorder %s969_s30, %s5903_s8 }
 0x145   : > { %p5900_p0 = pnand %p5898_p10, %p8359_p13  ;;  %p5906_p7 = scmp.lt.s32.totalorder %s5904_s11, %s5897_s16 }
 0x147   : > { %p5901_p4 = pneg %p5900_p0  ;;  %p5907_p3 = por %p5906_p7, %p5905_p11 }
 0x149   : > { %p5908_p2 = pnand %p5907_p3, %p5901_p4 }
 0x14b   : > { %5911 = shalt.err (!%p5908_p2)
}
 0x14c   : > { %p8360_p12 = scmp.ne.s32.totalorder %s8343_s24, 0  ;;  %s6143_s28 = smov [#allocation19]  }
 0x14d   : > { %s788_s12 = sshll.u32 %s6143_s28, 4  ;;  %s6144_s25 = smov [#allocation20]   ;;  %s789_s12 = int_to_ptr.vmem [resolvable:$true] %s788_s12 }
 0x14e   : > { %5196 = dma.hbm_to_vmem [thread:$0]  (!%p8360_p12), %s6648_s5, 16, %s969_s30, %s6432_s4  }
 0x14f   : > { %s799_s3 = sshll.u32 %s6144_s25, 4  ;;  %s5912_s13 = scalar_lea.hbm %s8254_s20, 16  ;;  %s800_s3 = int_to_ptr.vmem [resolvable:$true] %s799_s3 }
 0x150   : > { %p5913_p3 = scmp.ne.s32.totalorder %s8254_s20, %s5912_s13  ;;  %p8361_p7 = scmp.ne.s32.totalorder %s8335_s9, 0 }
 0x151   : > { %p5919_p9 = scmp.lt.u32.totalorder %s5912_s13, %s8254_s20 }
 0x152   : > { %p5915_p6 = pnand %p5913_p3, %p8361_p7 }
 0x154   : > { %p5916_p1 = pneg %p5915_p6 }
 0x156   : > { %p5921_p5 = pnand %p5919_p9, %p5916_p1 }
 0x158   : > { %5924 = shalt.err (!%p5921_p5)
}
 0x159   : > { %s5925_s5 = scalar_lea.vmem %s789_s12, 16  ;;  %s5932_s30 = scalar_lea.vmem %s789_s12, 32 }
 0x15a   : > { %p5926_p8 = scmp.ne.s32.totalorder %s789_s12, %s5925_s5  ;;  %p5933_p4 = scmp.lt.s32.totalorder %s789_s12, %s789_s12 }
 0x15b   : > { %p5934_p11 = scmp.lt.s32.totalorder %s5932_s30, %s5925_s5 }
 0x15c   : > { %p5928_p10 = pnand %p5926_p8, %p8361_p7 }
 0x15d   : > { %p5935_p2 = por %p5934_p11, %p5933_p4 }
 0x15e   : > { %p5929_p0 = pneg %p5928_p10 }
 0x160   : > { %p5936_p12 = pnand %p5935_p2, %p5929_p0 }
 0x162   : > { %5939 = shalt.err (!%p5936_p12)
}
 0x163   : > { %p8362_p3 = scmp.ne.s32.totalorder %s8333_s2, 0  ;;  %s5940_s27 = scalar_lea.hbm %s8255_s21, 16 }
 0x164   : > { %p5941_p6 = scmp.ne.s32.totalorder %s8255_s21, %s5940_s27  ;;  %p5947_p12 = scmp.lt.u32.totalorder %s5940_s27, %s8255_s21 }
 0x165   : > { %5168 = dma.hbm_to_vmem [thread:$0]  (!%p8362_p3), %s8254_s20, 16, %s789_s12, [#allocation7]  }
 0x166   : > { %p5943_p1 = pnand %p5941_p6, %p8361_p7 }
 0x168   : > { %p5944_p9 = pneg %p5943_p1 }
 0x16a   : > { %p5949_p5 = pnand %p5947_p12, %p5944_p9 }
 0x16c   : > { %5952 = shalt.err (!%p5949_p5)
}
 0x16d   : > { %s5953_s5 = scalar_lea.vmem %s800_s3, 16  ;;  %s5960_s12 = scalar_lea.vmem %s800_s3, 32 }
 0x16e   : > { %p5954_p8 = scmp.ne.s32.totalorder %s800_s3, %s5953_s5  ;;  %p5961_p4 = scmp.lt.s32.totalorder %s800_s3, %s800_s3 }
 0x16f   : > { %p5962_p11 = scmp.lt.s32.totalorder %s5960_s12, %s5953_s5 }
 0x170   : > { %p5956_p10 = pnand %p5954_p8, %p8361_p7 }
 0x171   : > { %p5963_p2 = por %p5962_p11, %p5961_p4 }
 0x172   : > { %p5957_p0 = pneg %p5956_p10 }
 0x174   : > { %p5964_p13 = pnand %p5963_p2, %p5957_p0 }
 0x176   : > { %5967 = shalt.err (!%p5964_p13)
}
 0x177   : > { %5171 = dma.hbm_to_vmem [thread:$0]  (!%p8362_p3), %s8255_s21, 16, %s800_s3, [#allocation10]  }
 0x178   : > { %s6145_s25 = smov [#allocation21]   ;;  %s5968_s13 = scalar_lea.hbm %s8256_s22, 256 }
 0x179   : > { %s809_s10 = sshll.u32 %s6145_s25, 4  ;;  %p5969_p6 = scmp.ne.s32.totalorder %s8256_s22, %s5968_s13  ;;  %s810_s10 = int_to_ptr.vmem [resolvable:$true] %s809_s10 }
 0x17a   : > { %p5975_p9 = scmp.lt.u32.totalorder %s5968_s13, %s8256_s22 }
 0x17b   : > { %p5971_p13 = pnand %p5969_p6, %p8361_p7 }
 0x17d   : > { %p5972_p1 = pneg %p5971_p13 }
 0x17f   : > { %p5977_p12 = pnand %p5975_p9, %p5972_p1 }
 0x181   : > { %5980 = shalt.err (!%p5977_p12)
}
 0x182   : > { %s5981_s3 = scalar_lea.vmem %s810_s10, 256  ;;  %p5989_p0 = scmp.lt.s32.totalorder %s810_s10, %s810_s10 }
 0x183   : > { %p5982_p5 = scmp.ne.s32.totalorder %s810_s10, %s5981_s3  ;;  %p5990_p4 = scmp.lt.s32.totalorder %s5981_s3, %s5981_s3 }
 0x185   : > { %p5984_p8 = pnand %p5982_p5, %p8361_p7  ;;  %p5991_p11 = por %p5990_p4, %p5989_p0 }
 0x187   : > { %p5985_p10 = pneg %p5984_p8 }
 0x189   : > { %p5992_p2 = pnand %p5991_p11, %p5985_p10 }
 0x18b   : > { %5995 = shalt.err (!%p5992_p2)
}
 0x18c   : > { %s6146_s12 = smov 64   ;;  %s6147_s30 = smov 4  }
 0x18d   : > { %5174 = dma.hbm_to_vmem [thread:$0]  (!%p8362_p3), %s8256_s22, 256, %s810_s10, [#allocation22], %s6146_s12, %s6146_s12, %s6147_s30  }
 0x18e   : > { %s6727_s27 = scalar_lea.hbm %s8253_s19, %s6406_s6  ;;  %s986_s13 = scalar_lea.vmem [#allocation18], %s6400_s26 }
 0x18f   : > { %s993_s8 = sshll.u32 %s986_s13, 4  ;;  %s5996_s16 = scalar_lea.hbm %s6727_s27, 16  ;;  %s994_s8 = int_to_ptr.vmem [resolvable:$true] %s993_s8 }
 0x190   : > { %p5997_p7 = scmp.ne.s32.totalorder %s6727_s27, %s5996_s16  ;;  %p8363_p6 = scmp.ne.s32.totalorder %s8346_s1, 0 }
 0x191   : > { %s6001_s10 = scalar_lea.hbm %s8253_s19, 32  ;;  %p6002_p3 = scmp.lt.u32.totalorder %s6727_s27, %s8253_s19 }
 0x192   : > { %p5999_p13 = pnand %p5997_p7, %p8363_p6  ;;  %p6003_p9 = scmp.lt.u32.totalorder %s6001_s10, %s5996_s16 }
 0x193   : > { %p6005_p5 = scmp.lt.u32.totalorder %s5996_s16, %s6727_s27 }
 0x194   : > { %p6000_p1 = pneg %p5999_p13  ;;  %p6004_p12 = por %p6003_p9, %p6002_p3 }
 0x196   : > { %p6006_p8 = por %p6005_p5, %p6004_p12 }
 0x198   : > { %p6007_p10 = pnand %p6006_p8, %p6000_p1 }
 0x19a   : > { %6010 = shalt.err (!%p6007_p10)
}
 0x19b   : > { %s6011_s6 = scalar_lea.vmem %s994_s8, 16  ;;  %s6148_s26 = smov [#allocation18]  }
 0x19c   : > { %p6012_p0 = scmp.ne.s32.totalorder %s994_s8, %s6011_s6  ;;  %s6016_s12 = sshll.u32 %s6148_s26, 4  ;;  %s6017_s12 = int_to_ptr.vmem [resolvable:$false] %s6016_s12 }
 0x19d   : > { %s6018_s30 = scalar_lea.vmem %s6017_s12, 32  ;;  %p6019_p2 = scmp.lt.s32.totalorder %s994_s8, %s6017_s12 }
 0x19e   : > { %p6014_p4 = pnand %p6012_p0, %p8363_p6  ;;  %p6020_p7 = scmp.lt.s32.totalorder %s6018_s30, %s6011_s6 }
 0x1a0   : > { %p6015_p11 = pneg %p6014_p4  ;;  %p6021_p13 = por %p6020_p7, %p6019_p2 }
 0x1a2   : > { %p6022_p3 = pnand %p6021_p13, %p6015_p11 }
 0x1a4   : > { %6025 = shalt.err (!%p6022_p3)
}
 0x1a5   : > { %p8364_p9 = scmp.ne.s32.totalorder %s8343_s24, 0  ;;  %p8365_p1 = scmp.ne.s32.totalorder %s8332_s0, 0 }
 0x1a7   : > { %5199 = dma.hbm_to_vmem [thread:$0]  (!%p8364_p9), %s6727_s27, 16, %s994_s8, %s6432_s4  }
 0x1a8   : > { %1002 = sbr.rel (%p8365_p1) target bundleno = 4601 (0x11f9), region = 124 }
 0x1af   : > { %p8366_p6 = scmp.eq.s32.totalorder %s6335_s29, 0 }
 0x1b1   : > { %6077 = dma.done.wait (%p8366_p6), [#allocation4], 16   ;;  %p8367_p12 = pmov %p8366_p6 }
 0x1b2   : > { %p8368_p5 = pmov %p8366_p6 }
 0x1b3   : > { %6079 = vsyncadd (%p8367_p12), [#allocation4], 4294967280 }
 0x1b4   : > { %6081 = dma.done.wait (%p8368_p5), [#allocation7], 32   ;;  %p8369_p8 = pmov %p8368_p5 }
 0x1b5   : > { %p8370_p10 = pmov %p8368_p5 }
 0x1b6   : > { %6083 = vsyncadd (%p8369_p8), [#allocation7], 4294967264 }
 0x1b7   : > { %6085 = dma.done.wait (%p8370_p10), [#allocation10], 16   ;;  %p8371_p0 = pmov %p8368_p5 }
 0x1b8   : > { %s8372_s4 = sld [smem:[#allocation32_spill]]  ;;  %s8373_s0 = sld [smem:[#allocation38_spill]] }
 0x1b9   : > { %6087 = vsyncadd (%p8371_p0), [#allocation10], 4294967280  ;;  %s1020_s24 = sand.u32 1, %s6335_s29  }
 0x1ba   : > { %s1021_s28 = scalar_lea.sflag [#allocation4], %s1020_s24 }
 0x1be   : > { %s6764_s1 = sand.u32 1, %s8372_s4   ;;  %p8374_p4 = scmp.ne.s32.totalorder %s8373_s0, 0 }
 0x1c0   : > { %6089 = dma.done.wait (%p8374_p4), %s1021_s28, 128  }
 0x1c1   : > { %6091 = vsyncadd (%p8374_p4), %s1021_s28, 4294967168  ;;  %p8375_p11 = pmov %p8371_p0 }
 0x1c2   : > { %p8376_p2 = pmov %p8371_p0 }
 0x1c3   : > { %6093 = dma.done.wait (%p8375_p11), [#allocation7], 16  }
 0x1c4   : > { %6095 = vsyncadd (%p8376_p2), [#allocation7], 4294967280  ;;  %p8377_p7 = pmov %p8371_p0 }
 0x1c5   : > { %p8378_p13 = pmov %p8371_p0 }
 0x1c6   : > { %6097 = dma.done.wait (%p8377_p7), [#allocation10], 16  }
 0x1c7   : > { %6099 = vsyncadd (%p8378_p13), [#allocation10], 4294967280  ;;  %p8379_p3 = pmov %p8371_p0 }
 0x1c8   : > { %p8380_p9 = pmov %p8371_p0 }
 0x1c9   : > { %6101 = dma.done.wait (%p8379_p3), [#allocation22], 256  }
 0x1ca   : > { %6103 = vsyncadd (%p8380_p9), [#allocation22], 4294967040  ;;  %s8381_s11 = sld [smem:[#allocation34_spill]]  ;;  %s8383_s24 = sld [smem:[#allocation56_spill]] }
 0x1cb   : > { %s8382_s12 = sld [smem:[#allocation54_spill]]  ;;  %s8384_s8 = sld [smem:[#allocation58_spill]] }
 0x1cc   : > { %s8385_s7 = sld [smem:[#allocation59_spill]] }
 0x1d0   : > { %p1224_p1 = scmp.lt.s32.totalorder %s8381_s11, 1  ;;  %p4485_p6 = scmp.ne.s32.totalorder %s8381_s11, 0 }
 0x1d1   : > { %s8386_s26 = sld [smem:[#allocation49_spill]] (!%p4485_p6)  ;;  %s8387_s9 = sld [smem:[#allocation44_spill]] (!%p4485_p6)  ;;  %vm1300_vm0 = vcmask (!%p4485_p6), 392192   ;;  %v4494_v15 = vld [vmem:[#allocation9] ss:$0 sm:$0xff] (!%p4485_p6)  ;;  %vm1393_vm1 = vcmask (!%p4485_p6), 261120  }
 0x1d2   : > { %s1225_s10 = scalar_select %p1224_p1, %s8381_s11, 1 }
 0x1d3   : > { %1248 = sbr.rel (%p4485_p6) target bundleno = 704 (0x2c0), region = 188  ;;  %1402 = vst.msk [vmem:[#allocation2 + $0x40] sm:$0xff] (!%p4485_p6), %vm1393_vm1, %v4494_v15  ;;  %v4486_v16 = vld [vmem:[#allocation8] ss:$0 sm:$0xff] (!%p4485_p6) }
 0x1d4   : > { %s4592_s5 = sshll.u32 %s1225_s10, 4  ;;  %s4595_s3 = sshll.u32 %s1225_s10, 5 }
 0x1d5   : > { %s6795_s30 = scalar_lea.vmem %s8382_s12, %s4592_s5  ;;  %s6800_s28 = scalar_lea.vmem %s8383_s24, %s4592_s5 }
 0x1d6   : > { %s6805_s13 = scalar_lea.vmem %s8384_s8, %s4592_s5  ;;  %s6810_s25 = scalar_lea.vmem %s8385_s7, %s4595_s3 }
 0x1d7   : > { %v5294_v0 = vld [vmem:[%s8386_s26] sm:$0xff] (!%p4485_p6)   ;;  %v5295_v1 = vld [vmem:[%s8386_s26 + $0x8] sm:$0xff] (!%p4485_p6)   ;;  %v5296_v5 = vld [vmem:[%s8386_s26 + $0x10] sm:$0xff] (!%p4485_p6)   ;;  %s8388_s5 = sld [smem:[#allocation45_spill]] (!%p4485_p6) }
 0x1d8   : > { %4721 = vmatprep.subr.bf16.mxu0 (!%p4485_p6), %v5294_v0  ;;  %5095 = vmatprep.subr.bf16.mxu1 (!%p4485_p6), %v5294_v0  ;;  %v1249_v2 = vld [vmem:[%s8387_s9] sm:$0xff] (!%p4485_p6)  ;;  %v1250_v3 = vld [vmem:[%s8387_s9 + $0x8] sm:$0xff] (!%p4485_p6)  ;;  %v1251_v9 = vld [vmem:[%s8387_s9 + $0x10] sm:$0xff] (!%p4485_p6) }
 0x1d9   : > { %4722 = vmatpush3.bf16.msra.mxu0 (!%p4485_p6), %v5294_v0  ;;  %5098 = vmatpush3.bf16.msra.mxu1 (!%p4485_p6), %v5294_v0  ;;  %v1253_v4 = vld [vmem:[%s8387_s9 + $0x20] sm:$0xff] (!%p4485_p6)  ;;  %v1265_v6 = vpack.c.bf16 (!%p4485_p6), %v1250_v3, %v1249_v2  ;;  %v1254_v7 = vld [vmem:[%s8387_s9 + $0x28] sm:$0xff] (!%p4485_p6)  ;;  %v1252_v10 = vld [vmem:[%s8387_s9 + $0x18] sm:$0xff] (!%p4485_p6) }
 0x1da   : > { %4723 = vmatprep.subr.bf16.mxu0 %v5295_v1  ;;  %5096 = vmatprep.subr.bf16.mxu1 %v5295_v1  ;;  %v1267_v8 = vpack.c.bf16 %v1254_v7, %v1253_v4  ;;  %v1255_v11 = vld [vmem:[%s8387_s9 + $0x30] sm:$0xff]  ;;  %v1256_v12 = vld [vmem:[%s8387_s9 + $0x38] sm:$0xff]  ;;  %v1266_v13 = vpack.c.bf16 %v1252_v10, %v1251_v9 }
 0x1db   : > { %4727 = vmatprep.mubr.msk.bf16.mxu0 %vm1300_vm0, %v1265_v6  ;;  %v1268_v14 = vpack.c.bf16 %v1256_v12, %v1255_v11 }
 0x1dc   : > { %4731 = vmatprep.mubr.msk.bf16.mxu1 %vm1300_vm0, %v1267_v8 }
 0x1dd   : > { %4724 = vmatpush3.bf16.msra.mxu0 %v5295_v1  ;;  %5099 = vmatpush3.bf16.msra.mxu1 %v5295_v1  ;;  %v1259_v17 = vld [vmem:[%s8388_s5 + $0x10] sm:$0xff]  ;;  %v1257_v23 = vld [vmem:[%s8388_s5] sm:$0xff]  ;;  %v1260_v29 = vld [vmem:[%s8388_s5 + $0x18] sm:$0xff] }
 0x1de   : > { %4725 = vmatprep.subr.bf16.mxu0 %v5296_v5  ;;  %5097 = vmatprep.subr.bf16.mxu1 %v5296_v5  ;;  %v1263_v19 = vld [vmem:[%s8388_s5 + $0x30] sm:$0xff]  ;;  %v1261_v25 = vld [vmem:[%s8388_s5 + $0x20] sm:$0xff]  ;;  %v1264_v31 = vld [vmem:[%s8388_s5 + $0x38] sm:$0xff] }
 0x1df   : > { %v1258_v37 = vld [vmem:[%s8388_s5 + $0x8] sm:$0xff] }
 0x1e0   : > { %v1262_v39 = vld [vmem:[%s8388_s5 + $0x28] sm:$0xff] }
 0x1e1   : > { %4726 = vmatpush3.bf16.msra.mxu0 %v5296_v5  ;;  %5100 = vmatpush3.bf16.msra.mxu1 %v5296_v5 }
 0x1e4   : > { %4728 = vmatmul.mubr.msk.bf16.vlgmr.msra.gmra.mrb[0].mxu0 %vm1300_vm0, %v1266_v13  ;;  %4732 = vmatmul.mubr.msk.bf16.vlgmr.msra.gmra.mrb[0].mxu1 %vm1300_vm0, %v1268_v14 }
 0x2b7   : > { %v4729_v18 = vpop.f32.mrb[0].mxu0  ;;  %v4733_v20 = vpop.f32.mrb[0].mxu1 }
 0x2b8   : > { %v1356_v21 = vadd.f32 %v4729_v18, %v4486_v16  ;;  %v1372_v22 = vadd.f32 %v4733_v20, %v4486_v16  ;;  %v1347_v24 = vpop.f32.mrb[1].mxu0  ;;  %v1363_v26 = vpop.f32.mrb[1].mxu1 }
 0x2b9   : > { %v1348_v27 = vadd.f32 %v4486_v16, %v1347_v24  ;;  %v1364_v28 = vadd.f32 %v4486_v16, %v1363_v26  ;;  %v4730_v30 = vpop.f32.mrb[2].mxu0  ;;  %v4734_v32 = vpop.f32.mrb[2].mxu1 }
 0x2ba   : > { %v1380_v33 = vadd.f32 %v1356_v21, %v1259_v17  ;;  %v1384_v34 = vadd.f32 %v1372_v22, %v1263_v19  ;;  %v1359_v35 = vadd.f32 %v4730_v30, %v4486_v16  ;;  %v1375_v36 = vadd.f32 %v4734_v32, %v4486_v16  ;;  %v1350_v38 = vpop.f32.mrb[3].mxu0  ;;  %v1366_v40 = vpop.f32.mrb[3].mxu1 }
 0x2bb   : > { %v1378_v41 = vadd.f32 %v1348_v27, %v1257_v23  ;;  %v1382_v42 = vadd.f32 %v1364_v28, %v1261_v25  ;;  %v1351_v43 = vadd.f32 %v4486_v16, %v1350_v38  ;;  %v1367_v44 = vadd.f32 %v4486_v16, %v1366_v40 }
 0x2bc   : > { %1396 = vst.msk [vmem:[#allocation2 + $0x10] sm:$0xff] %vm1393_vm1, %v1380_v33  ;;  %1400 = vst.msk [vmem:[#allocation2 + $0x30] sm:$0xff] %vm1393_vm1, %v1384_v34  ;;  %v1381_v45 = vadd.f32 %v1359_v35, %v1260_v29  ;;  %v1385_v46 = vadd.f32 %v1375_v36, %v1264_v31 }
 0x2bd   : > { %1394 = vst.msk [vmem:[#allocation2] sm:$0xff] %vm1393_vm1, %v1378_v41  ;;  %1398 = vst.msk [vmem:[#allocation2 + $0x20] sm:$0xff] %vm1393_vm1, %v1382_v42  ;;  %v1379_v47 = vadd.f32 %v1351_v43, %v1258_v37  ;;  %v1383_v48 = vadd.f32 %v1367_v44, %v1262_v39 }
 0x2be   : > { %1397 = vst.msk [vmem:[#allocation2 + $0x18] sm:$0xff] %vm1393_vm1, %v1381_v45  ;;  %1401 = vst.msk [vmem:[#allocation2 + $0x38] sm:$0xff] %vm1393_vm1, %v1385_v46 }
 0x2bf   : > { %1395 = vst.msk [vmem:[#allocation2 + $0x8] sm:$0xff] %vm1393_vm1, %v1379_v47  ;;  %1399 = vst.msk [vmem:[#allocation2 + $0x28] sm:$0xff] %vm1393_vm1, %v1383_v48 }
 0x2c0 PF: > { %vm1480_vm2 = vcmask 261120   ;;  %v1477_v1 = vld [vmem:[#allocation2 + $0x40] sm:$0xff]  ;;  %vm6150_vm3 = vmmov 0   ;;  %s8390_s0 = scalar_lea.vmem [#allocation12], %s6764_s1  ;;  %s8391_s24 = scalar_lea.vmem [#allocation13], %s6764_s1  ;;  %vm1764_vm4 = vcmask 64512  }
 0x2c1   : > { %v1505_v2 = vsel %vm1480_vm2, %v1477_v1, 0.0  ;;  %v5359_v48 = vld [vmem:[%s6795_s30] sm:$0xff]   ;;  %s6152_s10 = smov 96   ;;  %s6153_s6 = smov 88   ;;  %vm2019_vm6 = vcmask 1043456   ;;  %vm1885_vm9 = vcmask 588800  }
 0x2c2   : > { %s6154_s12 = smov 80   ;;  %s6155_s4 = smov 120   ;;  %vm3256_vm0 = vcmask 130048   ;;  %vm3266_vm1 = vcmask 195584  }
 0x2c3   : > { %v1471_v50 = vld [vmem:[#allocation2 + $0x10] sm:$0xff]  ;;  %s6156_s8 = smov 72   ;;  %s6157_s16 = smov 112  }
 0x2c4   : > { %v1469_v49 = vld [vmem:[#allocation2] sm:$0xff]  ;;  %v1487_v53 = vsel %vm1480_vm2, %v1471_v50, 0.0  ;;  %v1475_v61 = vld [vmem:[#allocation2 + $0x30] sm:$0xff]  ;;  %s6158_s7 = smov 104   ;;  %s8392_s11 = sld [smem:[#allocation47_spill]] }
 0x2c5   : > { %v1481_v52 = vsel %vm1480_vm2, %v1469_v49, 0.0  ;;  %v1472_v54 = vld [vmem:[#allocation2 + $0x18] sm:$0xff]  ;;  %v1473_v55 = vld [vmem:[#allocation2 + $0x20] sm:$0xff]  ;;  %1488 = vadd.xlane.f32.xlu1 %v1487_v53  ;;  %v1499_v63 = vsel %vm1480_vm2, %v1475_v61, 0.0  ;;  %s8405_s27 = scalar_lea.vmem [#allocation17], %s6764_s1 }
 0x2c6   : > { %v1470_v51 = vld [vmem:[#allocation2 + $0x8] sm:$0xff]  ;;  %1482 = vadd.xlane.f32.xlu0 %v1481_v52  ;;  %v1490_v58 = vsel %vm1480_vm2, %v1472_v54, 0.0  ;;  %v1493_v59 = vsel %vm1480_vm2, %v1473_v55, 0.0  ;;  %v1476_v62 = vld [vmem:[#allocation2 + $0x38] sm:$0xff] }
 0x2c7   : > { %v1474_v56 = vld [vmem:[#allocation2 + $0x28] sm:$0xff]  ;;  %v1484_v57 = vsel %vm1480_vm2, %v1470_v51, 0.0  ;;  %v1502_v0 = vsel %vm1480_vm2, %v1476_v62, 0.0 }
 0x2c8   : > { %v1496_v60 = vsel %vm1480_vm2, %v1474_v56, 0.0 }
 0x2c9   : > { %1491 = vadd.xlane.f32.xlu1 %v1490_v58 }
 0x2ca   : > { %1485 = vadd.xlane.f32.xlu0 %v1484_v57 }
 0x2cd   : > { %1497 = vadd.xlane.f32.xlu1 %v1496_v60 }
 0x2ce   : > { %1494 = vadd.xlane.f32.xlu0 %v1493_v59 }
 0x2d1   : > { %1503 = vadd.xlane.f32.xlu1 %v1502_v0 }
 0x2d2   : > { %1500 = vadd.xlane.f32.xlu0 %v1499_v63 }
 0x2d6   : > { %1506 = vadd.xlane.f32.xlu0 %v1505_v2 }
 0x352   : > { %v1489_v4 = vpop.xlane.xlu1 %1488 }
 0x353   : > { %v1483_v3 = vpop.xlane.xlu0 %1482  ;;  %v1511_v6 = vmul.f32 0.03125, %v1489_v4 }
 0x354   : > { %v1509_v5 = vmul.f32 0.03125, %v1483_v3 }
 0x355   : > { %v6894_v8 = vsub.f32 %v1471_v50, %v1511_v6  ;;  %v5360_v50 = vld [vmem:[%s6795_s30 + $0x8] sm:$0xff]   ;;  %s8389_s30 = scalar_lea.vmem [#allocation11], %s6764_s1 }
 0x356   : > { %v6892_v7 = vsub.f32 %v1469_v49, %v1509_v5  ;;  %v1492_v10 = vpop.xlane.xlu1 %1491  ;;  %v8301_v49 = vmov 0.0  }
 0x357   : > { %v1486_v9 = vpop.xlane.xlu0 %1485  ;;  %v1512_v12 = vmul.f32 0.03125, %v1492_v10  ;;  %v1529_v14 = vmul.f32 %v6894_v8, %v6894_v8  ;;  %4735 = vmatprep.subr.bf16.mxu0 %v8301_v49  ;;  %4759 = vmatprep.subr.bf16.mxu1 %v8301_v49 }
 0x358   : > { %v1510_v11 = vmul.f32 0.03125, %v1486_v9  ;;  %v1527_v13 = vmul.f32 %v6892_v7, %v6892_v7  ;;  %4736 = vmatpush3.bf16.msra.mxu0 %v5359_v48  ;;  %4739 = vmatprep.mubr.msk.bf16.mxu0 %vm6150_vm3, %v8301_v49 }
 0x359   : > { %v6902_v16 = vsub.f32 %v1472_v54, %v1512_v12  ;;  %v1542_v20 = vsel %vm1480_vm2, %v1529_v14, 0.0  ;;  %4737 = vmatprep.subr.bf16.mxu0 %v8301_v49  ;;  %4769 = vmatprep.mubr.msk.bf16.mxu1 %vm6150_vm3, %v8301_v49  ;;  %v4497_v12 = vld [vmem:[%s8389_s30] ss:$0 sm:$0xff] }
 0x35a   : > { %v6900_v15 = vsub.f32 %v1470_v51, %v1510_v11  ;;  %v1536_v17 = vsel %vm1480_vm2, %v1527_v13, 0.0  ;;  %v1498_v19 = vpop.xlane.xlu1 %1497 }
 0x35b   : > { %1537 = vadd.xlane.f32.xlu1 %v1536_v17  ;;  %v1495_v18 = vpop.xlane.xlu0 %1494  ;;  %v1514_v22 = vmul.f32 0.03125, %v1498_v19  ;;  %v1530_v24 = vmul.f32 %v6902_v16, %v6902_v16 }
 0x35c   : > { %v1513_v21 = vmul.f32 0.03125, %v1495_v18  ;;  %v1528_v23 = vmul.f32 %v6900_v15, %v6900_v15  ;;  %4738 = vmatpush3.bf16.msra.mxu0 %v5360_v50 }
 0x35d   : > { %v6912_v26 = vsub.f32 %v1474_v56, %v1514_v22  ;;  %v1545_v30 = vsel %vm1480_vm2, %v1530_v24, 0.0  ;;  %4789 = vmatprep.subr.bf16.mxu0 %v8301_v49 }
 0x35e   : > { %v6910_v25 = vsub.f32 %v1473_v55, %v1513_v21  ;;  %v1539_v27 = vsel %vm1480_vm2, %v1528_v23, 0.0  ;;  %v1504_v29 = vpop.xlane.xlu1 %1503  ;;  %v4498_v21 = vld [vmem:[%s8390_s0] ss:$0 sm:$0xff] }
 0x35f   : > { %1543 = vadd.xlane.f32.xlu1 %v1542_v20  ;;  %1540 = vadd.xlane.f32.xlu0 %v1539_v27  ;;  %v1501_v28 = vpop.xlane.xlu0 %1500  ;;  %v1516_v32 = vmul.f32 0.03125, %v1504_v29  ;;  %v1532_v34 = vmul.f32 %v6912_v26, %v6912_v26 }
 0x360   : > { %v1515_v31 = vmul.f32 0.03125, %v1501_v28  ;;  %v1531_v33 = vmul.f32 %v6910_v25, %v6910_v25 }
 0x361   : > { %v6922_v36 = vsub.f32 %v1476_v62, %v1516_v32  ;;  %v1551_v40 = vsel %vm1480_vm2, %v1532_v34, 0.0 }
 0x362   : > { %v6920_v35 = vsub.f32 %v1475_v61, %v1515_v31  ;;  %v1548_v37 = vsel %vm1480_vm2, %v1531_v33, 0.0 }
 0x363   : > { %1546 = vadd.xlane.f32.xlu0 %v1545_v30  ;;  %1549 = vadd.xlane.f32.xlu1 %v1548_v37  ;;  %v1507_v38 = vpop.xlane.xlu0 %1506  ;;  %v1534_v42 = vmul.f32 %v6922_v36, %v6922_v36 }
 0x364   : > { %v1517_v39 = vmul.f32 0.03125, %v1507_v38  ;;  %v1533_v41 = vmul.f32 %v6920_v35, %v6920_v35 }
 0x365   : > { %v1557_v45 = vsel %vm1480_vm2, %v1534_v42, 0.0 }
 0x366   : > { %v6930_v43 = vsub.f32 %v1477_v1, %v1517_v39  ;;  %v1554_v44 = vsel %vm1480_vm2, %v1533_v41, 0.0 }
 0x367   : > { %1552 = vadd.xlane.f32.xlu0 %v1551_v40  ;;  %1555 = vadd.xlane.f32.xlu1 %v1554_v44 }
 0x368   : > { %v1535_v46 = vmul.f32 %v6930_v43, %v6930_v43 }
 0x36a   : > { %v1560_v47 = vsel %vm1480_vm2, %v1535_v46, 0.0 }
 0x36b   : > { %1558 = vadd.xlane.f32.xlu0 %v1557_v45  ;;  %1561 = vadd.xlane.f32.xlu1 %v1560_v47 }
 0x3e8   : > { %v1538_v51 = vpop.xlane.xlu1 %1537 }
 0x3e9   : > { %v1563_v52 = vmul.f32 0.03125, %v1538_v51 }
 0x3eb   : > { %v1572_v53 = vadd.f32 1e-05, %v1563_v52 }
 0x3ec   : > { %v1544_v54 = vpop.xlane.xlu1 %1543  ;;  %v1541_v55 = vpop.xlane.xlu0 %1540 }
 0x3ed   : > { %5369 = vrsqrt.f32 %v1572_v53  ;;  %v1565_v56 = vmul.f32 0.03125, %v1544_v54  ;;  %v1564_v57 = vmul.f32 0.03125, %v1541_v55 }
 0x3ef   : > { %v1573_v58 = vadd.f32 1e-05, %v1564_v57  ;;  %v1574_v59 = vadd.f32 1e-05, %v1565_v56 }
 0x3f0   : > { %v1547_v60 = vpop.xlane.xlu0 %1546  ;;  %v1550_v61 = vpop.xlane.xlu1 %1549 }
 0x3f1   : > { %v1566_v62 = vmul.f32 0.03125, %v1547_v60  ;;  %5371 = vrsqrt.f32 %v1573_v58  ;;  %v1567_v0 = vmul.f32 0.03125, %v1550_v61 }
 0x3f2   : > { %5373 = vrsqrt.f32 %v1574_v59  ;;  %v6151_v59 = vmov 0  }
 0x3f3   : > { %v1575_v63 = vadd.f32 1e-05, %v1566_v62  ;;  %v1576_v5 = vadd.f32 1e-05, %v1567_v0  ;;  %5297 = vset.pattern.permute.xlu1 %v6151_v59  ;;  %5298 = vset.pattern.permute.xlu0 %v6151_v59 }
 0x3f4   : > { %v1553_v1 = vpop.xlane.xlu0 %1552  ;;  %v1556_v9 = vpop.xlane.xlu1 %1555 }
 0x3f5   : > { %v1568_v2 = vmul.f32 0.03125, %v1553_v1  ;;  %5375 = vrsqrt.f32 %v1575_v63  ;;  %v1569_v14 = vmul.f32 0.03125, %v1556_v9 }
 0x3f7   : > { %v5370_v3 = vpop.eup %5369  ;;  %v1577_v4 = vadd.f32 1e-05, %v1568_v2  ;;  %v1578_v27 = vadd.f32 1e-05, %v1569_v14 }
 0x3f8   : > { %v1559_v6 = vpop.xlane.xlu0 %1558  ;;  %v1590_v10 = vmul.f32 %v5370_v3, %v6892_v7  ;;  %v1562_v22 = vpop.xlane.xlu1 %1561 }
 0x3f9   : > { %5377 = vrsqrt.f32 %v1577_v4  ;;  %v1570_v11 = vmul.f32 0.03125, %v1559_v6  ;;  %v1571_v31 = vmul.f32 0.03125, %v1562_v22 }
 0x3fa   : > { %5379 = vrsqrt.f32 %v1576_v5  ;;  %v1605_v18 = vmul.f32 %v4497_v12, %v1590_v10 }
 0x3fb   : > { %v5372_v13 = vpop.eup %5371  ;;  %v1579_v20 = vadd.f32 1e-05, %v1570_v11  ;;  %v1580_v38 = vadd.f32 1e-05, %v1571_v31 }
 0x3fc   : > { %v1591_v17 = vmul.f32 %v5372_v13, %v6900_v15  ;;  %v5374_v19 = vpop.eup %5373  ;;  %v1620_v28 = vadd.f32 %v4498_v21, %v1605_v18 }
 0x3fd   : > { %v1592_v29 = vmul.f32 %v5374_v19, %v6894_v8  ;;  %5381 = vrsqrt.f32 %v1579_v20 }
 0x3fe   : > { %v1606_v23 = vmul.f32 %v4497_v12, %v1591_v17  ;;  %5383 = vrsqrt.f32 %v1578_v27 }
 0x3ff   : > { %v5376_v24 = vpop.eup %5375  ;;  %v1607_v34 = vmul.f32 %v4497_v12, %v1592_v29  ;;  %5385 = vrsqrt.f32 %v1580_v38  ;;  %v1404_v38 = vld [vmem:[%s8392_s11 + $0x8] sm:$0xff] }
 0x400   : > { %v1621_v7 = vadd.f32 %v4498_v21, %v1606_v23  ;;  %v1593_v30 = vmul.f32 %v5376_v24, %v6902_v16 }
 0x401   : > { %v1622_v8 = vadd.f32 %v4498_v21, %v1607_v34  ;;  %v1403_v34 = vld [vmem:[%s8392_s11] sm:$0xff] }
 0x402   : > { %v1629_v32 = vpack.c.bf16 %v1621_v7, %v1620_v28  ;;  %v1608_v33 = vmul.f32 %v4497_v12, %v1593_v30 }
 0x403   : > { %v5378_v15 = vpop.eup %5377 }
 0x404   : > { %4740 = vmatmul.mubr.msk.bf16.vlgmr.msra.gmra.mrb[0].mxu0 %vm1480_vm2, %v1629_v32  ;;  %v5380_v37 = vpop.eup %5379  ;;  %v1623_v39 = vadd.f32 %v4498_v21, %v1608_v33  ;;  %v1595_v40 = vmul.f32 %v5378_v15, %v6912_v26 }
 0x405   : > { %4743 = vmatprep.mubr.msk.bf16.mxu0 %vm6150_vm3, %v8301_v49  ;;  %v1594_v16 = vmul.f32 %v5380_v37, %v6910_v25  ;;  %v1405_v37 = vld [vmem:[%s8392_s11 + $0x10] sm:$0xff] }
 0x406   : > { %v1630_v41 = vpack.c.bf16 %v1623_v39, %v1622_v8  ;;  %v1610_v42 = vmul.f32 %v4497_v12, %v1595_v40  ;;  %v1406_v39 = vld [vmem:[%s8392_s11 + $0x18] sm:$0xff]  ;;  %v1407_v40 = vld [vmem:[%s8392_s11 + $0x20] sm:$0xff]  ;;  %v1408_v8 = vld [vmem:[%s8392_s11 + $0x28] sm:$0xff] }
 0x407   : > { %v5382_v44 = vpop.eup %5381  ;;  %v1609_v45 = vmul.f32 %v4497_v12, %v1594_v16  ;;  %v1409_v16 = vld [vmem:[%s8392_s11 + $0x30] sm:$0xff] }
 0x408   : > { %v5384_v46 = vpop.eup %5383  ;;  %v1625_v47 = vadd.f32 %v4498_v21, %v1610_v42  ;;  %v1597_v48 = vmul.f32 %v5382_v44, %v6922_v36  ;;  %v1411_v42 = vld [vmem:[%s8392_s11 + $0x40] sm:$0xff] }
 0x409   : > { %v1624_v50 = vadd.f32 %v4498_v21, %v1609_v45  ;;  %v1596_v26 = vmul.f32 %v5384_v46, %v6920_v35  ;;  %v5386_v25 = vpop.eup %5385 }
 0x40a   : > { %v1612_v52 = vmul.f32 %v4497_v12, %v1597_v48  ;;  %v1598_v55 = vmul.f32 %v5386_v25, %v6930_v43  ;;  %v4499_v43 = vld [vmem:[%s8391_s24] ss:$0 sm:$0xff]  ;;  %s6159_s24 = smov 64  }
 0x40b   : > { %v1631_v51 = vpack.c.bf16 %v1625_v47, %v1624_v50  ;;  %v1611_v53 = vmul.f32 %v4497_v12, %v1596_v26 }
 0x40c   : > { %4744 = vmatmul.mubr.msk.bf16.gmra.mrb[4].mxu0 %vm1480_vm2, %v1630_v41  ;;  %v1627_v54 = vadd.f32 %v4498_v21, %v1612_v52  ;;  %v1613_v58 = vmul.f32 %v4497_v12, %v1598_v55  ;;  %v1410_v41 = vld [vmem:[%s8392_s11 + $0x38] sm:$0xff] }
 0x40d   : > { %4747 = vmatprep.mubr.msk.bf16.mxu0 %vm6150_vm3, %v8301_v49  ;;  %v1626_v56 = vadd.f32 %v4498_v21, %v1611_v53 }
 0x40e   : > { %v1628_v35 = vadd.f32 %v4498_v21, %v1613_v58 }
 0x40f   : > { %v1632_v57 = vpack.c.bf16 %v1627_v54, %v1626_v56 }
 0x410   : > { %v1633_v36 = vpack.c.bf16 %v1628_v35, %v1628_v35 }
 0x414   : > { %4748 = vmatmul.mubr.msk.bf16.gmra.mrb[8].mxu0 %vm1480_vm2, %v1631_v51 }
 0x415   : > { %4751 = vmatprep.mubr.msk.bf16.mxu0 %vm6150_vm3, %v8301_v49 }
 0x41c   : > { %4752 = vmatmul.mubr.msk.bf16.gmra.mrb[12].mxu0 %vm1480_vm2, %v1632_v57 }
 0x41d   : > { %4755 = vmatprep.mubr.msk.bf16.mxu0 %vm6150_vm3, %v8301_v49 }
 0x424   : > { %4756 = vmatmul.mubr.msk.bf16.gmra.mrb[16].mxu0 %vm1480_vm2, %v1633_v36 }
 0x425   : > { %4799 = vmatprep.mubr.msk.bf16.mxu0 %vm6150_vm3, %v8301_v49 }
 0x4d7   : > { %v1706_v60 = vpop.f32.mrb[0].mxu0 }
 0x4d8   : > { %v4741_v61 = vpop.f32.mrb[1].mxu0  ;;  %v1707_v63 = vadd.f32 %v4499_v43, %v1706_v60 }
 0x4d9   : > { %v1709_v62 = vpop.f32.mrb[2].mxu0 }
 0x4da   : > { %v1710_v0 = vadd.f32 %v4499_v43, %v1709_v62  ;;  %v4742_v1 = vpop.f32.mrb[3].mxu0 }
 0x4dc   : > { %v6977_v2 = vpack.c.bf16 %v1710_v0, %v1707_v63 }
 0x4de   : > { %1754 = vrot.lane.b32.xlu0 %v6977_v2, %s6152_s10 }
 0x4df   : > { %v1714_v3 = vpop.f32.mrb[4].mxu0 }
 0x4e0   : > { %v4745_v4 = vpop.f32.mrb[5].mxu0  ;;  %v1715_v6 = vadd.f32 %v4499_v43, %v1714_v3 }
 0x4e1   : > { %v1717_v5 = vpop.f32.mrb[6].mxu0 }
 0x4e2   : > { %v1718_v9 = vadd.f32 %v4499_v43, %v1717_v5  ;;  %v4746_v10 = vpop.f32.mrb[7].mxu0 }
 0x4e4   : > { %v6981_v11 = vpack.c.bf16 %v1718_v9, %v1715_v6 }
 0x4e6   : > { %1756 = vrot.lane.b32.xlu1 %v6981_v11, %s6152_s10 }
 0x4e7   : > { %v1722_v12 = vpop.f32.mrb[8].mxu0 }
 0x4e8   : > { %v4749_v13 = vpop.f32.mrb[9].mxu0  ;;  %v1723_v17 = vadd.f32 %v4499_v43, %v1722_v12 }
 0x4e9   : > { %v1725_v14 = vpop.f32.mrb[10].mxu0 }
 0x4ea   : > { %v1726_v18 = vadd.f32 %v4499_v43, %v1725_v14  ;;  %v4750_v19 = vpop.f32.mrb[11].mxu0 }
 0x4ec   : > { %v6985_v20 = vpack.c.bf16 %v1726_v18, %v1723_v17 }
 0x4ee   : > { %1758 = vrot.lane.b32.xlu1 %v6985_v20, %s6152_s10 }
 0x4ef   : > { %v1730_v21 = vpop.f32.mrb[12].mxu0 }
 0x4f0   : > { %v4753_v22 = vpop.f32.mrb[13].mxu0  ;;  %v1731_v24 = vadd.f32 %v4499_v43, %v1730_v21 }
 0x4f1   : > { %v1733_v23 = vpop.f32.mrb[14].mxu0 }
 0x4f2   : > { %v1734_v27 = vadd.f32 %v4499_v43, %v1733_v23  ;;  %v4754_v28 = vpop.f32.mrb[15].mxu0 }
 0x4f4   : > { %v6989_v7 = vpack.c.bf16 %v1734_v27, %v1731_v24 }
 0x4f6   : > { %1760 = vrot.lane.b32.xlu1 %v6989_v7, %s6152_s10 }
 0x4f7   : > { %v1738_v29 = vpop.f32.mrb[16].mxu0 }
 0x4f8   : > { %v1739_v30 = vadd.f32 %v4499_v43, %v1738_v29  ;;  %v4757_v31 = vpop.f32.mrb[17].mxu0 }
 0x4f9   : > { %v1741_v32 = vpop.f32.mrb[18].mxu0 }
 0x4fa   : > { %v6993_v33 = vpack.c.bf16 %v1739_v30, %v1739_v30  ;;  %2105 = vrot.lane.b32.xlu1 %v6977_v2, %s6153_s6  ;;  %v4758_v15 = vpop.f32.mrb[19].mxu0 }
 0x4fc   : > { %1762 = vrot.lane.b32.xlu0 %v6993_v33, %s6152_s10  ;;  %s6160_s10 = smov 56  }
 0x4fe   : > { %2109 = vrot.lane.b32.xlu1 %v6985_v20, %s6153_s6 }
 0x500   : > { %2107 = vrot.lane.b32.xlu0 %v6981_v11, %s6153_s6 }
 0x502   : > { %2113 = vrot.lane.b32.xlu1 %v6993_v33, %s6153_s6 }
 0x504   : > { %2111 = vrot.lane.b32.xlu0 %v6989_v7, %s6153_s6  ;;  %s6161_s6 = smov 48  }
 0x506   : > { %2453 = vrot.lane.b32.xlu1 %v6977_v2, %s6154_s12 }
 0x508   : > { %2095 = vrot.lane.b32.xlu0 %v6977_v2, %s6155_s4 }
 0x50a   : > { %2455 = vrot.lane.b32.xlu1 %v6981_v11, %s6154_s12 }
 0x50c   : > { %2097 = vrot.lane.b32.xlu0 %v6981_v11, %s6155_s4 }
 0x50e   : > { %2457 = vrot.lane.b32.xlu1 %v6985_v20, %s6154_s12 }
 0x510   : > { %2099 = vrot.lane.b32.xlu0 %v6985_v20, %s6155_s4 }
 0x512   : > { %2459 = vrot.lane.b32.xlu1 %v6989_v7, %s6154_s12 }
 0x514   : > { %2101 = vrot.lane.b32.xlu0 %v6989_v7, %s6155_s4 }
 0x516   : > { %2461 = vrot.lane.b32.xlu1 %v6993_v33, %s6154_s12  ;;  %s6162_s12 = smov 40  }
 0x518   : > { %2103 = vrot.lane.b32.xlu0 %v6993_v33, %s6155_s4  ;;  %s6163_s4 = smov 8  }
 0x51a   : > { %2801 = vrot.lane.b32.xlu1 %v6977_v2, %s6156_s8 }
 0x51c   : > { %2443 = vrot.lane.b32.xlu0 %v6977_v2, %s6157_s16 }
 0x51e   : > { %2803 = vrot.lane.b32.xlu1 %v6981_v11, %s6156_s8 }
 0x520   : > { %2445 = vrot.lane.b32.xlu0 %v6981_v11, %s6157_s16 }
 0x522   : > { %2805 = vrot.lane.b32.xlu1 %v6985_v20, %s6156_s8 }
 0x524   : > { %2447 = vrot.lane.b32.xlu0 %v6985_v20, %s6157_s16 }
 0x526   : > { %2807 = vrot.lane.b32.xlu1 %v6989_v7, %s6156_s8 }
 0x528   : > { %2449 = vrot.lane.b32.xlu0 %v6989_v7, %s6157_s16 }
 0x52a   : > { %2809 = vrot.lane.b32.xlu1 %v6993_v33, %s6156_s8  ;;  %s6164_s8 = smov 16  }
 0x52c   : > { %2451 = vrot.lane.b32.xlu0 %v6993_v33, %s6157_s16  ;;  %s8402_s16 = scalar_lea.vmem [#allocation14], %s6764_s1 }
 0x52e   : > { %2793 = vrot.lane.b32.xlu1 %v6981_v11, %s6158_s7 }
 0x530   : > { %2791 = vrot.lane.b32.xlu0 %v6977_v2, %s6158_s7 }
 0x532   : > { %2797 = vrot.lane.b32.xlu1 %v6989_v7, %s6158_s7 }
 0x534   : > { %2795 = vrot.lane.b32.xlu0 %v6985_v20, %s6158_s7 }
 0x536   : > { %1413 = vperm.xlu1 %5297, %v1403_v34  }
 0x538   : > { %2799 = vrot.lane.b32.xlu0 %v6993_v33, %s6158_s7  ;;  %s8404_s7 = scalar_lea.vmem [#allocation16], %s6764_s1 }
 0x53a   : > { %1419 = vperm.xlu1 %5297, %v1405_v37  }
 0x53c   : > { %1416 = vperm.xlu0 %5298, %v1404_v38  }
 0x53e   : > { %1422 = vperm.xlu1 %5297, %v1406_v39  }
 0x540   : > { %1425 = vperm.xlu0 %5298, %v1407_v40  }
 0x542   : > { %1428 = vperm.xlu1 %5297, %v1408_v8  }
 0x544   : > { %1431 = vperm.xlu0 %5298, %v1409_v16  }
 0x546   : > { %1434 = vperm.xlu1 %5297, %v1410_v41  }
 0x548   : > { %1437 = vperm.xlu0 %5298, %v1411_v42  }
 0x54a   : > { %1990 = vrot.lane.b32.xlu1 %v6977_v2, %s6159_s24 }
 0x54c   : > { %1992 = vrot.lane.b32.xlu0 %v6981_v11, %s6159_s24 }
 0x54e   : > { %1994 = vrot.lane.b32.xlu1 %v6985_v20, %s6159_s24 }
 0x550   : > { %v1755_v44 = vpop.permute.xlu0 %1754  ;;  %1996 = vrot.lane.b32.xlu0 %v6989_v7, %s6159_s24 }
 0x551   : > { %v1781_v45 = vsel %vm1764_vm4, %v1755_v44, 0  ;;  %v7181_v44 = vld [vmem:[#allocation6] ss:$0 sm:$0xff] }
 0x552   : > { %4760 = vmatpush3.bf16.xpose.msra.mxu1 %v1781_v45  ;;  %2339 = vrot.lane.b32.xlu1 %v6977_v2, %s6160_s10 }
 0x553   : > { %4761 = vmatprep.subr.bf16.mxu1 %v8301_v49 }
 0x554   : > { %2341 = vrot.lane.b32.xlu0 %v6981_v11, %s6160_s10 }
 0x556   : > { %2343 = vrot.lane.b32.xlu1 %v6985_v20, %s6160_s10 }
 0x558   : > { %v1757_v46 = vpop.permute.xlu1 %1756  ;;  %2345 = vrot.lane.b32.xlu0 %v6989_v7, %s6160_s10 }
 0x559   : > { %v1784_v47 = vsel %vm1764_vm4, %v1757_v46, 0  ;;  %v7183_v46 = vld [vmem:[#allocation3] ss:$0 sm:$0xff] }
 0x55a   : > { %4762 = vmatpush3.bf16.xpose.msra.mxu1 %v1784_v47  ;;  %2691 = vrot.lane.b32.xlu1 %v6985_v20, %s6161_s6 }
 0x55b   : > { %4763 = vmatprep.subr.bf16.mxu1 %v8301_v49 }
 0x55c   : > { %2687 = vrot.lane.b32.xlu0 %v6977_v2, %s6161_s6 }
 0x55e   : > { %2693 = vrot.lane.b32.xlu1 %v6989_v7, %s6161_s6 }
 0x560   : > { %v1759_v48 = vpop.permute.xlu1 %1758  ;;  %2689 = vrot.lane.b32.xlu0 %v6981_v11, %s6161_s6 }
 0x561   : > { %v1787_v50 = vsel %vm1764_vm4, %v1759_v48, 0 }
 0x562   : > { %4764 = vmatpush3.bf16.xpose.msra.mxu1 %v1787_v50  ;;  %2347 = vrot.lane.b32.xlu1 %v6993_v33, %s6160_s10 }
 0x563   : > { %4765 = vmatprep.subr.bf16.mxu1 %v8301_v49 }
 0x564   : > { %1998 = vrot.lane.b32.xlu0 %v6993_v33, %s6159_s24 }
 0x568   : > { %v1761_v26 = vpop.permute.xlu1 %1760 }
 0x569   : > { %v1790_v51 = vsel %vm1764_vm4, %v1761_v26, 0 }
 0x56a   : > { %4766 = vmatpush3.bf16.xpose.msra.mxu1 %v1790_v51 }
 0x56b   : > { %4767 = vmatprep.subr.bf16.mxu1 %v8301_v49 }
 0x56c   : > { %v2106_v52 = vpop.permute.xlu1 %2105 }
 0x56d   : > { %v2131_v35 = vsel %vm1764_vm4, %v2106_v52, 0 }
 0x56e   : > { %v1763_v25 = vpop.permute.xlu0 %1762 }
 0x56f   : > { %v1793_v54 = vsel %vm1764_vm4, %v1763_v25, 0 }
 0x570   : > { %v2110_v53 = vpop.permute.xlu1 %2109 }
 0x571   : > { %v2137_v3 = vsel %vm1764_vm4, %v2110_v53, 0 }
 0x572   : > { %4768 = vmatpush3.bf16.xpose.msra.mxu1 %v1793_v54  ;;  %v2108_v55 = vpop.permute.xlu0 %2107 }
 0x573   : > { %4819 = vmatprep.subr.bf16.mxu1 %v8301_v49  ;;  %v2134_v61 = vsel %vm1764_vm4, %v2108_v55, 0 }
 0x574   : > { %v2114_v56 = vpop.permute.xlu1 %2113 }
 0x575   : > { %v2143_v13 = vsel %vm1764_vm4, %v2114_v56, 0 }
 0x576   : > { %v2112_v57 = vpop.permute.xlu0 %2111 }
 0x577   : > { %v2140_v9 = vsel %vm1764_vm4, %v2112_v57, 0 }
 0x578   : > { %v2454_v58 = vpop.permute.xlu1 %2453 }
 0x579   : > { %4770 = vmatmul.mubr.msk.bf16.vlgmr.msra.gmra.mrb[0].mxu1 %vm1764_vm4, %v6977_v2  ;;  %v2479_v21 = vsel %vm1764_vm4, %v2454_v58, 0 }
 0x57a   : > { %4820 = vmatpush3.bf16.xpose.msra.mxu1 %v2131_v35  ;;  %v2096_v36 = vpop.permute.xlu0 %2095  ;;  %4773 = vmatprep.mubr.msk.bf16.mxu1 %vm6150_vm3, %v8301_v49 }
 0x57b   : > { %4821 = vmatprep.subr.bf16.mxu1 %v8301_v49 }
 0x57c   : > { %v2456_v59 = vpop.permute.xlu1 %2455 }
 0x57d   : > { %v2482_v24 = vsel %vm1764_vm4, %v2456_v59, 0 }
 0x57e   : > { %v2098_v43 = vpop.permute.xlu0 %2097 }
 0x580   : > { %v2458_v60 = vpop.permute.xlu1 %2457 }
 0x581   : > { %4774 = vmatmul.mubr.msk.bf16.gmra.mrb[4].mxu1 %vm1764_vm4, %v6981_v11  ;;  %v2485_v29 = vsel %vm1764_vm4, %v2458_v60, 0 }
 0x582   : > { %4822 = vmatpush3.bf16.xpose.msra.mxu1 %v2134_v61  ;;  %v2100_v62 = vpop.permute.xlu0 %2099  ;;  %4777 = vmatprep.mubr.msk.bf16.mxu1 %vm6150_vm3, %v8301_v49 }
 0x583   : > { %4823 = vmatprep.subr.bf16.mxu1 %v8301_v49 }
 0x584   : > { %v2460_v63 = vpop.permute.xlu1 %2459 }
 0x585   : > { %v2488_v34 = vsel %vm1764_vm4, %v2460_v63, 0 }
 0x586   : > { %v2102_v0 = vpop.permute.xlu0 %2101 }
 0x588   : > { %v2462_v1 = vpop.permute.xlu1 %2461 }
 0x589   : > { %4778 = vmatmul.mubr.msk.bf16.gmra.mrb[8].mxu1 %vm1764_vm4, %v6985_v20  ;;  %v2491_v8 = vsel %vm1764_vm4, %v2462_v1, 0 }
 0x58a   : > { %4824 = vmatpush3.bf16.xpose.msra.mxu1 %v2137_v3  ;;  %v2104_v4 = vpop.permute.xlu0 %2103  ;;  %4781 = vmatprep.mubr.msk.bf16.mxu1 %vm6150_vm3, %v8301_v49 }
 0x58b   : > { %4825 = vmatprep.subr.bf16.mxu1 %v8301_v49 }
 0x58c   : > { %v2802_v5 = vpop.permute.xlu1 %2801 }
 0x58d   : > { %v2827_v47 = vsel %vm1764_vm4, %v2802_v5, 0 }
 0x58e   : > { %v7100_v6 = vpop.permute.xlu0 %2443 }
 0x590   : > { %v7107_v10 = vpop.permute.xlu1 %2803 }
 0x591   : > { %4782 = vmatmul.mubr.msk.bf16.gmra.mrb[12].mxu1 %vm1764_vm4, %v6989_v7  ;;  %v2830_v52 = vsel %vm1764_vm4, %v7107_v10, 0 }
 0x592   : > { %4826 = vmatpush3.bf16.xpose.msra.mxu1 %v2140_v9  ;;  %4785 = vmatprep.mubr.msk.bf16.mxu1 %vm6150_vm3, %v8301_v49  ;;  %v7109_v12 = vpop.permute.xlu0 %2445 }
 0x593   : > { %4827 = vmatprep.subr.bf16.mxu1 %v8301_v49 }
 0x594   : > { %v7113_v14 = vpop.permute.xlu1 %2805 }
 0x595   : > { %v2833_v55 = vsel %vm1764_vm4, %v7113_v14, 0 }
 0x596   : > { %v7115_v17 = vpop.permute.xlu0 %2447 }
 0x598   : > { %v7122_v18 = vpop.permute.xlu1 %2807 }
 0x599   : > { %4786 = vmatmul.mubr.msk.bf16.gmra.mrb[16].mxu1 %vm1764_vm4, %v6993_v33  ;;  %v2836_v58 = vsel %vm1764_vm4, %v7122_v18, 0 }
 0x59a   : > { %4828 = vmatpush3.bf16.xpose.msra.mxu1 %v2143_v13  ;;  %4829 = vmatprep.mubr.msk.bf16.mxu1 %vm6150_vm3, %v8301_v49  ;;  %v7124_v19 = vpop.permute.xlu0 %2449 }
 0x59b   : > { %4879 = vmatprep.subr.bf16.mxu1 %v8301_v49 }
 0x59c   : > { %v7131_v22 = vpop.permute.xlu1 %2809 }
 0x59d   : > { %v2839_v59 = vsel %vm1764_vm4, %v7131_v22, 0 }
 0x59e   : > { %v7133_v23 = vpop.permute.xlu0 %2451 }
 0x5a0   : > { %v7139_v27 = vpop.permute.xlu1 %2793 }
 0x5a1   : > { %4830 = vmatmul.mubr.msk.bf16.vlgmr.msra.gmra.mrb[20].mxu1 %vm1764_vm4, %v2096_v36 }
 0x5a2   : > { %4880 = vmatpush3.bf16.xpose.msra.mxu1 %v2479_v21  ;;  %4833 = vmatprep.mubr.msk.bf16.mxu1 %vm6150_vm3, %v8301_v49  ;;  %v7141_v28 = vpop.permute.xlu0 %2791 }
 0x5a3   : > { %4881 = vmatprep.subr.bf16.mxu1 %v8301_v49 }
 0x5a4   : > { %v7145_v30 = vpop.permute.xlu1 %2797 }
 0x5a6   : > { %v7147_v31 = vpop.permute.xlu0 %2795 }
 0x5a9   : > { %4834 = vmatmul.mubr.msk.bf16.gmra.mrb[24].mxu1 %vm1764_vm4, %v2098_v43 }
 0x5aa   : > { %4882 = vmatpush3.bf16.xpose.msra.mxu1 %v2482_v24  ;;  %4837 = vmatprep.mubr.msk.bf16.mxu1 %vm6150_vm3, %v8301_v49  ;;  %v7155_v15 = vpop.permute.xlu0 %2799 }
 0x5ab   : > { %4883 = vmatprep.subr.bf16.mxu1 %v8301_v49 }
 0x5b1   : > { %4838 = vmatmul.mubr.msk.bf16.gmra.mrb[28].mxu1 %vm1764_vm4, %v2100_v62 }
 0x5b2   : > { %4884 = vmatpush3.bf16.xpose.msra.mxu1 %v2485_v29  ;;  %4841 = vmatprep.mubr.msk.bf16.mxu1 %vm6150_vm3, %v8301_v49 }
 0x5b3   : > { %4885 = vmatprep.subr.bf16.mxu1 %v8301_v49 }
 0x5b5   : > { %v7153_v32 = vpop.permute.xlu1 %1413 }
 0x5b6   : > { %vm1451_vm7 = vcmp.eq.s32.totalorder %v7153_v32, %v7181_v44 }
 0x5b7   : > { %v7262_v43 = vsel %vm1451_vm7, %v7183_v46, -1e+09 }
 0x5b9   : > { %4842 = vmatmul.mubr.msk.bf16.gmra.mrb[32].mxu1 %vm1764_vm4, %v2102_v0  ;;  %v7159_v37 = vpop.permute.xlu1 %1419 }
 0x5ba   : > { %4886 = vmatpush3.bf16.xpose.msra.mxu1 %v2488_v34  ;;  %4845 = vmatprep.mubr.msk.bf16.mxu1 %vm6150_vm3, %v8301_v49  ;;  %vm1453_vm10 = vcmp.eq.s32.totalorder %v7159_v37, %v7181_v44 }
 0x5bb   : > { %v7163_v38 = vpop.permute.xlu0 %1416  ;;  %4887 = vmatprep.subr.bf16.mxu1 %v8301_v49  ;;  %v7282_v10 = vsel %vm1453_vm10, %v7183_v46, -1e+09 }
 0x5bc   : > { %vm1452_vm8 = vcmp.eq.s32.totalorder %v7163_v38, %v7181_v44 }
 0x5bd   : > { %v7166_v39 = vpop.permute.xlu1 %1422  ;;  %v7265_v63 = vsel %vm1452_vm8, %v7183_v46, -1e+09 }
 0x5be   : > { %vm1454_vm11 = vcmp.eq.s32.totalorder %v7166_v39, %v7181_v44 }
 0x5bf   : > { %v7168_v40 = vpop.permute.xlu0 %1425 }
 0x5c0   : > { %vm1455_vm12 = vcmp.eq.s32.totalorder %v7168_v40, %v7181_v44 }
 0x5c1   : > { %4846 = vmatmul.mubr.msk.bf16.gmra.mrb[36].mxu1 %vm1764_vm4, %v2104_v4  ;;  %v7172_v16 = vpop.permute.xlu1 %1428 }
 0x5c2   : > { %4888 = vmatpush3.bf16.xpose.msra.mxu1 %v2491_v8  ;;  %4889 = vmatprep.mubr.msk.bf16.mxu1 %vm6150_vm3, %v8301_v49  ;;  %vm1456_vm13 = vcmp.eq.s32.totalorder %v7172_v16, %v7181_v44 }
 0x5c3   : > { %v7176_v41 = vpop.permute.xlu0 %1431  ;;  %4939 = vmatprep.subr.bf16.mxu1 %v8301_v49  ;;  %v7308_v38 = vsel %vm1456_vm13, %v7183_v46, -1e+09 }
 0x5c4   : > { %vm1457_vm14 = vcmp.eq.s32.totalorder %v7176_v41, %v7181_v44 }
 0x5c5   : > { %v7179_v42 = vpop.permute.xlu1 %1434 }
 0x5c6   : > { %vm1458_vm15 = vcmp.eq.s32.totalorder %v7179_v42, %v7181_v44 }
 0x5c7   : > { %v1438_v45 = vpop.permute.xlu0 %1437  ;;  %v7328_v41 = vsel %vm1458_vm15, %v7183_v46, -1e+09 }
 0x5c8   : > { %vm1459_vm5 = vcmp.eq.s32.totalorder %v1438_v45, %v7181_v44 }
 0x5c9   : > { %v7188_v48 = vsel %vm1459_vm5, %v7183_v46, -1e+09  ;;  %4890 = vmatmul.mubr.msk.bf16.vlgmr.msra.gmra.mrb[40].mxu1 %vm1764_vm4, %v7100_v6  ;;  %v1991_v50 = vpop.permute.xlu1 %1990 }
 0x5ca   : > { %4790 = vmatpush3.bf16.msra.mxu0 %v1991_v50  ;;  %4940 = vmatpush3.bf16.xpose.msra.mxu1 %v2827_v47  ;;  %v7322_v50 = vsel %vm1457_vm14, %v7183_v46, -1e+09 }
 0x5cb   : > { %v1993_v26 = vpop.permute.xlu0 %1992  ;;  %4791 = vmatprep.subr.bf16.mxu0 %v8301_v49  ;;  %4893 = vmatprep.mubr.msk.bf16.mxu1 %vm6150_vm3, %v8301_v49 }
 0x5cc   : > { %4941 = vmatprep.subr.bf16.mxu1 %v8301_v49 }
 0x5cd   : > { %v1995_v25 = vpop.permute.xlu1 %1994 }
 0x5ce   : > { %4792 = vmatpush3.bf16.msra.mxu0 %v1993_v26 }
 0x5cf   : > { %v1997_v51 = vpop.permute.xlu0 %1996  ;;  %4793 = vmatprep.subr.bf16.mxu0 %v8301_v49 }
 0x5d1   : > { %4894 = vmatmul.mubr.msk.bf16.gmra.mrb[44].mxu1 %vm1764_vm4, %v7109_v12 }
 0x5d2   : > { %4794 = vmatpush3.bf16.msra.mxu0 %v1995_v25  ;;  %4942 = vmatpush3.bf16.xpose.msra.mxu1 %v2830_v52 }
 0x5d3   : > { %v7201_v53 = vpop.permute.xlu0 %2341  ;;  %4795 = vmatprep.subr.bf16.mxu0 %v8301_v49  ;;  %4897 = vmatprep.mubr.msk.bf16.mxu1 %vm6150_vm3, %v8301_v49 }
 0x5d4   : > { %4943 = vmatprep.subr.bf16.mxu1 %v8301_v49 }
 0x5d6   : > { %4796 = vmatpush3.bf16.msra.mxu0 %v1997_v51 }
 0x5d7   : > { %v7207_v54 = vpop.permute.xlu0 %2345  ;;  %4797 = vmatprep.subr.bf16.mxu0 %v8301_v49 }
 0x5d9   : > { %4898 = vmatmul.mubr.msk.bf16.gmra.mrb[48].mxu1 %vm1764_vm4, %v7115_v17  ;;  %v7285_v17 = vsel %vm1454_vm11, %v7183_v46, -1e+09 }
 0x5da   : > { %4944 = vmatpush3.bf16.xpose.msra.mxu1 %v2833_v55  ;;  %4901 = vmatprep.mubr.msk.bf16.mxu1 %vm6150_vm3, %v8301_v49 }
 0x5db   : > { %v7216_v56 = vpop.permute.xlu0 %2687  ;;  %4945 = vmatprep.subr.bf16.mxu1 %v8301_v49 }
 0x5df   : > { %v7219_v57 = vpop.permute.xlu0 %2689 }
 0x5e1   : > { %4902 = vmatmul.mubr.msk.bf16.gmra.mrb[52].mxu1 %vm1764_vm4, %v7124_v19 }
 0x5e2   : > { %4946 = vmatpush3.bf16.xpose.msra.mxu1 %v2836_v58  ;;  %4905 = vmatprep.mubr.msk.bf16.mxu1 %vm6150_vm3, %v8301_v49 }
 0x5e3   : > { %v1999_v35 = vpop.permute.xlu0 %1998  ;;  %4947 = vmatprep.subr.bf16.mxu1 %v8301_v49 }
 0x5e4   : > { %v2021_v36 = vsel %vm2019_vm6, %v1999_v35, 0 }
 0x5e5   : > { %4798 = vmatpush3.bf16.msra.mxu0 %v2021_v36 }
 0x5e6   : > { %4849 = vmatprep.subr.bf16.mxu0 %v8301_v49 }
 0x5e9   : > { %4906 = vmatmul.mubr.msk.bf16.gmra.mrb[56].mxu1 %vm1764_vm4, %v7133_v23 }
 0x5ea   : > { %4948 = vmatpush3.bf16.xpose.msra.mxu1 %v2839_v59  ;;  %4949 = vmatprep.mubr.msk.bf16.mxu1 %vm6150_vm3, %v8301_v49 }
 0x5eb   : > { %5101 = vmatprep.subr.bf16.mxu1 %v8301_v49 }
 0x5f1   : > { %4950 = vmatmul.mubr.msk.bf16.vlgmr.msra.gmra.mrb[60].mxu1 %vm1764_vm4, %v7141_v28 }
 0x5f2   : > { %4953 = vmatprep.mubr.msk.bf16.mxu1 %vm6150_vm3, %v8301_v49 }
 0x5f9   : > { %4954 = vmatmul.mubr.msk.bf16.gmra.mrb[64].mxu1 %vm1764_vm4, %v7139_v27 }
 0x5fa   : > { %4957 = vmatprep.mubr.msk.bf16.mxu1 %vm6150_vm3, %v8301_v49 }
 0x601   : > { %4958 = vmatmul.mubr.msk.bf16.gmra.mrb[68].mxu1 %vm1764_vm4, %v7147_v31  ;;  %v7302_v31 = vsel %vm1455_vm12, %v7183_v46, -1e+09 }
 0x602   : > { %4961 = vmatprep.mubr.msk.bf16.mxu1 %vm6150_vm3, %v8301_v49 }
 0x609   : > { %4962 = vmatmul.mubr.msk.bf16.gmra.mrb[72].mxu1 %vm1764_vm4, %v7145_v30 }
 0x60a   : > { %4965 = vmatprep.mubr.msk.bf16.mxu1 %vm6150_vm3, %v8301_v49 }
 0x611   : > { %4966 = vmatmul.mubr.msk.bf16.gmra.mrb[76].mxu1 %vm1764_vm4, %v7155_v15 }
 0x612   : > { %5011 = vmatprep.mubr.msk.bf16.mxu1 %vm6150_vm3, %v8301_v49 }
 0x64c   : > { %v1829_v60 = vpop.f32.mrb[0].mxu1 }
 0x64d   : > { %v1867_v61 = vmul.f32 0.35355338, %v1829_v60  ;;  %v4771_v62 = vpop.f32.mrb[1].mxu1 }
 0x64e   : > { %v1832_v0 = vpop.f32.mrb[2].mxu1 }
 0x64f   : > { %v1868_v1 = vmul.f32 0.35355338, %v1832_v0  ;;  %v4772_v3 = vpop.f32.mrb[3].mxu1  ;;  %v7268_v4 = vadd.f32 %v1867_v61, %v7262_v43 }
 0x651   : > { %v1886_v5 = vsel %vm1885_vm9, %v7268_v4, -inf  ;;  %v7275_v6 = vadd.f32 %v1868_v1, %v7265_v63 }
 0x652   : > { %1887 = vmax.xlane.f32.xlu1 %v1886_v5 }
 0x653   : > { %v1889_v9 = vsel %vm1885_vm9, %v7275_v6, -inf }
 0x654   : > { %v1837_v12 = vpop.f32.mrb[4].mxu1  ;;  %1890 = vmax.xlane.f32.xlu0 %v1889_v9 }
 0x655   : > { %v1869_v13 = vmul.f32 0.35355338, %v1837_v12  ;;  %v4775_v14 = vpop.f32.mrb[5].mxu1 }
 0x656   : > { %v1840_v18 = vpop.f32.mrb[6].mxu1 }
 0x657   : > { %v1870_v19 = vmul.f32 0.35355338, %v1840_v18  ;;  %v4776_v21 = vpop.f32.mrb[7].mxu1  ;;  %v7288_v22 = vadd.f32 %v1869_v13, %v7282_v10 }
 0x659   : > { %v1892_v23 = vsel %vm1885_vm9, %v7288_v22, -inf  ;;  %v7293_v24 = vadd.f32 %v1870_v19, %v7285_v17 }
 0x65a   : > { %1893 = vmax.xlane.f32.xlu0 %v1892_v23 }
 0x65b   : > { %v1895_v30 = vsel %vm1885_vm9, %v7293_v24, -inf }
 0x65c   : > { %v1845_v27 = vpop.f32.mrb[8].mxu1 }
 0x65d   : > { %v1871_v28 = vmul.f32 0.35355338, %v1845_v27  ;;  %v4779_v29 = vpop.f32.mrb[9].mxu1 }
 0x65e   : > { %v1848_v32 = vpop.f32.mrb[10].mxu1  ;;  %1896 = vmax.xlane.f32.xlu0 %v1895_v30 }
 0x65f   : > { %v1872_v15 = vmul.f32 0.35355338, %v1848_v32  ;;  %v4780_v34 = vpop.f32.mrb[11].mxu1  ;;  %v7305_v37 = vadd.f32 %v1871_v28, %v7302_v31 }
 0x661   : > { %v1898_v39 = vsel %vm1885_vm9, %v7305_v37, -inf  ;;  %v7313_v40 = vadd.f32 %v1872_v15, %v7308_v38 }
 0x662   : > { %1899 = vmax.xlane.f32.xlu1 %v1898_v39 }
 0x663   : > { %v1901_v8 = vsel %vm1885_vm9, %v7313_v40, -inf }
 0x664   : > { %v1853_v16 = vpop.f32.mrb[12].mxu1  ;;  %1902 = vmax.xlane.f32.xlu0 %v1901_v8 }
 0x665   : > { %v1873_v45 = vmul.f32 0.35355338, %v1853_v16  ;;  %v4783_v47 = vpop.f32.mrb[13].mxu1 }
 0x666   : > { %v1856_v26 = vpop.f32.mrb[14].mxu1 }
 0x667   : > { %v1874_v51 = vmul.f32 0.35355338, %v1856_v26  ;;  %v4784_v52 = vpop.f32.mrb[15].mxu1  ;;  %v7325_v25 = vadd.f32 %v1873_v45, %v7322_v50 }
 0x669   : > { %v1904_v55 = vsel %vm1885_vm9, %v7325_v25, -inf  ;;  %v7333_v58 = vadd.f32 %v1874_v51, %v7328_v41 }
 0x66a   : > { %1905 = vmax.xlane.f32.xlu1 %v1904_v55 }
 0x66b   : > { %v1907_v42 = vsel %vm1885_vm9, %v7333_v58, -inf }
 0x66c   : > { %v1861_v44 = vpop.f32.mrb[16].mxu1  ;;  %1908 = vmax.xlane.f32.xlu0 %v1907_v42 }
 0x66d   : > { %v4787_v35 = vpop.f32.mrb[17].mxu1  ;;  %v1875_v29 = vmul.f32 0.35355338, %v1861_v44 }
 0x66e   : > { %v1864_v36 = vpop.f32.mrb[18].mxu1 }
 0x66f   : > { %v4788_v59 = vpop.f32.mrb[19].mxu1  ;;  %v7342_v34 = vadd.f32 %v1875_v29, %v7188_v48 }
 0x671   : > { %v1910_v51 = vsel %vm1885_vm9, %v7342_v34, -inf }
 0x674   : > { %v2179_v60 = vpop.f32.mrb[20].mxu1 }
 0x675   : > { %v4831_v61 = vpop.f32.mrb[21].mxu1  ;;  %v2217_v32 = vmul.f32 0.35355338, %v2179_v60 }
 0x676   : > { %v2182_v62 = vpop.f32.mrb[22].mxu1 }
 0x677   : > { %v4832_v46 = vpop.f32.mrb[23].mxu1  ;;  %v2218_v15 = vmul.f32 0.35355338, %v2182_v62  ;;  %v7345_v16 = vadd.f32 %v2217_v32, %v7262_v43 }
 0x679   : > { %v7350_v52 = vadd.f32 %v2218_v15, %v7265_v63  ;;  %v2235_v44 = vsel %vm1885_vm9, %v7345_v16, -inf }
 0x67b   : > { %3035 = vrot.lane.b32.xlu1 %v6977_v2, %s6162_s12  ;;  %v2238_v59 = vsel %vm1885_vm9, %v7350_v52, -inf }
 0x67c   : > { %v2187_v0 = vpop.f32.mrb[24].mxu1 }
 0x67d   : > { %v4835_v1 = vpop.f32.mrb[25].mxu1  ;;  %v2219_v39 = vmul.f32 0.35355338, %v2187_v0 }
 0x67e   : > { %v2190_v3 = vpop.f32.mrb[26].mxu1 }
 0x67f   : > { %v4836_v5 = vpop.f32.mrb[27].mxu1  ;;  %v2220_v47 = vmul.f32 0.35355338, %v2190_v3  ;;  %v7355_v35 = vadd.f32 %v2219_v39, %v7282_v10 }
 0x681   : > { %v7360_v60 = vadd.f32 %v2220_v47, %v7285_v17  ;;  %v2241_v46 = vsel %vm1885_vm9, %v7355_v35, -inf }
 0x682   : > { %2695 = vrot.lane.b32.xlu0 %v6993_v33, %s6161_s6 }
 0x684   : > { %v2195_v9 = vpop.f32.mrb[28].mxu1 }
 0x685   : > { %v4839_v12 = vpop.f32.mrb[29].mxu1  ;;  %v2221_v42 = vmul.f32 0.35355338, %v2195_v9  ;;  %v2244_v9 = vsel %vm1885_vm9, %v7360_v60, -inf }
 0x686   : > { %v2198_v13 = vpop.f32.mrb[30].mxu1 }
 0x687   : > { %v4840_v14 = vpop.f32.mrb[31].mxu1  ;;  %v2222_v36 = vmul.f32 0.35355338, %v2198_v13  ;;  %v7365_v0 = vadd.f32 %v2221_v42, %v7302_v31 }
 0x689   : > { %v7370_v12 = vadd.f32 %v2222_v36, %v7308_v38 }
 0x68c   : > { %v2203_v18 = vpop.f32.mrb[32].mxu1 }
 0x68d   : > { %v4843_v19 = vpop.f32.mrb[33].mxu1  ;;  %v2223_v61 = vmul.f32 0.35355338, %v2203_v18  ;;  %v2247_v18 = vsel %vm1885_vm9, %v7365_v0, -inf }
 0x68e   : > { %v2206_v21 = vpop.f32.mrb[34].mxu1 }
 0x68f   : > { %v4844_v23 = vpop.f32.mrb[35].mxu1  ;;  %v2224_v3 = vmul.f32 0.35355338, %v2206_v21  ;;  %v7375_v19 = vadd.f32 %v2223_v61, %v7322_v50  ;;  %v2250_v21 = vsel %vm1885_vm9, %v7370_v12, -inf }
 0x694   : > { %v2211_v27 = vpop.f32.mrb[36].mxu1 }
 0x695   : > { %v4847_v28 = vpop.f32.mrb[37].mxu1  ;;  %v2225_v14 = vmul.f32 0.35355338, %v2211_v27  ;;  %v2253_v27 = vsel %vm1885_vm9, %v7375_v19, -inf }
 0x696   : > { %v2214_v30 = vpop.f32.mrb[38].mxu1  ;;  %v7380_v28 = vadd.f32 %v2224_v3, %v7328_v41 }
 0x697   : > { %v4848_v2 = vpop.f32.mrb[39].mxu1 }
 0x698   : > { %v7385_v2 = vadd.f32 %v2225_v14, %v7188_v48 }
 0x69c   : > { %v2527_v8 = vpop.f32.mrb[40].mxu1 }
 0x69d   : > { %v4891_v45 = vpop.f32.mrb[41].mxu1  ;;  %v2565_v23 = vmul.f32 0.35355338, %v2527_v8  ;;  %v2256_v8 = vsel %vm1885_vm9, %v7380_v28, -inf }
 0x69e   : > { %v2530_v26 = vpop.f32.mrb[42].mxu1 }
 0x69f   : > { %v4892_v55 = vpop.f32.mrb[43].mxu1  ;;  %1911 = vmax.xlane.f32.xlu1 %v1910_v51  ;;  %v2566_v29 = vmul.f32 0.35355338, %v2530_v26  ;;  %v7390_v45 = vadd.f32 %v2565_v23, %v7262_v43  ;;  %v2259_v51 = vsel %vm1885_vm9, %v7385_v2, -inf }
 0x6a1   : > { %2236 = vmax.xlane.f32.xlu0 %v2235_v44  ;;  %v7395_v55 = vadd.f32 %v2566_v29, %v7265_v63  ;;  %v2583_v36 = vsel %vm1885_vm9, %v7390_v45, -inf }
 0x6a3   : > { %2239 = vmax.xlane.f32.xlu1 %v2238_v59 }
 0x6a4   : > { %v2535_v62 = vpop.f32.mrb[44].mxu1 }
 0x6a5   : > { %v4895_v1 = vpop.f32.mrb[45].mxu1  ;;  %2242 = vmax.xlane.f32.xlu0 %v2241_v46  ;;  %v2567_v15 = vmul.f32 0.35355338, %v2535_v62  ;;  %v2586_v46 = vsel %vm1885_vm9, %v7395_v55, -inf }
 0x6a6   : > { %v2538_v5 = vpop.f32.mrb[46].mxu1 }
 0x6a7   : > { %v4896_v13 = vpop.f32.mrb[47].mxu1  ;;  %2245 = vmax.xlane.f32.xlu1 %v2244_v9  ;;  %v2568_v26 = vmul.f32 0.35355338, %v2538_v5  ;;  %v7398_v42 = vadd.f32 %v2567_v15, %v7282_v10 }
 0x6a9   : > { %2248 = vmax.xlane.f32.xlu0 %v2247_v18  ;;  %v7403_v59 = vadd.f32 %v2568_v26, %v7285_v17  ;;  %v2589_v13 = vsel %vm1885_vm9, %v7398_v42, -inf }
 0x6ab   : > { %2251 = vmax.xlane.f32.xlu1 %v2250_v21  ;;  %v2592_v21 = vsel %vm1885_vm9, %v7403_v59, -inf }
 0x6ac   : > { %v2543_v30 = vpop.f32.mrb[48].mxu1 }
 0x6ad   : > { %v4899_v32 = vpop.f32.mrb[49].mxu1  ;;  %2254 = vmax.xlane.f32.xlu0 %v2253_v27  ;;  %v2569_v44 = vmul.f32 0.35355338, %v2543_v30 }
 0x6ae   : > { %v2546_v39 = vpop.f32.mrb[50].mxu1 }
 0x6af   : > { %v4900_v47 = vpop.f32.mrb[51].mxu1  ;;  %2257 = vmax.xlane.f32.xlu1 %v2256_v8  ;;  %v2570_v61 = vmul.f32 0.35355338, %v2546_v39  ;;  %v7408_v3 = vadd.f32 %v2569_v44, %v7302_v31 }
 0x6b1   : > { %2260 = vmax.xlane.f32.xlu0 %v2259_v51  ;;  %v7413_v18 = vadd.f32 %v2570_v61, %v7308_v38  ;;  %v2595_v30 = vsel %vm1885_vm9, %v7408_v3, -inf }
 0x6b3   : > { %2584 = vmax.xlane.f32.xlu1 %v2583_v36  ;;  %v2598_v15 = vsel %vm1885_vm9, %v7413_v18, -inf }
 0x6b4   : > { %v2551_v62 = vpop.f32.mrb[52].mxu1 }
 0x6b5   : > { %v4903_v1 = vpop.f32.mrb[53].mxu1  ;;  %2587 = vmax.xlane.f32.xlu0 %v2586_v46  ;;  %v2571_v5 = vmul.f32 0.35355338, %v2551_v62  ;;  %v7436_v62 = vpop.permute.xlu1 %2339 }
 0x6b6   : > { %v2554_v9 = vpop.f32.mrb[54].mxu1 }
 0x6b7   : > { %v4904_v14 = vpop.f32.mrb[55].mxu1  ;;  %2590 = vmax.xlane.f32.xlu1 %v2589_v13  ;;  %v2572_v23 = vmul.f32 0.35355338, %v2554_v9  ;;  %v7418_v29 = vadd.f32 %v2571_v5, %v7322_v50 }
 0x6b9   : > { %2593 = vmax.xlane.f32.xlu0 %v2592_v21  ;;  %v7423_v27 = vadd.f32 %v2572_v23, %v7328_v41  ;;  %v2601_v26 = vsel %vm1885_vm9, %v7418_v29, -inf  ;;  %v7441_v21 = vpop.permute.xlu1 %2343 }
 0x6bb   : > { %2596 = vmax.xlane.f32.xlu1 %v2595_v30  ;;  %v2604_v36 = vsel %vm1885_vm9, %v7423_v27, -inf }
 0x6bc   : > { %v2559_v32 = vpop.f32.mrb[56].mxu1 }
 0x6bd   : > { %v2573_v39 = vmul.f32 0.35355338, %v2559_v32  ;;  %v4907_v8 = vpop.f32.mrb[57].mxu1  ;;  %2599 = vmax.xlane.f32.xlu0 %v2598_v15 }
 0x6be   : > { %v2562_v47 = vpop.f32.mrb[58].mxu1 }
 0x6bf   : > { %v7430_v51 = vadd.f32 %v2573_v39, %v7188_v48  ;;  %v4908_v44 = vpop.f32.mrb[59].mxu1  ;;  %2602 = vmax.xlane.f32.xlu1 %v2601_v26 }
 0x6c1   : > { %2605 = vmax.xlane.f32.xlu0 %v2604_v36  ;;  %v2607_v61 = vsel %vm1885_vm9, %v7430_v51, -inf }
 0x6c3   : > { %2608 = vmax.xlane.f32.xlu1 %v2607_v61 }
 0x6c4   : > { %v2875_v46 = vpop.f32.mrb[60].mxu1 }
 0x6c5   : > { %v2913_v1 = vmul.f32 0.35355338, %v2875_v46  ;;  %v4951_v5 = vpop.f32.mrb[61].mxu1 }
 0x6c6   : > { %v2878_v9 = vpop.f32.mrb[62].mxu1 }
 0x6c7   : > { %v7439_v13 = vadd.f32 %v2913_v1, %v7262_v43  ;;  %v2914_v14 = vmul.f32 0.35355338, %v2878_v9  ;;  %v4952_v23 = vpop.f32.mrb[63].mxu1  ;;  %v7450_v43 = vpop.permute.xlu1 %2691 }
 0x6c9   : > { %v7444_v30 = vadd.f32 %v2914_v14, %v7265_v63  ;;  %v2931_v32 = vsel %vm1885_vm9, %v7439_v13, -inf }
 0x6ca   : > { %2932 = vmax.xlane.f32.xlu1 %v2931_v32 }
 0x6cb   : > { %v2934_v47 = vsel %vm1885_vm9, %v7444_v30, -inf  ;;  %v7462_v9 = vpop.permute.xlu1 %2693 }
 0x6cc   : > { %v2883_v15 = vpop.f32.mrb[64].mxu1 }
 0x6cd   : > { %v2915_v39 = vmul.f32 0.35355338, %v2883_v15  ;;  %v4955_v8 = vpop.f32.mrb[65].mxu1 }
 0x6ce   : > { %v2886_v26 = vpop.f32.mrb[66].mxu1  ;;  %2935 = vmax.xlane.f32.xlu1 %v2934_v47 }
 0x6cf   : > { %v7453_v44 = vadd.f32 %v2915_v39, %v7282_v10  ;;  %v2916_v36 = vmul.f32 0.35355338, %v2886_v26  ;;  %v4956_v63 = vpop.f32.mrb[67].mxu1  ;;  %v7472_v47 = vpop.permute.xlu1 %2347 }
 0x6d1   : > { %v7456_v61 = vadd.f32 %v2916_v36, %v7285_v17  ;;  %v2937_v46 = vsel %vm1885_vm9, %v7453_v44, -inf }
 0x6d2   : > { %2938 = vmax.xlane.f32.xlu1 %v2937_v46 }
 0x6d3   : > { %v2940_v1 = vsel %vm1885_vm9, %v7456_v61, -inf }
 0x6d4   : > { %v2891_v5 = vpop.f32.mrb[68].mxu1  ;;  %2941 = vmax.xlane.f32.xlu0 %v2940_v1 }
 0x6d5   : > { %v2917_v14 = vmul.f32 0.35355338, %v2891_v5  ;;  %v4959_v23 = vpop.f32.mrb[69].mxu1 }
 0x6d6   : > { %v2894_v10 = vpop.f32.mrb[70].mxu1 }
 0x6d7   : > { %v7465_v32 = vadd.f32 %v2917_v14, %v7302_v31  ;;  %v2918_v15 = vmul.f32 0.35355338, %v2894_v10  ;;  %v4960_v17 = vpop.f32.mrb[71].mxu1 }
 0x6d9   : > { %v7468_v39 = vadd.f32 %v2918_v15, %v7308_v38  ;;  %v2943_v8 = vsel %vm1885_vm9, %v7465_v32, -inf }
 0x6da   : > { %2944 = vmax.xlane.f32.xlu1 %v2943_v8 }
 0x6db   : > { %v2946_v46 = vsel %vm1885_vm9, %v7468_v39, -inf }
 0x6dc   : > { %v2899_v26 = vpop.f32.mrb[72].mxu1 }
 0x6dd   : > { %v2919_v36 = vmul.f32 0.35355338, %v2899_v26  ;;  %v4963_v63 = vpop.f32.mrb[73].mxu1 }
 0x6de   : > { %v2902_v1 = vpop.f32.mrb[74].mxu1  ;;  %2947 = vmax.xlane.f32.xlu1 %v2946_v46 }
 0x6df   : > { %v7477_v31 = vadd.f32 %v2919_v36, %v7322_v50  ;;  %v2920_v5 = vmul.f32 0.35355338, %v2902_v1  ;;  %v4964_v38 = vpop.f32.mrb[75].mxu1  ;;  %v1888_v14 = vpop.xlane.xlu1 %1887 }
 0x6e0   : > { %v1913_v23 = vsub.f32 %v7268_v4, %v1888_v14 }
 0x6e1   : > { %v7481_v10 = vadd.f32 %v2920_v5, %v7328_v41  ;;  %v1891_v15 = vpop.xlane.xlu0 %1890  ;;  %v2949_v17 = vsel %vm1885_vm9, %v7477_v31, -inf }
 0x6e2   : > { %v1922_v8 = vmul.f32 1.442695, %v1913_v23  ;;  %v1914_v26 = vsub.f32 %v7275_v6, %v1891_v15  ;;  %2950 = vmax.xlane.f32.xlu1 %v2949_v17 }
 0x6e3   : > { %v2952_v1 = vsel %vm1885_vm9, %v7481_v10, -inf }
 0x6e4   : > { %5387 = vpow2.f32 %v1922_v8  ;;  %v1924_v63 = vmul.f32 1.442695, %v1914_v26  ;;  %v2907_v50 = vpop.f32.mrb[76].mxu1 }
 0x6e5   : > { %v2921_v36 = vmul.f32 0.35355338, %v2907_v50  ;;  %v4967_v46 = vpop.f32.mrb[77].mxu1 }
 0x6e6   : > { %5389 = vpow2.f32 %v1924_v63  ;;  %v2910_v4 = vpop.f32.mrb[78].mxu1  ;;  %2953 = vmax.xlane.f32.xlu1 %v2952_v1 }
 0x6e7   : > { %v7489_v41 = vadd.f32 %v2921_v36, %v7188_v48  ;;  %v4968_v5 = vpop.f32.mrb[79].mxu1  ;;  %v1894_v38 = vpop.xlane.xlu0 %1893 }
 0x6e8   : > { %v1915_v14 = vsub.f32 %v7288_v22, %v1894_v38 }
 0x6e9   : > { %v2955_v6 = vsel %vm1885_vm9, %v7489_v41, -inf }
 0x6ea   : > { %v1926_v23 = vmul.f32 1.442695, %v1915_v14  ;;  %2956 = vmax.xlane.f32.xlu0 %v2955_v6 }
 0x6eb   : > { %v1897_v15 = vpop.xlane.xlu0 %1896 }
 0x6ec   : > { %5391 = vpow2.f32 %v1926_v23  ;;  %v1916_v17 = vsub.f32 %v7293_v24, %v1897_v15 }
 0x6ee   : > { %v7495_v8 = vpop.eup %5387  ;;  %v1928_v26 = vmul.f32 1.442695, %v1916_v17 }
 0x6ef   : > { %v1900_v63 = vpop.xlane.xlu1 %1899  ;;  %v1940_v48 = vsel %vm1885_vm9, %v7495_v8, 0.0 }
 0x6f0   : > { %v7499_v50 = vpop.eup %5389  ;;  %5393 = vpow2.f32 %v1928_v26  ;;  %v1917_v22 = vsub.f32 %v7305_v37, %v1900_v63  ;;  %1941 = vadd.xlane.f32.xlu1 %v1940_v48 }
 0x6f1   : > { %v1903_v36 = vpop.xlane.xlu0 %1902  ;;  %v1943_v46 = vsel %vm1885_vm9, %v7499_v50, 0.0 }
 0x6f2   : > { %v1930_v1 = vmul.f32 1.442695, %v1917_v22  ;;  %v1918_v24 = vsub.f32 %v7313_v40, %v1903_v36  ;;  %1944 = vadd.xlane.f32.xlu0 %v1943_v46 }
 0x6f4   : > { %5395 = vpow2.f32 %v1930_v1  ;;  %v1932_v4 = vmul.f32 1.442695, %v1918_v24 }
 0x6f6   : > { %v7505_v5 = vpop.eup %5391  ;;  %5397 = vpow2.f32 %v1932_v4 }
 0x6f7   : > { %v1906_v38 = vpop.xlane.xlu1 %1905  ;;  %v1946_v14 = vsel %vm1885_vm9, %v7505_v5, 0.0 }
 0x6f8   : > { %v1919_v37 = vsub.f32 %v7325_v25, %v1906_v38  ;;  %1947 = vadd.xlane.f32.xlu1 %v1946_v14 }
 0x6f9   : > { %v1909_v6 = vpop.xlane.xlu0 %1908 }
 0x6fa   : > { %v7510_v23 = vpop.eup %5393  ;;  %v1934_v15 = vmul.f32 1.442695, %v1919_v37  ;;  %v1920_v17 = vsub.f32 %v7333_v58, %v1909_v6 }
 0x6fb   : > { %v1949_v40 = vsel %vm1885_vm9, %v7510_v23, 0.0  ;;  %v7533_v24 = vpop.permute.xlu1 %3035 }
 0x6fc   : > { %5399 = vpow2.f32 %v1934_v15  ;;  %v1936_v26 = vmul.f32 1.442695, %v1920_v17  ;;  %1950 = vadd.xlane.f32.xlu0 %v1949_v40 }
 0x6fd   : > { %v7535_v4 = vpop.permute.xlu0 %2695 }
 0x6fe   : > { %v7515_v63 = vpop.eup %5395  ;;  %5401 = vpow2.f32 %v1936_v26 }
 0x6ff   : > { %v1952_v48 = vsel %vm1885_vm9, %v7515_v63, 0.0 }
 0x700   : > { %v7519_v25 = vpop.eup %5397  ;;  %1953 = vadd.xlane.f32.xlu1 %v1952_v48 }
 0x701   : > { %v1955_v22 = vsel %vm1885_vm9, %v7519_v25, 0.0 }
 0x702   : > { %1956 = vadd.xlane.f32.xlu0 %v1955_v22 }
 0x706   : > { %v7523_v58 = vpop.eup %5399 }
 0x707   : > { %v1958_v36 = vsel %vm1885_vm9, %v7523_v58, 0.0 }
 0x708   : > { %v7527_v46 = vpop.eup %5401  ;;  %1959 = vadd.xlane.f32.xlu1 %v1958_v36 }
 0x709   : > { %v1961_v1 = vsel %vm1885_vm9, %v7527_v46, 0.0 }
 0x70a   : > { %1962 = vadd.xlane.f32.xlu0 %v1961_v1 }
 0x720   : > { %3037 = vrot.lane.b32.xlu0 %v6981_v11, %s6162_s12 }
 0x72c   : > { %v1912_v38 = vpop.xlane.xlu1 %1911 }
 0x72d   : > { %v1921_v14 = vsub.f32 %v7342_v34, %v1912_v38 }
 0x72e   : > { %v2237_v37 = vpop.xlane.xlu0 %2236 }
 0x72f   : > { %v1938_v6 = vmul.f32 1.442695, %v1921_v14  ;;  %v2262_v15 = vsub.f32 %v7345_v16, %v2237_v37 }
 0x730   : > { %v2240_v17 = vpop.xlane.xlu1 %2239 }
 0x731   : > { %5403 = vpow2.f32 %v1938_v6  ;;  %v2271_v40 = vmul.f32 1.442695, %v2262_v15  ;;  %v2263_v26 = vsub.f32 %v7350_v52, %v2240_v17 }
 0x732   : > { %v2243_v48 = vpop.xlane.xlu0 %2242 }
 0x733   : > { %5405 = vpow2.f32 %v2271_v40  ;;  %v2273_v22 = vmul.f32 1.442695, %v2263_v26  ;;  %v2264_v11 = vsub.f32 %v7355_v35, %v2243_v48 }
 0x734   : > { %v2246_v36 = vpop.xlane.xlu1 %2245 }
 0x735   : > { %5407 = vpow2.f32 %v2273_v22  ;;  %v2275_v49 = vmul.f32 1.442695, %v2264_v11  ;;  %v2265_v34 = vsub.f32 %v7360_v60, %v2246_v36 }
 0x736   : > { %v2249_v1 = vpop.xlane.xlu0 %2248 }
 0x737   : > { %v2266_v16 = vsub.f32 %v7365_v0, %v2249_v1  ;;  %5409 = vpow2.f32 %v2275_v49  ;;  %v2277_v52 = vmul.f32 1.442695, %v2265_v34 }
 0x738   : > { %v2252_v38 = vpop.xlane.xlu1 %2251 }
 0x739   : > { %v2267_v14 = vsub.f32 %v7370_v12, %v2252_v38  ;;  %v2279_v26 = vmul.f32 1.442695, %v2266_v16 }
 0x73a   : > { %v2255_v37 = vpop.xlane.xlu0 %2254 }
 0x73b   : > { %v7544_v6 = vpop.eup %5403  ;;  %v2281_v15 = vmul.f32 1.442695, %v2267_v14  ;;  %v2268_v12 = vsub.f32 %v7375_v19, %v2255_v37 }
 0x73c   : > { %v2258_v17 = vpop.xlane.xlu1 %2257  ;;  %v1964_v35 = vsel %vm1885_vm9, %v7544_v6, 0.0 }
 0x73d   : > { %v7548_v40 = vpop.eup %5405  ;;  %5411 = vpow2.f32 %v2281_v15  ;;  %v2269_v60 = vsub.f32 %v7380_v28, %v2258_v17  ;;  %1965 = vadd.xlane.f32.xlu1 %v1964_v35  ;;  %v2283_v28 = vmul.f32 1.442695, %v2268_v12 }
 0x73e   : > { %v2261_v0 = vpop.xlane.xlu0 %2260  ;;  %5413 = vpow2.f32 %v2277_v52  ;;  %v2289_v11 = vsel %vm1885_vm9, %v7548_v40, 0.0 }
 0x73f   : > { %v2285_v48 = vmul.f32 1.442695, %v2269_v60  ;;  %v2270_v49 = vsub.f32 %v7385_v2, %v2261_v0  ;;  %v7555_v36 = vpop.eup %5407 }
 0x740   : > { %v2585_v22 = vpop.xlane.xlu1 %2584  ;;  %v2292_v2 = vsel %vm1885_vm9, %v7555_v36, 0.0 }
 0x741   : > { %5415 = vpow2.f32 %v2285_v48  ;;  %v2287_v1 = vmul.f32 1.442695, %v2270_v49  ;;  %v2610_v34 = vsub.f32 %v7390_v45, %v2585_v22  ;;  %2290 = vadd.xlane.f32.xlu1 %v2289_v11  ;;  %v7563_v37 = vpop.eup %5409 }
 0x742   : > { %5417 = vpow2.f32 %v2279_v26  ;;  %v2588_v38 = vpop.xlane.xlu0 %2587 }
 0x743   : > { %5419 = vpow2.f32 %v2287_v1  ;;  %v2619_v19 = vmul.f32 1.442695, %v2610_v34  ;;  %v2611_v14 = vsub.f32 %v7395_v55, %v2588_v38  ;;  %v2295_v55 = vsel %vm1885_vm9, %v7563_v37, 0.0 }
 0x744   : > { %v7559_v16 = vpop.xlane.xlu1 %2590  ;;  %5421 = vpow2.f32 %v2283_v28 }
 0x745   : > { %2293 = vadd.xlane.f32.xlu1 %v2292_v2  ;;  %5423 = vpow2.f32 %v2619_v19  ;;  %v2621_v45 = vmul.f32 1.442695, %v2611_v14 }
 0x746   : > { %v2594_v52 = vpop.xlane.xlu0 %2593 }
 0x747   : > { %v7565_v15 = vpop.eup %5411  ;;  %v2613_v17 = vsub.f32 %v7403_v59, %v2594_v52  ;;  %5425 = vpow2.f32 %v2621_v45 }
 0x748   : > { %v2597_v35 = vpop.xlane.xlu1 %2596  ;;  %v2304_v60 = vsel %vm1885_vm9, %v7565_v15, 0.0  ;;  %v7572_v26 = vpop.eup %5413 }
 0x749   : > { %2296 = vadd.xlane.f32.xlu1 %v2295_v55  ;;  %2305 = vadd.xlane.f32.xlu0 %v2304_v60  ;;  %v2625_v48 = vmul.f32 1.442695, %v2613_v17  ;;  %v2614_v49 = vsub.f32 %v7408_v3, %v2597_v35  ;;  %v2298_v11 = vsel %vm1885_vm9, %v7572_v26, 0.0 }
 0x74a   : > { %v7574_v12 = vpop.xlane.xlu0 %2599 }
 0x74b   : > { %v7576_v0 = vpop.eup %5415  ;;  %5427 = vpow2.f32 %v2625_v48  ;;  %v2627_v38 = vmul.f32 1.442695, %v2614_v49 }
 0x74c   : > { %v7579_v59 = vpop.eup %5417  ;;  %v7581_v22 = vpop.xlane.xlu1 %2602  ;;  %v2310_v1 = vsel %vm1885_vm9, %v7576_v0, 0.0 }
 0x74d   : > { %v7587_v34 = vpop.eup %5419  ;;  %2299 = vadd.xlane.f32.xlu1 %v2298_v11  ;;  %2311 = vadd.xlane.f32.xlu0 %v2310_v1  ;;  %v2301_v2 = vsel %vm1885_vm9, %v7579_v59, 0.0  ;;  %5429 = vpow2.f32 %v2627_v38 }
 0x74e   : > { %v2606_v28 = vpop.xlane.xlu0 %2605  ;;  %v7590_v3 = vpop.eup %5421  ;;  %v2313_v52 = vsel %vm1885_vm9, %v7587_v34, 0.0 }
 0x74f   : > { %v2617_v19 = vsub.f32 %v7423_v27, %v2606_v28  ;;  %v7596_v45 = vpop.eup %5423  ;;  %v2307_v27 = vsel %vm1885_vm9, %v7590_v3, 0.0 }
 0x750   : > { %v2609_v14 = vpop.xlane.xlu1 %2608  ;;  %v2637_v55 = vsel %vm1885_vm9, %v7596_v45, 0.0 }
 0x751   : > { %2302 = vadd.xlane.f32.xlu1 %v2301_v2  ;;  %2314 = vadd.xlane.f32.xlu0 %v2313_v52  ;;  %v2633_v17 = vmul.f32 1.442695, %v2617_v19  ;;  %v2618_v35 = vsub.f32 %v7430_v51, %v2609_v14  ;;  %v7603_v60 = vpop.eup %5425 }
 0x752   : > { %v2640_v11 = vsel %vm1885_vm9, %v7603_v60, 0.0 }
 0x753   : > { %5431 = vpow2.f32 %v2633_v17  ;;  %v2635_v48 = vmul.f32 1.442695, %v2618_v35 }
 0x755   : > { %2308 = vadd.xlane.f32.xlu1 %v2307_v27  ;;  %2638 = vadd.xlane.f32.xlu0 %v2637_v55  ;;  %v7607_v1 = vpop.eup %5427  ;;  %5433 = vpow2.f32 %v2635_v48 }
 0x756   : > { %8393 = vst [vmem:[#allocation40_spill] sm:$0xff] %v7607_v1  ;;  %v2646_v51 = vsel %vm1885_vm9, %v7607_v1, 0.0 }
 0x757   : > { %v2933_v49 = vpop.xlane.xlu1 %2932  ;;  %v7611_v28 = vpop.eup %5429 }
 0x758   : > { %8394 = vst [vmem:[#allocation41_spill] sm:$0xff] %v7611_v28  ;;  %v2649_v19 = vsel %vm1885_vm9, %v7611_v28, 0.0 }
 0x759   : > { %2641 = vadd.xlane.f32.xlu0 %v2640_v11 }
 0x75b   : > { %v2936_v38 = vpop.xlane.xlu1 %2935 }
 0x75d   : > { %2647 = vadd.xlane.f32.xlu0 %v2646_v51  ;;  %v7615_v14 = vpop.eup %5431 }
 0x75e   : > { %8395 = vst [vmem:[#allocation42_spill] sm:$0xff] %v7615_v14  ;;  %v2658_v52 = vsel %vm1885_vm9, %v7615_v14, 0.0 }
 0x75f   : > { %v2939_v2 = vpop.xlane.xlu1 %2938  ;;  %v7619_v17 = vpop.eup %5433 }
 0x760   : > { %8396 = vst [vmem:[#allocation43_spill] sm:$0xff] %v7619_v17  ;;  %v2661_v27 = vsel %vm1885_vm9, %v7619_v17, 0.0 }
 0x761   : > { %2650 = vadd.xlane.f32.xlu0 %v2649_v19  ;;  %v2612_v19 = vsub.f32 %v7398_v42, %v7559_v16 }
 0x763   : > { %v2623_v14 = vmul.f32 1.442695, %v2612_v19 }
 0x765   : > { %2659 = vadd.xlane.f32.xlu0 %v2658_v52  ;;  %v2615_v52 = vsub.f32 %v7413_v18, %v7574_v12  ;;  %v2958_v18 = vsub.f32 %v7439_v13, %v2933_v49 }
 0x766   : > { %3039 = vrot.lane.b32.xlu1 %v6985_v20, %s6162_s12  ;;  %v2942_v20 = vpop.xlane.xlu0 %2941 }
 0x767   : > { %v7623_v35 = vpop.xlane.xlu1 %2944 }
 0x769   : > { %2662 = vadd.xlane.f32.xlu0 %v2661_v27  ;;  %v2629_v27 = vmul.f32 1.442695, %v2615_v52 }
 0x76b   : > { %v2948_v55 = vpop.xlane.xlu1 %2947 }
 0x76c   : > { %v2963_v48 = vsub.f32 %v7468_v39, %v2948_v55  ;;  %v2616_v55 = vsub.f32 %v7418_v29, %v7581_v22 }
 0x76e   : > { %v2977_v11 = vmul.f32 1.442695, %v2963_v48  ;;  %v2631_v12 = vmul.f32 1.442695, %v2616_v55  ;;  %v2967_v48 = vmul.f32 1.442695, %v2958_v18 }
 0x76f   : > { %v7628_v51 = vpop.xlane.xlu1 %2950 }
 0x770   : > { %5435 = vpow2.f32 %v2977_v11  ;;  %v2959_v11 = vsub.f32 %v7444_v30, %v2936_v38 }
 0x771   : > { %5437 = vpow2.f32 %v2623_v14  ;;  %v2960_v14 = vsub.f32 %v7453_v44, %v2939_v2  ;;  %v2961_v44 = vsub.f32 %v7456_v61, %v2942_v20  ;;  %v8397_v61 = vmov 0.0  }
 0x772   : > { %v2969_v22 = vmul.f32 1.442695, %v2959_v11 }
 0x773   : > { %v7634_v28 = vpop.xlane.xlu1 %2953  ;;  %v2971_v55 = vmul.f32 1.442695, %v2960_v14 }
 0x777   : > { %v7638_v17 = vpop.xlane.xlu0 %2956 }
 0x77a   : > { %v7636_v1 = vpop.eup %5435 }
 0x77b   : > { %v3000_v39 = vsel %vm1885_vm9, %v7636_v1, 0.0  ;;  %v7646_v52 = vpop.eup %5437 }
 0x77c   : > { %3001 = vadd.xlane.f32.xlu0 %v3000_v39  ;;  %v2643_v13 = vsel %vm1885_vm9, %v7646_v52, 0.0 }
 0x77d   : > { %v1942_v42 = vpop.xlane.xlu1 %1941 }
 0x77e   : > { %5439 = vrcp.f32 %v1942_v42 }
 0x77f   : > { %5441 = vpow2.f32 %v2629_v27  ;;  %v1945_v16 = vpop.xlane.xlu0 %1944 }
 0x780   : > { %5443 = vrcp.f32 %v1945_v16 }
 0x781   : > { %5445 = vpow2.f32 %v2631_v12  ;;  %v2962_v12 = vsub.f32 %v7465_v32, %v7623_v35 }
 0x782   : > { %5447 = vpow2.f32 %v2967_v48 }
 0x783   : > { %v2975_v35 = vmul.f32 1.442695, %v2962_v12 }
 0x785   : > { %v1948_v19 = vpop.xlane.xlu1 %1947 }
 0x786   : > { %5449 = vrcp.f32 %v1948_v19 }
 0x788   : > { %v5440_v29 = vpop.eup %5439 }
 0x789   : > { %v7649_v39 = vpop.eup %5441  ;;  %v1951_v27 = vpop.xlane.xlu0 %1950  ;;  %v1976_v30 = vmul.f32 %v5440_v29, %v7495_v8  ;;  %v2973_v8 = vmul.f32 1.442695, %v2961_v44  ;;  %v2369_v44 = vsel %vm2019_vm6, %v7472_v47, 0 }
 0x78a   : > { %v5444_v49 = vpop.eup %5443  ;;  %5451 = vrcp.f32 %v1951_v27  ;;  %2644 = vadd.xlane.f32.xlu1 %v2643_v13  ;;  %v2652_v18 = vsel %vm1885_vm9, %v7649_v39, 0.0 }
 0x78b   : > { %v1977_v38 = vmul.f32 %v5444_v49, %v7499_v50  ;;  %5453 = vpow2.f32 %v2969_v22  ;;  %v7658_v16 = vpop.eup %5445  ;;  %v2965_v49 = vsub.f32 %v7481_v10, %v7634_v28  ;;  %v2966_v10 = vsub.f32 %v7489_v41, %v7638_v17 }
 0x78c   : > { %5455 = vpow2.f32 %v2971_v55  ;;  %v7666_v50 = vpop.eup %5447  ;;  %v2655_v20 = vsel %vm1885_vm9, %v7658_v16, 0.0 }
 0x78d   : > { %v1985_v2 = vpack.c.bf16 %v1977_v38, %v1976_v30  ;;  %v1954_v42 = vpop.xlane.xlu1 %1953  ;;  %v2985_v14 = vsel %vm1885_vm9, %v7666_v50, 0.0  ;;  %v2983_v47 = vmul.f32 1.442695, %v2966_v10 }
 0x78e   : > { %2653 = vadd.xlane.f32.xlu1 %v2652_v18  ;;  %5457 = vrcp.f32 %v1954_v42 }
 0x78f   : > { %v1957_v48 = vpop.xlane.xlu0 %1956  ;;  %4800 = vmatmul.mubr.msk.bf16.vlgmr.msra.gmra.mrb[20].mxu0 %vm1885_vm9, %v1985_v2  ;;  %v2981_v2 = vmul.f32 1.442695, %v2965_v49 }
 0x790   : > { %5459 = vrcp.f32 %v1957_v48  ;;  %4850 = vmatpush3.bf16.msra.mxu0 %v7436_v62  ;;  %4803 = vmatprep.mubr.msk.bf16.mxu0 %vm6150_vm3, %v8397_v61  ;;  %v5450_v32 = vpop.eup %5449  ;;  %v2964_v62 = vsub.f32 %v7477_v31, %v7628_v51 }
 0x791   : > { %4851 = vmatprep.subr.bf16.mxu0 %v8397_v61  ;;  %5461 = vpow2.f32 %v2973_v8  ;;  %v1978_v29 = vmul.f32 %v5450_v32, %v7505_v5 }
 0x792   : > { %2656 = vadd.xlane.f32.xlu1 %v2655_v20  ;;  %3041 = vrot.lane.b32.xlu0 %v6989_v7, %s6162_s12  ;;  %5463 = vpow2.f32 %v2975_v35 }
 0x794   : > { %v5452_v11 = vpop.eup %5451  ;;  %4852 = vmatpush3.bf16.msra.mxu0 %v7201_v53  ;;  %v2979_v53 = vmul.f32 1.442695, %v2964_v62 }
 0x795   : > { %v1960_v19 = vpop.xlane.xlu1 %1959  ;;  %4853 = vmatprep.subr.bf16.mxu0 %v8397_v61  ;;  %v1979_v22 = vmul.f32 %v5452_v11, %v7510_v23  ;;  %v7681_v27 = vpop.eup %5453 }
 0x796   : > { %2986 = vadd.xlane.f32.xlu1 %v2985_v14  ;;  %5465 = vrcp.f32 %v1960_v19  ;;  %v7683_v31 = vpop.eup %5455  ;;  %v2988_v5 = vsel %vm1885_vm9, %v7681_v27, 0.0 }
 0x797   : > { %v1963_v7 = vpop.xlane.xlu0 %1962  ;;  %v1986_v13 = vpack.c.bf16 %v1979_v22, %v1978_v29 }
 0x798   : > { %5467 = vrcp.f32 %v1963_v7  ;;  %4854 = vmatpush3.bf16.msra.mxu0 %v7441_v21  ;;  %v5458_v51 = vpop.eup %5457  ;;  %v2991_v21 = vsel %vm1885_vm9, %v7683_v31, 0.0 }
 0x799   : > { %4804 = vmatmul.mubr.msk.bf16.gmra.mrb[24].mxu0 %vm1885_vm9, %v1986_v13  ;;  %4855 = vmatprep.subr.bf16.mxu0 %v8397_v61  ;;  %5469 = vpow2.f32 %v2979_v53  ;;  %v1980_v30 = vmul.f32 %v5458_v51, %v7515_v63 }
 0x79a   : > { %v5460_v23 = vpop.eup %5459  ;;  %2989 = vadd.xlane.f32.xlu1 %v2988_v5  ;;  %4807 = vmatprep.mubr.msk.bf16.mxu0 %vm6150_vm3, %v8397_v61  ;;  %5471 = vpow2.f32 %v2981_v2 }
 0x79b   : > { %v1981_v55 = vmul.f32 %v5460_v23, %v7519_v25  ;;  %v7700_v38 = vpop.eup %5461  ;;  %5473 = vpow2.f32 %v2983_v47  ;;  %v7736_v7 = vpop.permute.xlu0 %3037 }
 0x79c   : > { %4856 = vmatpush3.bf16.msra.mxu0 %v7207_v54  ;;  %v7706_v28 = vpop.eup %5463  ;;  %v2994_v63 = vsel %vm1885_vm9, %v7700_v38, 0.0 }
 0x79d   : > { %4857 = vmatprep.subr.bf16.mxu0 %v8397_v61  ;;  %v1987_v25 = vpack.c.bf16 %v1981_v55, %v1980_v30  ;;  %v2997_v17 = vsel %vm1885_vm9, %v7706_v28, 0.0 }
 0x79e   : > { %2992 = vadd.xlane.f32.xlu1 %v2991_v21 }
 0x7a0   : > { %4858 = vmatpush3.bf16.msra.mxu0 %v2369_v44  ;;  %v5466_v54 = vpop.eup %5465 }
 0x7a1   : > { %4808 = vmatmul.mubr.msk.bf16.gmra.mrb[28].mxu0 %vm1885_vm9, %v1987_v25  ;;  %4909 = vmatprep.subr.bf16.mxu0 %v8397_v61  ;;  %v1982_v18 = vmul.f32 %v5466_v54, %v7523_v58 }
 0x7a2   : > { %v5468_v42 = vpop.eup %5467  ;;  %2995 = vadd.xlane.f32.xlu1 %v2994_v63  ;;  %4811 = vmatprep.mubr.msk.bf16.mxu0 %vm6150_vm3, %v8397_v61 }
 0x7a3   : > { %v1983_v41 = vmul.f32 %v5468_v42, %v7527_v46  ;;  %v7718_v12 = vpop.eup %5469 }
 0x7a4   : > { %v3003_v8 = vsel %vm1885_vm9, %v7718_v12, 0.0  ;;  %v7725_v46 = vpop.eup %5471 }
 0x7a5   : > { %v1988_v48 = vpack.c.bf16 %v1983_v41, %v1982_v18  ;;  %v3006_v20 = vsel %vm1885_vm9, %v7725_v46, 0.0  ;;  %v7729_v58 = vpop.eup %5473 }
 0x7a6   : > { %2998 = vadd.xlane.f32.xlu1 %v2997_v17  ;;  %v3009_v32 = vsel %vm1885_vm9, %v7729_v58, 0.0 }
 0x7a9   : > { %4812 = vmatmul.mubr.msk.bf16.gmra.mrb[32].mxu0 %vm1885_vm9, %v1988_v48 }
 0x7aa   : > { %3004 = vadd.xlane.f32.xlu1 %v3003_v8  ;;  %4815 = vmatprep.mubr.msk.bf16.mxu0 %vm6150_vm3, %v8397_v61 }
 0x7b1   : > { %3007 = vadd.xlane.f32.xlu0 %v3006_v20 }
 0x7b5   : > { %3010 = vadd.xlane.f32.xlu0 %v3009_v32 }
 0x7bb   : > { %3043 = vrot.lane.b32.xlu1 %v6993_v33, %s6162_s12 }
 0x7ca   : > { %v1966_v35 = vpop.xlane.xlu1 %1965 }
 0x7cb   : > { %5475 = vrcp.f32 %v1966_v35 }
 0x7ce   : > { %v2291_v11 = vpop.xlane.xlu1 %2290 }
 0x7cf   : > { %5477 = vrcp.f32 %v2291_v11 }
 0x7d2   : > { %v2294_v62 = vpop.xlane.xlu1 %2293 }
 0x7d3   : > { %5479 = vrcp.f32 %v2294_v62 }
 0x7d5   : > { %v5476_v19 = vpop.eup %5475 }
 0x7d6   : > { %v2297_v14 = vpop.xlane.xlu1 %2296  ;;  %v1984_v29 = vmul.f32 %v5476_v19, %v7544_v6  ;;  %v2306_v51 = vpop.xlane.xlu0 %2305 }
 0x7d7   : > { %5481 = vrcp.f32 %v2297_v14 }
 0x7d8   : > { %v1989_v22 = vpack.c.bf16 %v1984_v29, %v1984_v29 }
 0x7d9   : > { %v5478_v53 = vpop.eup %5477 }
 0x7da   : > { %4816 = vmatmul.mubr.msk.bf16.gmra.mrb[36].mxu0 %vm1885_vm9, %v1989_v22  ;;  %v2300_v13 = vpop.xlane.xlu1 %2299  ;;  %v2325_v5 = vmul.f32 %v5478_v53, %v7548_v40  ;;  %v2312_v55 = vpop.xlane.xlu0 %2311 }
 0x7db   : > { %4859 = vmatprep.mubr.msk.bf16.mxu0 %vm6150_vm3, %v8397_v61  ;;  %5483 = vrcp.f32 %v2300_v13  ;;  %v8398_v13 = vld [vmem:[#allocation40_spill] sm:$0xff] }
 0x7dd   : > { %v5480_v33 = vpop.eup %5479 }
 0x7de   : > { %v2326_v23 = vmul.f32 %v5480_v33, %v7555_v36  ;;  %v2303_v49 = vpop.xlane.xlu1 %2302  ;;  %v2315_v2 = vpop.xlane.xlu0 %2314 }
 0x7df   : > { %5485 = vrcp.f32 %v2303_v49 }
 0x7e0   : > { %v2334_v6 = vpack.c.bf16 %v2326_v23, %v2325_v5  ;;  %5487 = vrcp.f32 %v2306_v51 }
 0x7e1   : > { %v5482_v21 = vpop.eup %5481 }
 0x7e2   : > { %4860 = vmatmul.mubr.msk.bf16.vlgmr.msra.gmra.mrb[40].mxu0 %vm1885_vm9, %v2334_v6  ;;  %v2309_v30 = vpop.xlane.xlu1 %2308  ;;  %v2327_v40 = vmul.f32 %v5482_v21, %v7563_v37  ;;  %v2639_v37 = vpop.xlane.xlu0 %2638 }
 0x7e3   : > { %4910 = vmatpush3.bf16.msra.mxu0 %v7216_v56  ;;  %4863 = vmatprep.mubr.msk.bf16.mxu0 %vm6150_vm3, %v8397_v61  ;;  %5489 = vrcp.f32 %v2309_v30 }
 0x7e4   : > { %4911 = vmatprep.subr.bf16.mxu0 %v8397_v61  ;;  %5491 = vrcp.f32 %v2312_v55  ;;  %v8399_v55 = vld [vmem:[#allocation41_spill] sm:$0xff] }
 0x7e5   : > { %v5484_v44 = vpop.eup %5483  ;;  %5493 = vrcp.f32 %v2315_v2 }
 0x7e6   : > { %v2328_v36 = vmul.f32 %v5484_v44, %v7572_v26 }
 0x7e7   : > { %4912 = vmatpush3.bf16.msra.mxu0 %v7219_v57 }
 0x7e8   : > { %4913 = vmatprep.subr.bf16.mxu0 %v8397_v61  ;;  %v2335_v10 = vpack.c.bf16 %v2328_v36, %v2327_v40 }
 0x7e9   : > { %v5486_v56 = vpop.eup %5485 }
 0x7ea   : > { %4864 = vmatmul.mubr.msk.bf16.gmra.mrb[44].mxu0 %vm1885_vm9, %v2335_v10  ;;  %v5488_v25 = vpop.eup %5487  ;;  %v2329_v57 = vmul.f32 %v5486_v56, %v7579_v59  ;;  %v2642_v59 = vpop.xlane.xlu0 %2641  ;;  %v8400_v10 = vld [vmem:[#allocation42_spill] sm:$0xff] }
 0x7eb   : > { %4914 = vmatpush3.bf16.msra.mxu0 %v7450_v43  ;;  %4867 = vmatprep.mubr.msk.bf16.mxu0 %vm6150_vm3, %v8397_v61  ;;  %v2330_v26 = vmul.f32 %v5488_v25, %v7565_v15  ;;  %v2717_v43 = vsel %vm2019_vm6, %v7535_v4, 0  ;;  %5495 = vrcp.f32 %v2642_v59 }
 0x7ec   : > { %4915 = vmatprep.subr.bf16.mxu0 %v8397_v61  ;;  %5497 = vrcp.f32 %v2639_v37  ;;  %v8401_v37 = vld [vmem:[#allocation43_spill] sm:$0xff] }
 0x7ed   : > { %v2336_v54 = vpack.c.bf16 %v2330_v26, %v2329_v57  ;;  %v5490_v63 = vpop.eup %5489 }
 0x7ee   : > { %v5492_v42 = vpop.eup %5491  ;;  %v2331_v15 = vmul.f32 %v5490_v63, %v7590_v3  ;;  %v2648_v17 = vpop.xlane.xlu0 %2647 }
 0x7ef   : > { %4916 = vmatpush3.bf16.msra.mxu0 %v7462_v9  ;;  %v2332_v9 = vmul.f32 %v5492_v42, %v7576_v0  ;;  %v5494_v41 = vpop.eup %5493  ;;  %5499 = vrcp.f32 %v2648_v17 }
 0x7f0   : > { %4917 = vmatprep.subr.bf16.mxu0 %v8397_v61  ;;  %v2333_v4 = vmul.f32 %v5494_v41, %v7587_v34 }
 0x7f1   : > { %v2337_v47 = vpack.c.bf16 %v2332_v9, %v2331_v15 }
 0x7f2   : > { %4868 = vmatmul.mubr.msk.bf16.gmra.mrb[48].mxu0 %vm1885_vm9, %v2336_v54  ;;  %v2651_v18 = vpop.xlane.xlu0 %2650  ;;  %v2338_v48 = vpack.c.bf16 %v2333_v4, %v2333_v4 }
 0x7f3   : > { %4918 = vmatpush3.bf16.msra.mxu0 %v2717_v43  ;;  %4871 = vmatprep.mubr.msk.bf16.mxu0 %vm6150_vm3, %v8397_v61 }
 0x7f4   : > { %4969 = vmatprep.subr.bf16.mxu0 %v8397_v61 }
 0x7f5   : > { %v5496_v8 = vpop.eup %5495 }
 0x7f6   : > { %v5498_v3 = vpop.eup %5497  ;;  %v2674_v0 = vmul.f32 %v5496_v8, %v7603_v60  ;;  %v2660_v32 = vpop.xlane.xlu0 %2659 }
 0x7f7   : > { %v2673_v20 = vmul.f32 %v5498_v3, %v7596_v45  ;;  %v3040_v60 = vpop.permute.xlu1 %3039 }
 0x7f9   : > { %v2682_v35 = vpack.c.bf16 %v2674_v0, %v2673_v20  ;;  %v5500_v14 = vpop.eup %5499 }
 0x7fa   : > { %4872 = vmatmul.mubr.msk.bf16.gmra.mrb[52].mxu0 %vm1885_vm9, %v2337_v47  ;;  %v2663_v34 = vpop.xlane.xlu0 %2662  ;;  %v2676_v53 = vmul.f32 %v5500_v14, %v8398_v13 }
 0x7fb   : > { %4875 = vmatprep.mubr.msk.bf16.mxu0 %vm6150_vm3, %v8397_v61 }
 0x802   : > { %4876 = vmatmul.mubr.msk.bf16.gmra.mrb[56].mxu0 %vm1885_vm9, %v2338_v48 }
 0x803   : > { %4919 = vmatprep.mubr.msk.bf16.mxu0 %vm6150_vm3, %v8397_v61 }
 0x809   : > { %v7784_v11 = vpop.xlane.xlu0 %3001 }
 0x80a   : > { %4920 = vmatmul.mubr.msk.bf16.vlgmr.msra.gmra.mrb[60].mxu0 %vm1885_vm9, %v2682_v35 }
 0x80b   : > { %4970 = vmatpush3.bf16.msra.mxu0 %v7533_v24  ;;  %4923 = vmatprep.mubr.msk.bf16.mxu0 %vm6150_vm3, %v8397_v61 }
 0x80c   : > { %4971 = vmatprep.subr.bf16.mxu0 %v8397_v61 }
 0x80d   : > { %v3042_v45 = vpop.permute.xlu0 %3041 }
 0x80f   : > { %4972 = vmatpush3.bf16.msra.mxu0 %v7736_v7 }
 0x810   : > { %4973 = vmatprep.subr.bf16.mxu0 %v8397_v61 }
 0x813   : > { %4974 = vmatpush3.bf16.msra.mxu0 %v3040_v60 }
 0x814   : > { %4975 = vmatprep.subr.bf16.mxu0 %v8397_v61 }
 0x817   : > { %v2645_v62 = vpop.xlane.xlu1 %2644  ;;  %4976 = vmatpush3.bf16.msra.mxu0 %v3042_v45 }
 0x818   : > { %5501 = vrcp.f32 %v2645_v62  ;;  %4977 = vmatprep.subr.bf16.mxu0 %v8397_v61 }
 0x81b   : > { %v2654_v24 = vpop.xlane.xlu1 %2653 }
 0x81c   : > { %5503 = vrcp.f32 %v2654_v24 }
 0x81d   : > { %5505 = vrcp.f32 %v2651_v18 }
 0x81f   : > { %v2657_v19 = vpop.xlane.xlu1 %2656 }
 0x820   : > { %5507 = vrcp.f32 %v2657_v19 }
 0x821   : > { %5509 = vrcp.f32 %v2660_v32 }
 0x822   : > { %v5502_v29 = vpop.eup %5501  ;;  %5511 = vrcp.f32 %v2663_v34 }
 0x823   : > { %v2987_v22 = vpop.xlane.xlu1 %2986  ;;  %v2675_v7 = vmul.f32 %v5502_v29, %v7646_v52 }
 0x825   : > { %v2683_v33 = vpack.c.bf16 %v2676_v53, %v2675_v7 }
 0x826   : > { %v5504_v51 = vpop.eup %5503 }
 0x827   : > { %4924 = vmatmul.mubr.msk.bf16.gmra.mrb[64].mxu0 %vm1885_vm9, %v2683_v33  ;;  %v2990_v5 = vpop.xlane.xlu1 %2989  ;;  %v5506_v23 = vpop.eup %5505  ;;  %v2678_v49 = vmul.f32 %v5504_v51, %v7649_v39 }
 0x828   : > { %4927 = vmatprep.mubr.msk.bf16.mxu0 %vm6150_vm3, %v8397_v61  ;;  %v2677_v21 = vmul.f32 %v5506_v23, %v8399_v55  ;;  %5513 = vrcp.f32 %v2990_v5 }
 0x829   : > { %5515 = vrcp.f32 %v2987_v22 }
 0x82a   : > { %v2684_v52 = vpack.c.bf16 %v2678_v49, %v2677_v21  ;;  %v5508_v30 = vpop.eup %5507 }
 0x82b   : > { %v2993_v6 = vpop.xlane.xlu1 %2992  ;;  %v5510_v40 = vpop.eup %5509  ;;  %v2679_v36 = vmul.f32 %v5508_v30, %v7658_v16 }
 0x82c   : > { %v2680_v56 = vmul.f32 %v5510_v40, %v8400_v10  ;;  %v5512_v25 = vpop.eup %5511 }
 0x82d   : > { %v2681_v26 = vmul.f32 %v5512_v25, %v8401_v37 }
 0x82e   : > { %v2685_v39 = vpack.c.bf16 %v2680_v56, %v2679_v36 }
 0x82f   : > { %4928 = vmatmul.mubr.msk.bf16.gmra.mrb[68].mxu0 %vm1885_vm9, %v2684_v52  ;;  %v2996_v44 = vpop.xlane.xlu1 %2995  ;;  %v2686_v16 = vpack.c.bf16 %v2681_v26, %v2681_v26 }
 0x830   : > { %4931 = vmatprep.mubr.msk.bf16.mxu0 %vm6150_vm3, %v8397_v61  ;;  %5517 = vrcp.f32 %v2996_v44 }
 0x831   : > { %5519 = vrcp.f32 %v2993_v6 }
 0x832   : > { %v5514_v43 = vpop.eup %5513 }
 0x833   : > { %v2999_v2 = vpop.xlane.xlu1 %2998  ;;  %v5516_v42 = vpop.eup %5515  ;;  %v3022_v59 = vmul.f32 %v5514_v43, %v7681_v27 }
 0x834   : > { %v3021_v15 = vmul.f32 %v5516_v42, %v7666_v50  ;;  %5521 = vrcp.f32 %v2999_v2 }
 0x835   : > { %5523 = vrcp.f32 %v7784_v11 }
 0x836   : > { %v3030_v9 = vpack.c.bf16 %v3022_v59, %v3021_v15 }
 0x837   : > { %4932 = vmatmul.mubr.msk.bf16.gmra.mrb[72].mxu0 %vm1885_vm9, %v2685_v39  ;;  %v3005_v57 = vpop.xlane.xlu1 %3004 }
 0x838   : > { %4935 = vmatprep.mubr.msk.bf16.mxu0 %vm6150_vm3, %v8397_v61 }
 0x83a   : > { %v5518_v47 = vpop.eup %5517 }
 0x83b   : > { %v3044_v54 = vpop.permute.xlu1 %3043  ;;  %v5520_v41 = vpop.eup %5519  ;;  %v3024_v4 = vmul.f32 %v5518_v47, %v7700_v38  ;;  %v5361_v47 = vld [vmem:[%s6800_s28] sm:$0xff]  }
 0x83c   : > { %v3065_v63 = vsel %vm2019_vm6, %v3044_v54, 0  ;;  %v3023_v18 = vmul.f32 %v5520_v41, %v7683_v31  ;;  %5103 = vmatpush3.bf16.msra.mxu1 %v5361_v47 }
 0x83d   : > { %4978 = vmatpush3.bf16.msra.mxu0 %v3065_v63  ;;  %5102 = vmatprep.subr.bf16.mxu1 %v8397_v61 }
 0x83e   : > { %4999 = vmatprep.subr.bf16.mxu0 %v8397_v61  ;;  %v3008_v17 = vpop.xlane.xlu0 %3007  ;;  %v3031_v27 = vpack.c.bf16 %v3024_v4, %v3023_v18  ;;  %v5522_v48 = vpop.eup %5521 }
 0x83f   : > { %4936 = vmatmul.mubr.msk.bf16.gmra.mrb[76].mxu0 %vm1885_vm9, %v2686_v16  ;;  %5525 = vrcp.f32 %v3008_v17  ;;  %v5524_v50 = vpop.eup %5523  ;;  %v3025_v3 = vmul.f32 %v5522_v48, %v7706_v28  ;;  %v5362_v17 = vld [vmem:[%s6800_s28 + $0x8] sm:$0xff]   ;;  %s6165_s28 = smov 24  }
 0x840   : > { %4979 = vmatprep.mubr.msk.bf16.mxu0 %vm6150_vm3, %v8397_v61  ;;  %5527 = vrcp.f32 %v3005_v57  ;;  %v3026_v0 = vmul.f32 %v5524_v50, %v7636_v1  ;;  %5104 = vmatpush3.bf16.msra.mxu1 %v5362_v17 }
 0x841   : > { %5047 = vmatprep.subr.bf16.mxu1 %v8397_v61 }
 0x842   : > { %v3011_v8 = vpop.xlane.xlu0 %3010  ;;  %v3032_v20 = vpack.c.bf16 %v3026_v0, %v3025_v3 }
 0x843   : > { %5529 = vrcp.f32 %v3011_v8 }
 0x847   : > { %4980 = vmatmul.mubr.msk.bf16.vlgmr.msra.gmra.mrb[80].mxu0 %vm1885_vm9, %v3030_v9 }
 0x848   : > { %4983 = vmatprep.mubr.msk.bf16.mxu0 %vm6150_vm3, %v8397_v61  ;;  %5000 = vmatpush3.bf16.msra.mxu0 %v5361_v47 }
 0x849   : > { %v5526_v38 = vpop.eup %5525  ;;  %5001 = vmatprep.subr.bf16.mxu0 %v8397_v61 }
 0x84a   : > { %v5528_v31 = vpop.eup %5527  ;;  %v3028_v32 = vmul.f32 %v5526_v38, %v7725_v46 }
 0x84b   : > { %v3027_v35 = vmul.f32 %v5528_v31, %v7718_v12 }
 0x84c   : > { %5002 = vmatpush3.bf16.msra.mxu0 %v5362_v17 }
 0x84d   : > { %v3033_v34 = vpack.c.bf16 %v3028_v32, %v3027_v35  ;;  %v5530_v11 = vpop.eup %5529  ;;  %5023 = vmatprep.subr.bf16.mxu0 %v8397_v61 }
 0x84e   : > { %v3029_v1 = vmul.f32 %v5530_v11, %v7729_v58 }
 0x84f   : > { %4984 = vmatmul.mubr.msk.bf16.gmra.mrb[84].mxu0 %vm1885_vm9, %v3031_v27 }
 0x850   : > { %4987 = vmatprep.mubr.msk.bf16.mxu0 %vm6150_vm3, %v8397_v61  ;;  %v3034_v24 = vpack.c.bf16 %v3029_v1, %v3029_v1 }
 0x857   : > { %4988 = vmatmul.mubr.msk.bf16.gmra.mrb[88].mxu0 %vm1885_vm9, %v3032_v20 }
 0x858   : > { %4991 = vmatprep.mubr.msk.bf16.mxu0 %vm6150_vm3, %v8397_v61 }
 0x85f   : > { %4992 = vmatmul.mubr.msk.bf16.gmra.mrb[92].mxu0 %vm1885_vm9, %v3033_v34 }
 0x860   : > { %4995 = vmatprep.mubr.msk.bf16.mxu0 %vm6150_vm3, %v8397_v61 }
 0x862   : > { %v7832_v28 = vpop.f32.mrb[20].mxu0 }
 0x863   : > { %v4801_v60 = vpop.f32.mrb[21].mxu0 }
 0x864   : > { %v7834_v45 = vpop.f32.mrb[22].mxu0 }
 0x865   : > { %v4802_v62 = vpop.f32.mrb[23].mxu0 }
 0x867   : > { %4996 = vmatmul.mubr.msk.bf16.gmra.mrb[96].mxu0 %vm1885_vm9, %v3034_v24 }
 0x868   : > { %5003 = vmatprep.mubr.msk.bf16.mxu0 %vm6150_vm3, %v8397_v61 }
 0x86c   : > { %v7839_v12 = vpop.f32.mrb[24].mxu0 }
 0x86d   : > { %v4805_v46 = vpop.f32.mrb[25].mxu0 }
 0x86e   : > { %v7841_v19 = vpop.f32.mrb[26].mxu0 }
 0x86f   : > { %v4806_v14 = vpop.f32.mrb[27].mxu0 }
 0x874   : > { %v7843_v29 = vpop.f32.mrb[28].mxu0 }
 0x875   : > { %v4809_v58 = vpop.f32.mrb[29].mxu0 }
 0x876   : > { %v7845_v22 = vpop.f32.mrb[30].mxu0 }
 0x877   : > { %v4810_v7 = vpop.f32.mrb[31].mxu0 }
 0x87c   : > { %v7847_v13 = vpop.f32.mrb[32].mxu0 }
 0x87d   : > { %v4813_v53 = vpop.f32.mrb[33].mxu0 }
 0x87e   : > { %v7849_v33 = vpop.f32.mrb[34].mxu0 }
 0x87f   : > { %v4814_v51 = vpop.f32.mrb[35].mxu0 }
 0x8ad   : > { %v7851_v5 = vpop.f32.mrb[36].mxu0 }
 0x8ae   : > { %v4817_v23 = vpop.f32.mrb[37].mxu0 }
 0x8af   : > { %v2092_v49 = vpop.f32.mrb[38].mxu0 }
 0x8b0   : > { %v4818_v6 = vpop.f32.mrb[39].mxu0 }
 0x8b5   : > { %v2405_v55 = vpop.f32.mrb[40].mxu0 }
 0x8b6   : > { %v4861_v21 = vpop.f32.mrb[41].mxu0 }
 0x8b7   : > { %v2408_v52 = vpop.f32.mrb[42].mxu0 }
 0x8b8   : > { %v5299_v30 = vpack.i.bf16 %v2408_v52, %v2405_v55  ;;  %v4862_v44 = vpop.f32.mrb[43].mxu0 }
 0x8ba   : > { %5300 = vrot.lane.b32.xlu0 %v5299_v30, %s6163_s4 }
 0x8bd   : > { %v2413_v40 = vpop.f32.mrb[44].mxu0 }
 0x8be   : > { %v4865_v36 = vpop.f32.mrb[45].mxu0 }
 0x8bf   : > { %v2416_v2 = vpop.f32.mrb[46].mxu0 }
 0x8c0   : > { %v5304_v10 = vpack.i.bf16 %v2416_v2, %v2413_v40  ;;  %v4866_v56 = vpop.f32.mrb[47].mxu0 }
 0x8c2   : > { %5305 = vrot.lane.b32.xlu1 %v5304_v10, %s6163_s4 }
 0x8c5   : > { %v2421_v39 = vpop.f32.mrb[48].mxu0 }
 0x8c6   : > { %v4869_v25 = vpop.f32.mrb[49].mxu0 }
 0x8c7   : > { %v2424_v57 = vpop.f32.mrb[50].mxu0 }
 0x8c8   : > { %v5329_v37 = vpack.i.bf16 %v2424_v57, %v2421_v39  ;;  %v4870_v26 = vpop.f32.mrb[51].mxu0 }
 0x8ca   : > { %5330 = vrot.lane.b32.xlu0 %v5329_v37, %s6163_s4 }
 0x8cd   : > { %v7856_v54 = vpop.f32.mrb[52].mxu0 }
 0x8ce   : > { %v4873_v63 = vpop.f32.mrb[53].mxu0 }
 0x8cf   : > { %v7858_v16 = vpop.f32.mrb[54].mxu0 }
 0x8d0   : > { %v5344_v43 = vpack.i.bf16 %v7858_v16, %v7856_v54  ;;  %v4874_v42 = vpop.f32.mrb[55].mxu0 }
 0x8d5   : > { %v7862_v59 = vpop.f32.mrb[56].mxu0 }
 0x8d6   : > { %v4877_v15 = vpop.f32.mrb[57].mxu0 }
 0x8d7   : > { %v2440_v9 = vpop.f32.mrb[58].mxu0 }
 0x8d8   : > { %v4878_v41 = vpop.f32.mrb[59].mxu0 }
 0x8dd   : > { %v2753_v4 = vpop.f32.mrb[60].mxu0 }
 0x8de   : > { %v4921_v18 = vpop.f32.mrb[61].mxu0 }
 0x8df   : > { %v2756_v27 = vpop.f32.mrb[62].mxu0 }
 0x8e0   : > { %v5309_v48 = vpack.i.bf16 %v2756_v27, %v2753_v4  ;;  %v4922_v50 = vpop.f32.mrb[63].mxu0 }
 0x8e2   : > { %5310 = vrot.lane.b32.xlu1 %v5309_v48, %s6164_s8 }
 0x8fa   : > { %v2761_v8 = vpop.f32.mrb[64].mxu0 }
 0x8fb   : > { %v4925_v3 = vpop.f32.mrb[65].mxu0 }
 0x8fc   : > { %v2764_v0 = vpop.f32.mrb[66].mxu0 }
 0x8fd   : > { %v5319_v20 = vpack.i.bf16 %v2764_v0, %v2761_v8  ;;  %v4926_v38 = vpop.f32.mrb[67].mxu0 }
 0x902   : > { %v2769_v31 = vpop.f32.mrb[68].mxu0 }
 0x903   : > { %v4929_v32 = vpop.f32.mrb[69].mxu0 }
 0x904   : > { %v2772_v35 = vpop.f32.mrb[70].mxu0 }
 0x905   : > { %v5334_v34 = vpack.i.bf16 %v2772_v35, %v2769_v31  ;;  %v4930_v11 = vpop.f32.mrb[71].mxu0 }
 0x90a   : > { %v2777_v1 = vpop.f32.mrb[72].mxu0 }
 0x90b   : > { %v4933_v60 = vpop.f32.mrb[73].mxu0 }
 0x90c   : > { %v2780_v62 = vpop.f32.mrb[74].mxu0 }
 0x90d   : > { %v5349_v24 = vpack.i.bf16 %v2780_v62, %v2777_v1  ;;  %v4934_v46 = vpop.f32.mrb[75].mxu0 }
 0x912   : > { %v2785_v14 = vpop.f32.mrb[76].mxu0 }
 0x913   : > { %v4937_v58 = vpop.f32.mrb[77].mxu0 }
 0x914   : > { %v2788_v7 = vpop.f32.mrb[78].mxu0 }
 0x915   : > { %v4938_v53 = vpop.f32.mrb[79].mxu0 }
 0x91a   : > { %v3101_v51 = vpop.f32.mrb[80].mxu0 }
 0x91b   : > { %v4981_v23 = vpop.f32.mrb[81].mxu0 }
 0x91c   : > { %v3104_v49 = vpop.f32.mrb[82].mxu0 }
 0x91d   : > { %v5314_v6 = vpack.i.bf16 %v3104_v49, %v3101_v51  ;;  %v4982_v55 = vpop.f32.mrb[83].mxu0 }
 0x91f   : > { %5315 = vrot.lane.b32.xlu1 %v5314_v6, %s6165_s28 }
 0x922   : > { %v3109_v21 = vpop.f32.mrb[84].mxu0 }
 0x923   : > { %5320 = vrot.lane.b32.xlu1 %v5319_v20, %s6164_s8  ;;  %v4985_v52 = vpop.f32.mrb[85].mxu0 }
 0x924   : > { %v3112_v30 = vpop.f32.mrb[86].mxu0 }
 0x925   : > { %v5324_v44 = vpack.i.bf16 %v3112_v30, %v3109_v21  ;;  %v4986_v40 = vpop.f32.mrb[87].mxu0 }
 0x927   : > { %5325 = vrot.lane.b32.xlu1 %v5324_v44, %s6165_s28 }
 0x92a   : > { %v3117_v36 = vpop.f32.mrb[88].mxu0 }
 0x92b   : > { %5335 = vrot.lane.b32.xlu1 %v5334_v34, %s6164_s8  ;;  %v4989_v2 = vpop.f32.mrb[89].mxu0 }
 0x92c   : > { %v3120_v10 = vpop.f32.mrb[90].mxu0  ;;  %v5301_v9 = vpop.permute.xlu0 %5300 }
 0x92d   : > { %v5339_v56 = vpack.i.bf16 %v3120_v10, %v3117_v36  ;;  %v4990_v39 = vpop.f32.mrb[91].mxu0  ;;  %v5303_v41 = vunpack.i.h.bf16 %v5301_v9  ;;  %v5302_v17 = vunpack.i.l.bf16 %v5301_v9 }
 0x92f   : > { %5345 = vrot.lane.b32.xlu1 %v5344_v43, %s6163_s4  ;;  %5340 = vrot.lane.b32.xlu0 %v5339_v56, %s6165_s28  ;;  %v3247_v48 = vsel %vm1764_vm4, %v7832_v28, %v5302_v17 }
 0x932   : > { %v3125_v25 = vpop.f32.mrb[92].mxu0 }
 0x933   : > { %5350 = vrot.lane.b32.xlu0 %v5349_v24, %s6164_s8  ;;  %v4993_v57 = vpop.f32.mrb[93].mxu0 }
 0x934   : > { %v3128_v37 = vpop.f32.mrb[94].mxu0  ;;  %v5306_v43 = vpop.permute.xlu1 %5305 }
 0x935   : > { %v5354_v26 = vpack.i.bf16 %v3128_v37, %v3125_v25  ;;  %v4994_v54 = vpop.f32.mrb[95].mxu0  ;;  %v5308_v35 = vunpack.i.h.bf16 %v5306_v43  ;;  %v5307_v34 = vunpack.i.l.bf16 %v5306_v43 }
 0x937   : > { %3164 = vrot.lane.b32.xlu0 %v7862_v59, %s6163_s4  ;;  %5355 = vrot.lane.b32.xlu1 %v5354_v26, %s6165_s28  ;;  %v3248_v59 = vsel %vm1764_vm4, %v7834_v45, %v5303_v41  ;;  %v3250_v45 = vsel %vm1764_vm4, %v7841_v19, %v5308_v35  ;;  %v3249_v60 = vsel %vm1764_vm4, %v7839_v12, %v5307_v34 }
 0x93a   : > { %v3133_v63 = vpop.f32.mrb[96].mxu0 }
 0x93b   : > { %3200 = vrot.lane.b32.xlu1 %v2785_v14, %s6164_s8  ;;  %3236 = vrot.lane.b32.xlu0 %v3133_v63, %s6165_s28  ;;  %v4997_v16 = vpop.f32.mrb[97].mxu0 }
 0x93c   : > { %v3136_v42 = vpop.f32.mrb[98].mxu0  ;;  %v5331_v46 = vpop.permute.xlu0 %5330 }
 0x93d   : > { %v4998_v15 = vpop.f32.mrb[99].mxu0  ;;  %v5333_v49 = vunpack.i.h.bf16 %v5331_v46  ;;  %v5332_v6 = vunpack.i.l.bf16 %v5331_v46  ;;  %v5570_v46 = vld [vmem:[#allocation2 + $0x18] sm:$0xff] }
 0x93f   : > { %v3252_v21 = vsel %vm1764_vm4, %v7845_v22, %v5333_v49  ;;  %v3251_v52 = vsel %vm1764_vm4, %v7843_v29, %v5332_v6  ;;  %v5571_v49 = vld [vmem:[#allocation2 + $0x20] sm:$0xff] }
 0x954   : > { %v5311_v47 = vpop.permute.xlu1 %5310 }
 0x955   : > { %v5313_v4 = vunpack.i.h.bf16 %v5311_v47  ;;  %v5312_v18 = vunpack.i.l.bf16 %v5311_v47 }
 0x957   : > { %v3258_v3 = vsel %vm3256_vm0, %v3248_v59, %v5313_v4  ;;  %v3257_v0 = vsel %vm3256_vm0, %v3247_v48, %v5312_v18 }
 0x991   : > { %v5316_v27 = vpop.permute.xlu1 %5315 }
 0x992   : > { %v5318_v50 = vunpack.i.h.bf16 %v5316_v27  ;;  %v5317_v8 = vunpack.i.l.bf16 %v5316_v27 }
 0x994   : > { %v3267_v20 = vsel %vm3266_vm1, %v3257_v0, %v5317_v8  ;;  %v3268_v38 = vsel %vm3266_vm1, %v3258_v3, %v5318_v50  ;;  %v4554_v50 = vld [vmem:[%s8402_s16] ss:$0 sm:$0xff] }
 0x995   : > { %v3276_v31 = vpack.c.bf16 %v3268_v38, %v3267_v20  ;;  %v5321_v32 = vpop.permute.xlu1 %5320  ;;  %v5568_v38 = vld [vmem:[#allocation2 + $0x8] sm:$0xff] }
 0x996   : > { %v5323_v11 = vunpack.i.h.bf16 %v5321_v32  ;;  %v5322_v1 = vunpack.i.l.bf16 %v5321_v32 }
 0x997   : > { %5004 = vmatmul.mubr.msk.bf16.vlgmr.msra.gmra.mrb[100].mxu0 %vm1480_vm2, %v3276_v31 }
 0x998   : > { %5007 = vmatprep.mubr.msk.bf16.mxu0 %vm6150_vm3, %v8397_v61  ;;  %v3259_v14 = vsel %vm3256_vm0, %v3249_v60, %v5322_v1  ;;  %v3260_v58 = vsel %vm3256_vm0, %v3250_v45, %v5323_v11 }
 0x999   : > { %v5326_v28 = vpop.permute.xlu1 %5325 }
 0x99a   : > { %v5328_v62 = vunpack.i.h.bf16 %v5326_v28  ;;  %v5327_v24 = vunpack.i.l.bf16 %v5326_v28  ;;  %v5569_v28 = vld [vmem:[#allocation2 + $0x10] sm:$0xff] }
 0x99c   : > { %v3269_v7 = vsel %vm3266_vm1, %v3259_v14, %v5327_v24  ;;  %v3270_v53 = vsel %vm3266_vm1, %v3260_v58, %v5328_v62 }
 0x99d   : > { %v3277_v51 = vpack.c.bf16 %v3270_v53, %v3269_v7  ;;  %v5336_v23 = vpop.permute.xlu1 %5335 }
 0x99e   : > { %v5338_v55 = vunpack.i.h.bf16 %v5336_v23  ;;  %v5337_v19 = vunpack.i.l.bf16 %v5336_v23 }
 0x99f   : > { %5008 = vmatmul.mubr.msk.bf16.gmra.mrb[104].mxu0 %vm1480_vm2, %v3277_v51 }
 0x9a0   : > { %5027 = vmatprep.mubr.msk.bf16.mxu0 %vm6150_vm3, %v8397_v61  ;;  %v3262_v40 = vsel %vm3256_vm0, %v3252_v21, %v5338_v55  ;;  %v3261_v36 = vsel %vm3256_vm0, %v3251_v52, %v5337_v19  ;;  %v5572_v21 = vld [vmem:[#allocation2 + $0x28] sm:$0xff] }
 0x9a1   : > { %v5341_v12 = vpop.permute.xlu0 %5340  ;;  %v5346_v2 = vpop.permute.xlu1 %5345 }
 0x9a2   : > { %v5343_v30 = vunpack.i.h.bf16 %v5341_v12  ;;  %v5342_v44 = vunpack.i.l.bf16 %v5341_v12  ;;  %v5348_v57 = vunpack.i.h.bf16 %v5346_v2  ;;  %v5347_v37 = vunpack.i.l.bf16 %v5346_v2 }
 0x9a4   : > { %v3271_v10 = vsel %vm3266_vm1, %v3261_v36, %v5342_v44  ;;  %v3272_v56 = vsel %vm3266_vm1, %v3262_v40, %v5343_v30  ;;  %v3254_v63 = vsel %vm1764_vm4, %v7849_v33, %v5348_v57  ;;  %v3253_v16 = vsel %vm1764_vm4, %v7847_v13, %v5347_v37  ;;  %v5574_v37 = vld [vmem:[#allocation2 + $0x38] sm:$0xff] }
 0x9a5   : > { %v3278_v39 = vpack.c.bf16 %v3272_v56, %v3271_v10  ;;  %v5351_v25 = vpop.permute.xlu0 %5350  ;;  %v5573_v10 = vld [vmem:[#allocation2 + $0x30] sm:$0xff] }
 0x9a6   : > { %v5353_v26 = vunpack.i.h.bf16 %v5351_v25  ;;  %v5352_v22 = vunpack.i.l.bf16 %v5351_v25 }
 0x9a7   : > { %5012 = vmatmul.mubr.msk.bf16.vlgmr.msra.gmra.mrb[80].mxu1 %vm1480_vm2, %v3278_v39 }
 0x9a8   : > { %5015 = vmatprep.mubr.msk.bf16.mxu1 %vm6150_vm3, %v8397_v61  ;;  %v3263_v43 = vsel %vm3256_vm0, %v3253_v16, %v5352_v22  ;;  %v3264_v9 = vsel %vm3256_vm0, %v3254_v63, %v5353_v26 }
 0x9a9   : > { %v3165_v29 = vpop.permute.xlu0 %3164  ;;  %v5356_v54 = vpop.permute.xlu1 %5355 }
 0x9aa   : > { %v5358_v42 = vunpack.i.h.bf16 %v5356_v54  ;;  %v5357_v15 = vunpack.i.l.bf16 %v5356_v54  ;;  %v3255_v18 = vsel %vm1764_vm4, %v7851_v5, %v3165_v29  ;;  %v5567_v5 = vld [vmem:[#allocation2] sm:$0xff]  ;;  %vm3791_vm4 = vcmask 523264  }
 0x9ac   : > { %v3273_v47 = vsel %vm3266_vm1, %v3263_v43, %v5357_v15  ;;  %v3274_v41 = vsel %vm3266_vm1, %v3264_v9, %v5358_v42  ;;  %v5575_v42 = vld [vmem:[#allocation2 + $0x40] sm:$0xff] }
 0x9ad   : > { %v3279_v17 = vpack.c.bf16 %v3274_v41, %v3273_v47  ;;  %v3201_v4 = vpop.permute.xlu1 %3200  ;;  %v3237_v33 = vpop.permute.xlu0 %3236 }
 0x9ae   : > { %v3265_v27 = vsel %vm3256_vm0, %v3255_v18, %v3201_v4 }
 0x9af   : > { %5016 = vmatmul.mubr.msk.bf16.gmra.mrb[84].mxu1 %vm1480_vm2, %v3279_v17  ;;  %v3275_v13 = vsel %vm3266_vm1, %v3265_v27, %v3237_v33 }
 0x9b0   : > { %5019 = vmatprep.mubr.msk.bf16.mxu1 %vm6150_vm3, %v8397_v61  ;;  %v3280_v59 = vpack.c.bf16 %v3275_v13, %v3275_v13 }
 0x9b7   : > { %5020 = vmatmul.mubr.msk.bf16.gmra.mrb[88].mxu1 %vm1480_vm2, %v3280_v59 }
 0x9b8   : > { %5055 = vmatprep.mubr.msk.bf16.mxu1 %vm6150_vm3, %v8397_v61 }
 0xa6a   : > { %v3346_v48 = vpop.f32.mrb[100].mxu0 }
 0xa6b   : > { %v3384_v8 = vadd.f32 %v5567_v5, %v3346_v48  ;;  %v5005_v3 = vpop.f32.mrb[101].mxu0 }
 0xa6c   : > { %v3349_v0 = vpop.f32.mrb[102].mxu0 }
 0xa6d   : > { %v7931_v20 = vadd.f32 %v4554_v50, %v3384_v8  ;;  %v3385_v31 = vadd.f32 %v5568_v38, %v3349_v0  ;;  %v5006_v32 = vpop.f32.mrb[103].mxu0 }
 0xa6f   : > { %v7933_v35 = vadd.f32 %v4554_v50, %v3385_v31  ;;  %v3411_v34 = vsel %vm1480_vm2, %v7931_v20, 0.0 }
 0xa70   : > { %3412 = vadd.xlane.f32.xlu1 %v3411_v34 }
 0xa71   : > { %v3414_v11 = vsel %vm1480_vm2, %v7933_v35, 0.0 }
 0xa72   : > { %3415 = vadd.xlane.f32.xlu0 %v3414_v11  ;;  %v3354_v1 = vpop.f32.mrb[104].mxu0 }
 0xa73   : > { %v3386_v45 = vadd.f32 %v5569_v28, %v3354_v1  ;;  %v5009_v60 = vpop.f32.mrb[105].mxu0 }
 0xa74   : > { %v3357_v62 = vpop.f32.mrb[106].mxu0 }
 0xa75   : > { %v7939_v24 = vadd.f32 %v4554_v50, %v3386_v45  ;;  %v3387_v14 = vadd.f32 %v5570_v46, %v3357_v62  ;;  %v5010_v58 = vpop.f32.mrb[107].mxu0 }
 0xa77   : > { %v7941_v7 = vadd.f32 %v4554_v50, %v3387_v14  ;;  %v3417_v53 = vsel %vm1480_vm2, %v7939_v24, 0.0 }
 0xa78   : > { %3418 = vadd.xlane.f32.xlu0 %v3417_v53 }
 0xa79   : > { %v3420_v51 = vsel %vm1480_vm2, %v7941_v7, 0.0 }
 0xa7a   : > { %v3362_v23 = vpop.f32.mrb[80].mxu1  ;;  %3421 = vadd.xlane.f32.xlu1 %v3420_v51 }
 0xa7b   : > { %v3388_v6 = vadd.f32 %v5571_v49, %v3362_v23  ;;  %v5013_v55 = vpop.f32.mrb[81].mxu1 }
 0xa7c   : > { %v3365_v19 = vpop.f32.mrb[82].mxu1 }
 0xa7d   : > { %v7947_v12 = vadd.f32 %v4554_v50, %v3388_v6  ;;  %v3389_v52 = vadd.f32 %v5572_v21, %v3365_v19  ;;  %v5014_v30 = vpop.f32.mrb[83].mxu1 }
 0xa7f   : > { %v7949_v44 = vadd.f32 %v4554_v50, %v3389_v52  ;;  %v3423_v40 = vsel %vm1480_vm2, %v7947_v12, 0.0 }
 0xa80   : > { %3424 = vadd.xlane.f32.xlu0 %v3423_v40 }
 0xa81   : > { %v3426_v36 = vsel %vm1480_vm2, %v7949_v44, 0.0 }
 0xa82   : > { %v3370_v2 = vpop.f32.mrb[84].mxu1  ;;  %3427 = vadd.xlane.f32.xlu1 %v3426_v36 }
 0xa83   : > { %v3390_v56 = vadd.f32 %v5573_v10, %v3370_v2  ;;  %v5017_v39 = vpop.f32.mrb[85].mxu1 }
 0xa84   : > { %v3373_v25 = vpop.f32.mrb[86].mxu1 }
 0xa85   : > { %v7955_v57 = vadd.f32 %v4554_v50, %v3390_v56  ;;  %v3391_v26 = vadd.f32 %v5574_v37, %v3373_v25  ;;  %v5018_v22 = vpop.f32.mrb[87].mxu1 }
 0xa87   : > { %v7957_v29 = vadd.f32 %v4554_v50, %v3391_v26  ;;  %v3429_v54 = vsel %vm1480_vm2, %v7955_v57, 0.0 }
 0xa88   : > { %3430 = vadd.xlane.f32.xlu0 %v3429_v54  ;;  %v5363_v54 = vld [vmem:[%s6805_s13] sm:$0xff]  }
 0xa89   : > { %v3432_v63 = vsel %vm1480_vm2, %v7957_v29, 0.0  ;;  %5024 = vmatpush3.bf16.msra.mxu0 %v5363_v54 }
 0xa8a   : > { %v3378_v16 = vpop.f32.mrb[88].mxu1  ;;  %3433 = vadd.xlane.f32.xlu1 %v3432_v63  ;;  %5025 = vmatprep.subr.bf16.mxu0 %v8397_v61  ;;  %v5364_v63 = vld [vmem:[%s6805_s13 + $0x8] sm:$0xff]   ;;  %s8403_s13 = scalar_lea.vmem [#allocation15], %s6764_s1 }
 0xa8b   : > { %v3392_v15 = vadd.f32 %v5575_v42, %v3378_v16  ;;  %v5021_v43 = vpop.f32.mrb[89].mxu1 }
 0xa8c   : > { %v3381_v9 = vpop.f32.mrb[90].mxu1 }
 0xa8d   : > { %v7963_v47 = vadd.f32 %v4554_v50, %v3392_v15  ;;  %v5022_v41 = vpop.f32.mrb[91].mxu1  ;;  %5026 = vmatpush3.bf16.msra.mxu0 %v5364_v63 }
 0xa8f   : > { %v3435_v17 = vsel %vm1480_vm2, %v7963_v47, 0.0 }
 0xa90   : > { %3436 = vadd.xlane.f32.xlu0 %v3435_v17 }
 0xafd   : > { %v3413_v4 = vpop.xlane.xlu1 %3412 }
 0xafe   : > { %v3438_v18 = vmul.f32 0.03125, %v3413_v4 }
 0xaff   : > { %v3416_v33 = vpop.xlane.xlu0 %3415 }
 0xb00   : > { %v7968_v27 = vsub.f32 %v7931_v20, %v3438_v18  ;;  %v3439_v13 = vmul.f32 0.03125, %v3416_v33 }
 0xb02   : > { %v7971_v59 = vsub.f32 %v7933_v35, %v3439_v13  ;;  %v3456_v48 = vmul.f32 %v7968_v27, %v7968_v27 }
 0xb04   : > { %v3465_v50 = vsel %vm1480_vm2, %v3456_v48, 0.0  ;;  %v3457_v5 = vmul.f32 %v7971_v59, %v7971_v59 }
 0xb05   : > { %v3419_v8 = vpop.xlane.xlu0 %3418  ;;  %3466 = vadd.xlane.f32.xlu1 %v3465_v50 }
 0xb06   : > { %v3440_v3 = vmul.f32 0.03125, %v3419_v8  ;;  %v3468_v0 = vsel %vm1480_vm2, %v3457_v5, 0.0  ;;  %v8026_v5 = vld [vmem:[%s8403_s13] ss:$0 sm:$0xff] }
 0xb07   : > { %3469 = vadd.xlane.f32.xlu0 %v3468_v0  ;;  %v3422_v38 = vpop.xlane.xlu1 %3421 }
 0xb08   : > { %v7980_v31 = vsub.f32 %v7939_v24, %v3440_v3  ;;  %v3441_v32 = vmul.f32 0.03125, %v3422_v38 }
 0xb0a   : > { %v7983_v34 = vsub.f32 %v7941_v7, %v3441_v32  ;;  %v3458_v11 = vmul.f32 %v7980_v31, %v7980_v31 }
 0xb0c   : > { %v3471_v1 = vsel %vm1480_vm2, %v3458_v11, 0.0  ;;  %v3459_v28 = vmul.f32 %v7983_v34, %v7983_v34 }
 0xb0d   : > { %v3425_v45 = vpop.xlane.xlu0 %3424  ;;  %3472 = vadd.xlane.f32.xlu1 %v3471_v1 }
 0xb0e   : > { %v3442_v60 = vmul.f32 0.03125, %v3425_v45  ;;  %v3474_v62 = vsel %vm1480_vm2, %v3459_v28, 0.0  ;;  %v4556_v28 = vld [vmem:[%s8404_s7] ss:$0 sm:$0xff] }
 0xb0f   : > { %3475 = vadd.xlane.f32.xlu0 %v3474_v62  ;;  %v3428_v46 = vpop.xlane.xlu1 %3427 }
 0xb10   : > { %v7992_v14 = vsub.f32 %v7947_v12, %v3442_v60  ;;  %v3443_v58 = vmul.f32 0.03125, %v3428_v46 }
 0xb12   : > { %v7995_v53 = vsub.f32 %v7949_v44, %v3443_v58  ;;  %v3460_v51 = vmul.f32 %v7992_v14, %v7992_v14 }
 0xb14   : > { %v3477_v23 = vsel %vm1480_vm2, %v3460_v51, 0.0  ;;  %v3461_v49 = vmul.f32 %v7995_v53, %v7995_v53 }
 0xb15   : > { %v3431_v6 = vpop.xlane.xlu0 %3430  ;;  %3478 = vadd.xlane.f32.xlu1 %v3477_v23 }
 0xb16   : > { %v3444_v55 = vmul.f32 0.03125, %v3431_v6  ;;  %v3480_v19 = vsel %vm1480_vm2, %v3461_v49, 0.0 }
 0xb17   : > { %3481 = vadd.xlane.f32.xlu0 %v3480_v19  ;;  %v3434_v21 = vpop.xlane.xlu1 %3433 }
 0xb18   : > { %v8004_v52 = vsub.f32 %v7955_v57, %v3444_v55  ;;  %v3445_v30 = vmul.f32 0.03125, %v3434_v21 }
 0xb1a   : > { %v8007_v40 = vsub.f32 %v7957_v29, %v3445_v30  ;;  %v3462_v36 = vmul.f32 %v8004_v52, %v8004_v52 }
 0xb1c   : > { %v3483_v2 = vsel %vm1480_vm2, %v3462_v36, 0.0  ;;  %v3463_v10 = vmul.f32 %v8007_v40, %v8007_v40 }
 0xb1d   : > { %v3437_v56 = vpop.xlane.xlu0 %3436  ;;  %3484 = vadd.xlane.f32.xlu1 %v3483_v2 }
 0xb1e   : > { %v3446_v39 = vmul.f32 0.03125, %v3437_v56  ;;  %v3486_v25 = vsel %vm1480_vm2, %v3463_v10, 0.0 }
 0xb1f   : > { %3487 = vadd.xlane.f32.xlu0 %v3486_v25 }
 0xb20   : > { %v8016_v37 = vsub.f32 %v7963_v47, %v3446_v39 }
 0xb22   : > { %v3464_v26 = vmul.f32 %v8016_v37, %v8016_v37 }
 0xb24   : > { %v3489_v22 = vsel %vm1480_vm2, %v3464_v26, 0.0 }
 0xb25   : > { %3490 = vadd.xlane.f32.xlu1 %v3489_v22 }
 0xb92   : > { %v3467_v16 = vpop.xlane.xlu1 %3466 }
 0xb93   : > { %v3492_v42 = vmul.f32 0.03125, %v3467_v16 }
 0xb94   : > { %v3470_v15 = vpop.xlane.xlu0 %3469 }
 0xb95   : > { %v3501_v43 = vadd.f32 1e-05, %v3492_v42  ;;  %v3493_v9 = vmul.f32 0.03125, %v3470_v15 }
 0xb97   : > { %5531 = vrsqrt.f32 %v3501_v43  ;;  %v3502_v41 = vadd.f32 1e-05, %v3493_v9 }
 0xb99   : > { %5533 = vrsqrt.f32 %v3502_v41 }
 0xb9a   : > { %v3473_v17 = vpop.xlane.xlu1 %3472 }
 0xb9b   : > { %v3494_v4 = vmul.f32 0.03125, %v3473_v17 }
 0xb9c   : > { %v3476_v18 = vpop.xlane.xlu0 %3475 }
 0xb9d   : > { %v3503_v33 = vadd.f32 1e-05, %v3494_v4  ;;  %v3495_v13 = vmul.f32 0.03125, %v3476_v18 }
 0xb9f   : > { %5535 = vrsqrt.f32 %v3503_v33  ;;  %v3504_v48 = vadd.f32 1e-05, %v3495_v13 }
 0xba1   : > { %v5532_v50 = vpop.eup %5531  ;;  %5537 = vrsqrt.f32 %v3504_v48 }
 0xba2   : > { %v3519_v8 = vmul.f32 %v5532_v50, %v7968_v27  ;;  %v3479_v3 = vpop.xlane.xlu1 %3478 }
 0xba3   : > { %v5534_v0 = vpop.eup %5533  ;;  %v3496_v38 = vmul.f32 0.03125, %v3479_v3 }
 0xba4   : > { %v3534_v32 = vmul.f32 %v8026_v5, %v3519_v8  ;;  %v3520_v11 = vmul.f32 %v5534_v0, %v7971_v59  ;;  %v3482_v1 = vpop.xlane.xlu0 %3481 }
 0xba5   : > { %v3505_v45 = vadd.f32 1e-05, %v3496_v38  ;;  %v3497_v60 = vmul.f32 0.03125, %v3482_v1  ;;  %v8070_v1 = vld [vmem:[%s8405_s27] ss:$0 sm:$0xff] }
 0xba6   : > { %v3535_v62 = vmul.f32 %v8026_v5, %v3520_v11  ;;  %v3549_v58 = vadd.f32 %v4556_v28, %v3534_v32  ;;  %v5365_v32 = vld [vmem:[%s6810_s25] sm:$0xff]   ;;  %v5366_v11 = vld [vmem:[%s6810_s25 + $0x8] sm:$0xff]  }
 0xba7   : > { %5539 = vrsqrt.f32 %v3505_v45  ;;  %v3506_v46 = vadd.f32 1e-05, %v3497_v60  ;;  %5048 = vmatpush3.bf16.msra.mxu1 %v5365_v32 }
 0xba8   : > { %v3550_v51 = vadd.f32 %v4556_v28, %v3535_v62  ;;  %5049 = vmatprep.subr.bf16.mxu1 %v8397_v61 }
 0xba9   : > { %v5536_v23 = vpop.eup %5535  ;;  %5541 = vrsqrt.f32 %v3506_v46 }
 0xbaa   : > { %v3521_v27 = vmul.f32 %v5536_v23, %v7980_v31  ;;  %v3485_v49 = vpop.xlane.xlu1 %3484  ;;  %v3558_v6 = vpack.c.bf16 %v3550_v51, %v3549_v58 }
 0xbab   : > { %v5538_v55 = vpop.eup %5537  ;;  %v3498_v19 = vmul.f32 0.03125, %v3485_v49  ;;  %5050 = vmatpush3.bf16.msra.mxu1 %v5366_v11 }
 0xbac   : > { %v3522_v59 = vmul.f32 %v5538_v55, %v7983_v34  ;;  %v3488_v21 = vpop.xlane.xlu0 %3487  ;;  %5028 = vmatmul.mubr.msk.bf16.vlgmr.msra.gmra.mrb[108].mxu0 %vm1480_vm2, %v3558_v6  ;;  %v3536_v30 = vmul.f32 %v8026_v5, %v3521_v27  ;;  %5051 = vmatprep.subr.bf16.mxu1 %v8397_v61 }
 0xbad   : > { %v3507_v36 = vadd.f32 1e-05, %v3498_v19  ;;  %v3499_v2 = vmul.f32 0.03125, %v3488_v21  ;;  %5031 = vmatprep.mubr.msk.bf16.mxu0 %vm6150_vm3, %v8397_v61 }
 0xbae   : > { %v3537_v10 = vmul.f32 %v8026_v5, %v3522_v59  ;;  %v3551_v56 = vadd.f32 %v4556_v28, %v3536_v30 }
 0xbaf   : > { %5543 = vrsqrt.f32 %v3507_v36  ;;  %v3508_v31 = vadd.f32 1e-05, %v3499_v2 }
 0xbb0   : > { %v3552_v39 = vadd.f32 %v4556_v28, %v3537_v10 }
 0xbb1   : > { %v5540_v25 = vpop.eup %5539  ;;  %5545 = vrsqrt.f32 %v3508_v31 }
 0xbb2   : > { %v3523_v34 = vmul.f32 %v5540_v25, %v7992_v14  ;;  %v3491_v26 = vpop.xlane.xlu1 %3490  ;;  %v3559_v22 = vpack.c.bf16 %v3552_v39, %v3551_v56 }
 0xbb3   : > { %v5542_v54 = vpop.eup %5541  ;;  %v3500_v63 = vmul.f32 0.03125, %v3491_v26 }
 0xbb4   : > { %v3524_v16 = vmul.f32 %v5542_v54, %v7995_v53  ;;  %5032 = vmatmul.mubr.msk.bf16.gmra.mrb[112].mxu0 %vm1480_vm2, %v3559_v22  ;;  %v3538_v42 = vmul.f32 %v8026_v5, %v3523_v34 }
 0xbb5   : > { %v3509_v15 = vadd.f32 1e-05, %v3500_v63  ;;  %5035 = vmatprep.mubr.msk.bf16.mxu0 %vm6150_vm3, %v8397_v61 }
 0xbb6   : > { %v3539_v43 = vmul.f32 %v8026_v5, %v3524_v16  ;;  %v3553_v9 = vadd.f32 %v4556_v28, %v3538_v42 }
 0xbb7   : > { %5547 = vrsqrt.f32 %v3509_v15 }
 0xbb8   : > { %v3554_v41 = vadd.f32 %v4556_v28, %v3539_v43 }
 0xbb9   : > { %v5544_v14 = vpop.eup %5543 }
 0xbba   : > { %v3525_v17 = vmul.f32 %v5544_v14, %v8004_v52  ;;  %v3560_v4 = vpack.c.bf16 %v3554_v41, %v3553_v9 }
 0xbbb   : > { %v5546_v18 = vpop.eup %5545 }
 0xbbc   : > { %v3526_v53 = vmul.f32 %v5546_v18, %v8007_v40  ;;  %5036 = vmatmul.mubr.msk.bf16.gmra.mrb[116].mxu0 %vm1480_vm2, %v3560_v4  ;;  %v3540_v33 = vmul.f32 %v8026_v5, %v3525_v17 }
 0xbbd   : > { %5039 = vmatprep.mubr.msk.bf16.mxu0 %vm6150_vm3, %v8397_v61 }
 0xbbe   : > { %v3541_v13 = vmul.f32 %v8026_v5, %v3526_v53  ;;  %v3555_v48 = vadd.f32 %v4556_v28, %v3540_v33 }
 0xbc0   : > { %v3556_v50 = vadd.f32 %v4556_v28, %v3541_v13 }
 0xbc1   : > { %v5548_v8 = vpop.eup %5547 }
 0xbc2   : > { %v3527_v52 = vmul.f32 %v5548_v8, %v8016_v37  ;;  %v3561_v3 = vpack.c.bf16 %v3556_v50, %v3555_v48  ;;  %v5367_v37 = vld [vmem:[%s6810_s25 + $0x10] sm:$0xff]  }
 0xbc3   : > { %5052 = vmatpush3.bf16.msra.mxu1 %v5367_v37 }
 0xbc4   : > { %5040 = vmatmul.mubr.msk.bf16.gmra.mrb[120].mxu0 %vm1480_vm2, %v3561_v3  ;;  %v3542_v40 = vmul.f32 %v8026_v5, %v3527_v52  ;;  %5053 = vmatprep.subr.bf16.mxu1 %v8397_v61  ;;  %v5368_v5 = vld [vmem:[%s6810_s25 + $0x18] sm:$0xff]   ;;  %s8406_s25 = scalar_lea.vmem [#allocation18], %s6764_s1  ;;  %s8407_s1 = sld [smem:[#allocation34_spill]] }
 0xbc5   : > { %5043 = vmatprep.mubr.msk.bf16.mxu0 %vm6150_vm3, %v8397_v61 }
 0xbc6   : > { %v3557_v0 = vadd.f32 %v4556_v28, %v3542_v40 }
 0xbc7   : > { %5054 = vmatpush3.bf16.msra.mxu1 %v5368_v5 }
 0xbc8   : > { %v3562_v38 = vpack.c.bf16 %v3557_v0, %v3557_v0 }
 0xbca   : > { %p4575_p12 = scmp.ne.s32.totalorder %s8407_s1, 1 }
 0xbcb   : > { %s8408_s30 = sld [smem:[#allocation61_spill]] (!%p4575_p12)  ;;  %s8409_s16 = sld [smem:[#allocation60_spill]] (!%p4575_p12) }
 0xbcc   : > { %5044 = vmatmul.mubr.msk.bf16.gmra.mrb[124].mxu0 %vm1480_vm2, %v3562_v38  ;;  %s8410_s27 = sld [smem:[#allocation62_spill]] (!%p4575_p12) }
 0xc7f   : > { %v3635_v28 = vpop.f32.mrb[108].mxu0 }
 0xc80   : > { %v8073_v45 = vadd.f32 %v8070_v1, %v3635_v28  ;;  %v5029_v60 = vpop.f32.mrb[109].mxu0 }
 0xc81   : > { %v3638_v62 = vpop.f32.mrb[110].mxu0 }
 0xc82   : > { %v3673_v46 = vmul.f32 %v8073_v45, %v8073_v45  ;;  %v8078_v58 = vadd.f32 %v8070_v1, %v3638_v62  ;;  %v5030_v51 = vpop.f32.mrb[111].mxu0 }
 0xc84   : > { %v3682_v23 = vmul.f32 %v3673_v46, %v8073_v45  ;;  %v3674_v27 = vmul.f32 %v8078_v58, %v8078_v58 }
 0xc86   : > { %v3691_v49 = vmul.f32 0.044715, %v3682_v23  ;;  %v3683_v6 = vmul.f32 %v3674_v27, %v8078_v58 }
 0xc87   : > { %v3643_v55 = vpop.f32.mrb[112].mxu0 }
 0xc88   : > { %v3700_v19 = vadd.f32 %v3691_v49, %v8073_v45  ;;  %v3692_v59 = vmul.f32 0.044715, %v3683_v6  ;;  %v8086_v21 = vadd.f32 %v8070_v1, %v3643_v55  ;;  %v5033_v30 = vpop.f32.mrb[113].mxu0 }
 0xc89   : > { %v3646_v36 = vpop.f32.mrb[114].mxu0 }
 0xc8a   : > { %v3709_v2 = vmul.f32 0.7978846, %v3700_v19  ;;  %v3701_v10 = vadd.f32 %v3692_v59, %v8078_v58  ;;  %v3675_v31 = vmul.f32 %v8086_v21, %v8086_v21  ;;  %v8092_v56 = vadd.f32 %v8070_v1, %v3646_v36  ;;  %v5034_v39 = vpop.f32.mrb[115].mxu0 }
 0xc8c   : > { %5549 = vtanh.f32 %v3709_v2  ;;  %v3710_v25 = vmul.f32 0.7978846, %v3701_v10  ;;  %v3684_v34 = vmul.f32 %v3675_v31, %v8086_v21  ;;  %v3676_v26 = vmul.f32 %v8092_v56, %v8092_v56 }
 0xc8e   : > { %5551 = vtanh.f32 %v3710_v25  ;;  %v3693_v22 = vmul.f32 0.044715, %v3684_v34  ;;  %v3685_v54 = vmul.f32 %v3676_v26, %v8092_v56 }
 0xc8f   : > { %v3651_v63 = vpop.f32.mrb[116].mxu0 }
 0xc90   : > { %v3702_v16 = vadd.f32 %v3693_v22, %v8086_v21  ;;  %v3694_v42 = vmul.f32 0.044715, %v3685_v54  ;;  %v8100_v15 = vadd.f32 %v8070_v1, %v3651_v63  ;;  %v5037_v43 = vpop.f32.mrb[117].mxu0 }
 0xc91   : > { %v3654_v9 = vpop.f32.mrb[118].mxu0 }
 0xc92   : > { %v3711_v41 = vmul.f32 0.7978846, %v3702_v16  ;;  %v3703_v14 = vadd.f32 %v3694_v42, %v8092_v56  ;;  %v3677_v17 = vmul.f32 %v8100_v15, %v8100_v15  ;;  %v8106_v4 = vadd.f32 %v8070_v1, %v3654_v9  ;;  %v5038_v18 = vpop.f32.mrb[119].mxu0 }
 0xc94   : > { %5553 = vtanh.f32 %v3711_v41  ;;  %v3712_v53 = vmul.f32 0.7978846, %v3703_v14  ;;  %v3686_v33 = vmul.f32 %v3677_v17, %v8100_v15  ;;  %v3678_v13 = vmul.f32 %v8106_v4, %v8106_v4 }
 0xc96   : > { %v5550_v48 = vpop.eup %5549  ;;  %5555 = vtanh.f32 %v3712_v53  ;;  %v3695_v50 = vmul.f32 0.044715, %v3686_v33  ;;  %v3687_v8 = vmul.f32 %v3678_v13, %v8106_v4 }
 0xc97   : > { %v3727_v52 = vadd.f32 1.0, %v5550_v48  ;;  %v3659_v3 = vpop.f32.mrb[120].mxu0 }
 0xc98   : > { %v5552_v40 = vpop.eup %5551  ;;  %v3704_v0 = vadd.f32 %v3695_v50, %v8100_v15  ;;  %v3696_v38 = vmul.f32 0.044715, %v3687_v8  ;;  %v8114_v32 = vadd.f32 %v8070_v1, %v3659_v3  ;;  %v5041_v11 = vpop.f32.mrb[121].mxu0 }
 0xc99   : > { %v3736_v37 = vmul.f32 0.5, %v3727_v52  ;;  %v3728_v5 = vadd.f32 1.0, %v5552_v40  ;;  %v3662_v28 = vpop.f32.mrb[122].mxu0 }
 0xc9a   : > { %v3713_v60 = vmul.f32 0.7978846, %v3704_v0  ;;  %v3705_v62 = vadd.f32 %v3696_v38, %v8106_v4  ;;  %v3679_v46 = vmul.f32 %v8114_v32, %v8114_v32  ;;  %v8120_v51 = vadd.f32 %v8070_v1, %v3662_v28  ;;  %v5042_v23 = vpop.f32.mrb[123].mxu0 }
 0xc9b   : > { %v3737_v27 = vmul.f32 0.5, %v3728_v5  ;;  %v3745_v19 = vmul.f32 %v3736_v37, %v8073_v45 }
 0xc9c   : > { %5557 = vtanh.f32 %v3713_v60  ;;  %v3714_v49 = vmul.f32 0.7978846, %v3705_v62  ;;  %v3688_v6 = vmul.f32 %v3679_v46, %v8114_v32  ;;  %v3680_v55 = vmul.f32 %v8120_v51, %v8120_v51 }
 0xc9d   : > { %v3746_v59 = vmul.f32 %v3737_v27, %v8078_v58 }
 0xc9e   : > { %v5554_v30 = vpop.eup %5553  ;;  %5559 = vtanh.f32 %v3714_v49  ;;  %v3697_v36 = vmul.f32 0.044715, %v3688_v6  ;;  %v3689_v2 = vmul.f32 %v3680_v55, %v8120_v51 }
 0xc9f   : > { %v3754_v10 = vpack.c.bf16 %v3746_v59, %v3745_v19  ;;  %v3729_v31 = vadd.f32 1.0, %v5554_v30  ;;  %v3667_v39 = vpop.f32.mrb[124].mxu0  ;;  %v4574_v59 = vld [vmem:[%s8406_s25] ss:$0 sm:$0xff] }
 0xca0   : > { %v5556_v25 = vpop.eup %5555  ;;  %v3706_v34 = vadd.f32 %v3697_v36, %v8114_v32  ;;  %v3698_v26 = vmul.f32 0.044715, %v3689_v2  ;;  %v3668_v22 = vadd.f32 %v8070_v1, %v3667_v39  ;;  %v5045_v54 = vpop.f32.mrb[125].mxu0 }
 0xca1   : > { %v3738_v63 = vmul.f32 0.5, %v3729_v31  ;;  %v3730_v45 = vadd.f32 1.0, %v5556_v25  ;;  %v3670_v16 = vpop.f32.mrb[126].mxu0  ;;  %5056 = vmatmul.mubr.msk.bf16.vlgmr.msra.gmra.mrb[92].mxu1 %vm3791_vm4, %v3754_v10 }
 0xca2   : > { %v3715_v58 = vmul.f32 0.7978846, %v3706_v34  ;;  %v3707_v42 = vadd.f32 %v3698_v26, %v8120_v51  ;;  %v3681_v43 = vmul.f32 %v3668_v22, %v3668_v22  ;;  %v5046_v9 = vpop.f32.mrb[127].mxu0  ;;  %5059 = vmatprep.mubr.msk.bf16.mxu1 %vm6150_vm3, %v8397_v61 }
 0xca3   : > { %v3739_v41 = vmul.f32 0.5, %v3730_v45  ;;  %v3747_v1 = vmul.f32 %v3738_v63, %v8086_v21 }
 0xca4   : > { %5561 = vtanh.f32 %v3715_v58  ;;  %v3716_v14 = vmul.f32 0.7978846, %v3707_v42  ;;  %v3690_v17 = vmul.f32 %v3681_v43, %v3668_v22 }
 0xca5   : > { %v3748_v18 = vmul.f32 %v3739_v41, %v8092_v56 }
 0xca6   : > { %v5558_v53 = vpop.eup %5557  ;;  %5563 = vtanh.f32 %v3716_v14  ;;  %v3699_v33 = vmul.f32 0.044715, %v3690_v17 }
 0xca7   : > { %v3731_v13 = vadd.f32 1.0, %v5558_v53  ;;  %v3755_v48 = vpack.c.bf16 %v3748_v18, %v3747_v1 }
 0xca8   : > { %v5560_v50 = vpop.eup %5559  ;;  %v3708_v8 = vadd.f32 %v3699_v33, %v3668_v22 }
 0xca9   : > { %v3740_v52 = vmul.f32 0.5, %v3731_v13  ;;  %v3732_v3 = vadd.f32 1.0, %v5560_v50  ;;  %5060 = vmatmul.mubr.msk.bf16.gmra.mrb[96].mxu1 %vm3791_vm4, %v3755_v48 }
 0xcaa   : > { %v3717_v40 = vmul.f32 0.7978846, %v3708_v8  ;;  %5063 = vmatprep.mubr.msk.bf16.mxu1 %vm6150_vm3, %v8397_v61 }
 0xcab   : > { %v3741_v0 = vmul.f32 0.5, %v3732_v3  ;;  %v3749_v21 = vmul.f32 %v3740_v52, %v8100_v15 }
 0xcac   : > { %5565 = vtanh.f32 %v3717_v40 }
 0xcad   : > { %v3750_v56 = vmul.f32 %v3741_v0, %v8106_v4  ;;  %v6166_v0 = vmov (!%p4575_p12), 0.0  }
 0xcae   : > { %v5562_v38 = vpop.eup %5561  ;;  %5075 = vmatprep.subr.bf16.mxu0 (!%p4575_p12), %v6166_v0  ;;  %5083 = vmatprep.subr.bf16.mxu1 (!%p4575_p12), %v6166_v0 }
 0xcaf   : > { %v3733_v11 = vadd.f32 1.0, %v5562_v38  ;;  %v3756_v37 = vpack.c.bf16 %v3750_v56, %v3749_v21  ;;  %v5577_v21 = vld [vmem:[#allocation21 + $0x8] sm:$0xff] (!%p4575_p12)  }
 0xcb0   : > { %v5564_v5 = vpop.eup %5563 }
 0xcb1   : > { %v3742_v28 = vmul.f32 0.5, %v3733_v11  ;;  %v3734_v60 = vadd.f32 1.0, %v5564_v5  ;;  %5064 = vmatmul.mubr.msk.bf16.gmra.mrb[100].mxu1 %vm3791_vm4, %v3756_v37  ;;  %v4576_v5 = vld [vmem:[#allocation19] ss:$0 sm:$0xff] (!%p4575_p12) }
 0xcb2   : > { %5067 = vmatprep.mubr.msk.bf16.mxu1 %vm6150_vm3, %v8397_v61 }
 0xcb3   : > { %v3743_v62 = vmul.f32 0.5, %v3734_v60  ;;  %v3751_v46 = vmul.f32 %v3742_v28, %v8114_v32  ;;  %v4577_v60 = vld [vmem:[#allocation20] ss:$0 sm:$0xff] (!%p4575_p12) }
 0xcb5   : > { %v3752_v23 = vmul.f32 %v3743_v62, %v8120_v51 }
 0xcb6   : > { %v5566_v15 = vpop.eup %5565 }
 0xcb7   : > { %v3757_v27 = vpack.c.bf16 %v3752_v23, %v3751_v46  ;;  %v3735_v4 = vadd.f32 1.0, %v5566_v15  ;;  %v5578_v15 = vld [vmem:[%s8408_s30] sm:$0xff] (!%p4575_p12)  }
 0xcb8   : > { %5084 = vmatpush3.bf16.msra.mxu1 (!%p4575_p12), %v5578_v15 }
 0xcb9   : > { %5068 = vmatmul.mubr.msk.bf16.gmra.mrb[104].mxu1 %vm3791_vm4, %v3757_v27  ;;  %v3744_v49 = vmul.f32 0.5, %v3735_v4  ;;  %v5579_v27 = vld [vmem:[%s8408_s30 + $0x8] sm:$0xff] (!%p4575_p12)   ;;  %5085 = vmatprep.subr.bf16.mxu1 (!%p4575_p12), %v6166_v0  ;;  %v5580_v4 = vld [vmem:[%s8408_s30 + $0x10] sm:$0xff] (!%p4575_p12)  }
 0xcba   : > { %5071 = vmatprep.mubr.msk.bf16.mxu1 %vm6150_vm3, %v8397_v61  ;;  %vm6167_vm3 = vmmov (!%p4575_p12), 0  }
 0xcbb   : > { %v3753_v6 = vmul.f32 %v3744_v49, %v3668_v22  ;;  %5079 = vmatprep.mubr.msk.bf16.mxu0 (!%p4575_p12), %vm6167_vm3, %v6166_v0  ;;  %v5581_v49 = vld [vmem:[%s8408_s30 + $0x18] sm:$0xff] (!%p4575_p12)  }
 0xcbc   : > { %5086 = vmatpush3.bf16.msra.mxu1 (!%p4575_p12), %v5579_v27 }
 0xcbd   : > { %v3758_v55 = vpack.c.bf16 %v3753_v6, %v3753_v6  ;;  %5087 = vmatprep.subr.bf16.mxu1 (!%p4575_p12), %v6166_v0  ;;  %v4578_v6 = vld [vmem:[%s8409_s16] ss:$0 sm:$0xff] (!%p4575_p12) }
 0xcc0   : > { %5088 = vmatpush3.bf16.msra.mxu1 (!%p4575_p12), %v5580_v4 }
 0xcc1   : > { %5072 = vmatmul.mubr.msk.bf16.gmra.mrb[108].mxu1 %vm3791_vm4, %v3758_v55  ;;  %5089 = vmatprep.subr.bf16.mxu1 (!%p4575_p12), %v6166_v0 }
 0xcc2   : > { %5091 = vmatprep.mubr.msk.bf16.mxu1 (!%p4575_p12), %vm6167_vm3, %v6166_v0 }
 0xcc4   : > { %5090 = vmatpush3.bf16.msra.mxu1 (!%p4575_p12), %v5581_v49 }
 0xd74   : > { %v3841_v19 = vpop.f32.mrb[92].mxu1 }
 0xd75   : > { %v3879_v32 = vadd.f32 %v3841_v19, %v7931_v20  ;;  %v5057_v30 = vpop.f32.mrb[93].mxu1 }
 0xd76   : > { %v3844_v51 = vpop.f32.mrb[94].mxu1 }
 0xd77   : > { %v3895_v36 = vadd.f32 %v4574_v59, %v3879_v32  ;;  %v3880_v2 = vadd.f32 %v3844_v51, %v7933_v35  ;;  %v5058_v10 = vpop.f32.mrb[95].mxu1 }
 0xd79   : > { %3904 = vst.msk [vmem:[#allocation2] sm:$0xff] %vm1480_vm2, %v3895_v36  ;;  %v3896_v31 = vadd.f32 %v4574_v59, %v3880_v2 }
 0xd7b   : > { %3905 = vst.msk [vmem:[#allocation2 + $0x8] sm:$0xff] %vm1480_vm2, %v3896_v31 }
 0xd7c   : > { %v3849_v61 = vpop.f32.mrb[96].mxu1 }
 0xd7d   : > { %v3881_v39 = vadd.f32 %v3849_v61, %v7939_v24  ;;  %v5061_v25 = vpop.f32.mrb[97].mxu1 }
 0xd7e   : > { %v3852_v34 = vpop.f32.mrb[98].mxu1 }
 0xd7f   : > { %v3897_v26 = vadd.f32 %v4574_v59, %v3881_v39  ;;  %v3882_v22 = vadd.f32 %v3852_v34, %v7941_v7  ;;  %v5062_v20 = vpop.f32.mrb[99].mxu1 }
 0xd81   : > { %3906 = vst.msk [vmem:[#allocation2 + $0x10] sm:$0xff] %vm1480_vm2, %v3897_v26  ;;  %v3898_v54 = vadd.f32 %v4574_v59, %v3882_v22  ;;  %v4582_v22 = vld [vmem:[%s8410_s27] ss:$0 sm:$0xff] (!%p4575_p12) }
 0xd83   : > { %3907 = vst.msk [vmem:[#allocation2 + $0x18] sm:$0xff] %vm1480_vm2, %v3898_v54 }
 0xd84   : > { %v3857_v35 = vpop.f32.mrb[100].mxu1 }
 0xd85   : > { %v3883_v63 = vadd.f32 %v3857_v35, %v7947_v12  ;;  %v5065_v45 = vpop.f32.mrb[101].mxu1 }
 0xd86   : > { %v3860_v16 = vpop.f32.mrb[102].mxu1 }
 0xd87   : > { %v3899_v58 = vadd.f32 %v4574_v59, %v3883_v63  ;;  %v3884_v42 = vadd.f32 %v3860_v16, %v7949_v44  ;;  %v5066_v24 = vpop.f32.mrb[103].mxu1 }
 0xd89   : > { %3908 = vst.msk [vmem:[#allocation2 + $0x20] sm:$0xff] %vm1480_vm2, %v3899_v58  ;;  %v3900_v43 = vadd.f32 %v4574_v59, %v3884_v42 }
 0xd8b   : > { %3909 = vst.msk [vmem:[#allocation2 + $0x28] sm:$0xff] %vm1480_vm2, %v3900_v43 }
 0xd8c   : > { %v3865_v7 = vpop.f32.mrb[104].mxu1 }
 0xd8d   : > { %v3885_v9 = vadd.f32 %v3865_v7, %v7955_v57  ;;  %v5069_v41 = vpop.f32.mrb[105].mxu1 }
 0xd8e   : > { %v3868_v14 = vpop.f32.mrb[106].mxu1 }
 0xd8f   : > { %v3901_v17 = vadd.f32 %v4574_v59, %v3885_v9  ;;  %v3886_v1 = vadd.f32 %v3868_v14, %v7957_v29  ;;  %v5070_v12 = vpop.f32.mrb[107].mxu1 }
 0xd91   : > { %3910 = vst.msk [vmem:[#allocation2 + $0x30] sm:$0xff] %vm1480_vm2, %v3901_v17  ;;  %v3902_v18 = vadd.f32 %v4574_v59, %v3886_v1 }
 0xd93   : > { %3911 = vst.msk [vmem:[#allocation2 + $0x38] sm:$0xff] %vm1480_vm2, %v3902_v18  ;;  %3916 = sbr.rel (%p4575_p12) target bundleno = 4570 (0x11da), region = 192 }
 0xd94   : > { %v3873_v44 = vpop.f32.mrb[108].mxu1 }
 0xd95   : > { %v3887_v53 = vadd.f32 %v3873_v44, %v7963_v47  ;;  %v5073_v33 = vpop.f32.mrb[109].mxu1  ;;  %v5576_v47 = vld [vmem:[#allocation21] sm:$0xff] (!%p4575_p12)  }
 0xd96   : > { %v3876_v13 = vpop.f32.mrb[110].mxu1  ;;  %5076 = vmatpush3.bf16.msra.mxu0 (!%p4575_p12), %v5576_v47 }
 0xd97   : > { %v3903_v48 = vadd.f32 %v4574_v59, %v3887_v53  ;;  %v5074_v50 = vpop.f32.mrb[111].mxu1  ;;  %5077 = vmatprep.subr.bf16.mxu0 (!%p4575_p12), %v6166_v0 }
 0xd99   : > { %3912 = vst.msk [vmem:[#allocation2 + $0x40] sm:$0xff] %vm1480_vm2, %v3903_v48  ;;  %v3919_v57 = vsel (!%p4575_p12), %vm1480_vm2, %v3903_v48, 0.0 }
 0xd9a   : > { %3920 = vadd.xlane.f32.xlu0 %v3919_v57  ;;  %5078 = vmatpush3.bf16.msra.mxu0 %v5577_v21 }
 0xe27   : > { %v3921_v29 = vpop.xlane.xlu0 %3920 }
 0xe28   : > { %v3922_v8 = vmul.f32 0.03125, %v3921_v29 }
 0xe2a   : > { %v3923_v52 = vsub.f32 %v3903_v48, %v3922_v8 }
 0xe2c   : > { %v3924_v3 = vmul.f32 %v3923_v52, %v3923_v52 }
 0xe2e   : > { %v3925_v40 = vsel %vm1480_vm2, %v3924_v3, 0.0 }
 0xe2f   : > { %3926 = vadd.xlane.f32.xlu0 %v3925_v40 }
 0xebc   : > { %v3927_v56 = vpop.xlane.xlu0 %3926 }
 0xebd   : > { %v3928_v38 = vmul.f32 0.03125, %v3927_v56 }
 0xebf   : > { %v3929_v11 = vadd.f32 1e-05, %v3928_v38 }
 0xec1   : > { %5582 = vrsqrt.f32 %v3929_v11 }
 0xecb   : > { %v5583_v37 = vpop.eup %5582 }
 0xecc   : > { %v3931_v28 = vmul.f32 %v5583_v37, %v3923_v52 }
 0xece   : > { %v3938_v62 = vmul.f32 %v4576_v5, %v3931_v28 }
 0xed0   : > { %v3945_v46 = vadd.f32 %v4577_v60, %v3938_v62 }
 0xed2   : > { %v3946_v23 = vpack.c.bf16 %v3945_v46, %v3945_v46 }
 0xed4   : > { %5080 = vmatmul.mubr.msk.bf16.vlgmr.msra.gmra.mrb[0].mxu0 %vm1480_vm2, %v3946_v23 }
 0xfa7   : > { %v4007_v55 = vpop.f32.mrb[0].mxu0 }
 0xfa8   : > { %v4008_v19 = vadd.f32 %v4578_v6, %v4007_v55  ;;  %v5081_v59 = vpop.f32.mrb[1].mxu0 }
 0xfa9   : > { %v4010_v32 = vpop.f32.mrb[2].mxu0 }
 0xfaa   : > { %v4013_v30 = vmul.f32 %v4008_v19, %v4008_v19  ;;  %v5082_v51 = vpop.f32.mrb[3].mxu0 }
 0xfac   : > { %v4014_v36 = vmul.f32 %v4013_v30, %v4008_v19 }
 0xfae   : > { %v4015_v2 = vmul.f32 0.044715, %v4014_v36 }
 0xfb0   : > { %v4016_v10 = vadd.f32 %v4015_v2, %v4008_v19 }
 0xfb2   : > { %v4017_v31 = vmul.f32 0.7978846, %v4016_v10 }
 0xfb4   : > { %5584 = vtanh.f32 %v4017_v31 }
 0xfbe   : > { %v5585_v61 = vpop.eup %5584 }
 0xfbf   : > { %v4019_v39 = vadd.f32 1.0, %v5585_v61 }
 0xfc1   : > { %v4020_v25 = vmul.f32 0.5, %v4019_v39 }
 0xfc3   : > { %v4021_v34 = vmul.f32 %v4020_v25, %v4008_v19 }
 0xfc5   : > { %v4022_v26 = vpack.c.bf16 %v4021_v34, %v4021_v34 }
 0xfc7   : > { %5092 = vmatmul.mubr.msk.bf16.vlgmr.msra.gmra.mrb[0].mxu1 %vm3791_vm4, %v4022_v26 }
0x109a   : > { %v4099_v20 = vpop.f32.mrb[0].mxu1 }
0x109b   : > { %v4100_v54 = vadd.f32 %v4582_v22, %v4099_v20  ;;  %v5093_v35 = vpop.f32.mrb[1].mxu1 }
0x109c   : > { %v4102_v63 = vpop.f32.mrb[2].mxu1 }
0x109d   : > { %4105 = vmax.xlane.f32.xlu1 %v4100_v54  ;;  %v5094_v45 = vpop.f32.mrb[3].mxu1 }
0x112a   : > { %v4106_v16 = vpop.xlane.xlu1 %4105 }
0x112b   : > { %v4107_v58 = vsub.f32 %v4100_v54, %v4106_v16 }
0x112d   : > { %v4108_v42 = vmul.f32 1.442695, %v4107_v58 }
0x112f   : > { %5586 = vpow2.f32 %v4108_v42 }
0x1139   : > { %v5587_v24 = vpop.eup %5586 }
0x113a   : > { %4110 = vadd.xlane.f32.xlu1 %v5587_v24 }
0x11c7   : > { %v4111_v43 = vpop.xlane.xlu1 %4110 }
0x11c8   : > { %5588 = vlog2.f32 %v4111_v43 }
0x11d2   : > { %v5589_v7 = vpop.eup %5588 }
0x11d3   : > { %v4113_v9 = vmul.f32 0.6931472, %v5589_v7 }
0x11d5   : > { %v4114_v41 = vadd.f32 %v4113_v9, %v4106_v16 }
0x11d7   : > { %v4115_v14 = vsub.f32 %v4100_v54, %v4114_v41 }
0x11d9   : > { %4116 = vst [vmem:[#allocation23] sm:$0xff] %v4115_v14 }
0x11da PF: > { %p5215_p5 = scmp.eq.s32.totalorder %s6335_s29, 1  ;;  %s6168_s25 = smov [#allocation23]  }
0x11db   : > { %s4126_s1 = sshll.u32 %s6168_s25, 4  ;;  %s4127_s1 = int_to_ptr.vmem [resolvable:$true] %s4126_s1 }
0x11dc   : > { %s6026_s2 = scalar_lea.vmem %s4127_s1, 128  ;;  %p6033_p4 = scmp.lt.s32.totalorder %s4127_s1, %s4127_s1 }
0x11dd   : > { %p6027_p8 = scmp.ne.s32.totalorder %s4127_s1, %s6026_s2  ;;  %p6034_p11 = scmp.lt.s32.totalorder %s6026_s2, %s6026_s2 }
0x11df   : > { %p6028_p10 = pnand %p6027_p8, %p5215_p5  ;;  %p6035_p2 = por %p6034_p11, %p6033_p4 }
0x11e1   : > { %p6029_p0 = pneg %p6028_p10 }
0x11e3   : > { %p6036_p7 = pnand %p6035_p2, %p6029_p0 }
0x11e5   : > { %6039 = shalt.err (!%p6036_p7)
}
0x11e6   : > { %s8411_s24 = sld [smem:[#allocation63_spill]] }
0x11ec   : > { %s6040_s10 = scalar_lea.hbm %s8411_s24, 128 }
0x11ed   : > { %p6041_p13 = scmp.ne.s32.totalorder %s8411_s24, %s6040_s10  ;;  %p6046_p1 = scmp.lt.u32.totalorder %s6040_s10, %s8411_s24 }
0x11ef   : > { %p6042_p3 = pnand %p6041_p13, %p5215_p5 }
0x11f1   : > { %p6043_p9 = pneg %p6042_p3 }
0x11f3   : > { %p6048_p6 = pnand %p6046_p1, %p6043_p9 }
0x11f5   : > { %6051 = shalt.err (!%p6048_p6)
}
0x11f6   : > { %5150 = dma.vmem_to_hbm [thread:$0]  (%p5215_p5), %s4127_s1, 128, %s8411_s24, [#allocation5]  }
0x11f7   : > { %6105 = dma.done.wait (%p5215_p5), [#allocation5], 128  }
0x11f8   : > { %6107 = vsyncadd (%p5215_p5), [#allocation5], 4294967168 }
0x11f9 PF: > { %s8412_s13 = sld [smem:[#allocation36_spill]]  ;;  %s8413_s27 = sld [smem:[#allocation32_spill]] }
0x11fa   : > { %s8414_s3 = sld [smem:[#allocation33_spill]]  ;;  %s8415_s7 = sld [smem:[#allocation39_spill]] }
0x11fb   : > { %s8416_s28 = sld [smem:[#allocation35_spill]]  ;;  %s8417_s8 = sld [smem:[#allocation37_spill]] }
0x11ff   : > { %s41_s4 = sadd.s32 1, %s8412_s13  }
0x1200   : > { %p38_p12 = scmp.ge.s32.totalorder %s41_s4, 4  }
0x1202   :  { %40 = sbr.rel (!%p38_p12) target bundleno = 28 (0x1c), region = 293 }
0x1209   :  { %4139 = vsyncpa [#allocation4], 1 }
0x120a   :  { %4141 = vsyncpa [#allocation4 + $0x1], 1 }
0x120b   :  { %4142 = vsyncpa [#allocation7], 1 }
0x120c   :  { %4143 = vsyncpa [#allocation10], 1 }
0x120d   :  { %4144 = vsyncpa [#allocation22], 1 }
0x120e   :  { %4145 = vsyncpa [#allocation5], 1 }
0x120f   :  { %4147 = vsyncpa [#allocation5 + $0x1], 1 }

</bundles_post_ra>
